<compile_context>
chip_gen: v5e
topology: v5e:2x2
jax: 0.10.0
libtpu: 0.0.40
codegen_flags: <defaults>
</compile_context>

<pallas_src>
import functools

import jax
import jax.numpy as jnp
from jax.experimental import pallas as pl
from jax.experimental.pallas import tpu as pltpu


LANE = 128      # lane width; channel dims are padded to multiples of this
GEOM_PAD = 8    # R^3 geometric inputs zero-padded to 8 lanes for clean matmuls


def _round_up(n, m=LANE):
    return ((n + m - 1) // m) * m


def _tri(i, k):
    # Index of lower-triangular entry (i, k), i >= k, in jnp.tril_indices order.
    return i * (i + 1) // 2 + k


def _elu(x):
    # ELU(alpha=1), numerically safe under jnp.where.
    return jnp.where(x > 0, x, jnp.exp(jnp.minimum(x, 0.0)) - 1.0)


# ----------------------------------------------------------------------------
# Fused per-layer Pallas kernel
# ----------------------------------------------------------------------------
def _metric_layer_kernel(*refs, mode, e, symmetric, eps):
    (feat_ref, vertp_ref, edgep_ref, srcg_ref, dstg_ref, srcs_ref,
     w_m1_ref, b_m1_ref, w_m2_ref, b_m2_ref, w_emb_ref, b_emb_ref,
     w_mix_ref, b_mix_ref) = refs[:14]
    out_ref, met_ref = refs[14], refs[15]

    x = feat_ref[...]                                   # (V, C)  lane-padded

    # --- metric MLP on vertex positions (two linears + ELU, fused) ---------
    h = _elu(jnp.dot(vertp_ref[...], w_m1_ref[...],
                     preferred_element_type=jnp.float32) + b_m1_ref[...])
    l = jnp.dot(h, w_m2_ref[...],
                preferred_element_type=jnp.float32) + b_m2_ref[...]

    # --- per-vertex metric G (flattened into lane-padded output) -----------
    met_ref[...] = jnp.zeros_like(met_ref)
    if symmetric:
        # l holds lower-triangular L entries (tril order); G = L L^T.
        for i in range(e):
            for j in range(e):
                gij = None
                for k in range(min(i, j) + 1):
                    t = (l[:, _tri(i, k):_tri(i, k) + 1]
                         * l[:, _tri(j, k):_tri(j, k) + 1])
                    gij = t if gij is None else gij + t
                met_ref[:, i * e + j:i * e + j + 1] = gij
    else:
        met_ref[:, :e * e] = l[:, :e * e]

    # --- per-edge weights w = exp(-emb^T G[src] emb) ------------------------
    emb = jnp.dot(edgep_ref[...], w_emb_ref[...],
                  preferred_element_type=jnp.float32) + b_emb_ref[...]   # (E, e)
    src_g = srcg_ref[...]                                                # (E, V)
    if symmetric:
        # quad = || L[src]^T emb ||^2  ==  emb^T G[src] emb
        l_src = jnp.dot(src_g, l, preferred_element_type=jnp.float32)    # (E, ntri)
        quad = None
        for k in range(e):
            y = None
            for i in range(k, e):
                t = emb[:, i:i + 1] * l_src[:, _tri(i, k):_tri(i, k) + 1]
                y = t if y is None else y + t
            quad = y * y if quad is None else quad + y * y
    else:
        g_src = jnp.dot(src_g, l[:, :e * e],
                        preferred_element_type=jnp.float32)              # (E, e*e)
        quad = None
        for i in range(e):
            for j in range(e):
                t = (emb[:, i:i + 1]
                     * g_src[:, i * e + j:i * e + j + 1]
                     * emb[:, j:j + 1])
                quad = t if quad is None else quad + t
    w = jnp.exp(-quad)                                                   # (E, 1)

    # --- row-normalized weighted aggregation (one-hot gather/scatter) ------
    xn = jnp.dot(dstg_ref[...], x, preferred_element_type=jnp.float32)   # (E, C)
    agg_sum = jnp.dot(srcs_ref[...], w * xn,
                      preferred_element_type=jnp.float32) + x            # + self loop
    denom = jnp.dot(srcs_ref[...], w,
                    preferred_element_type=jnp.float32) + 1.0 + eps      # (V, 1)
    agg = agg_sum / denom

    # --- single fused self/neighbor mix matmul ------------------------------
    o = jnp.dot(jnp.concatenate([x, agg], axis=1), w_mix_ref[...],
                preferred_element_type=jnp.float32) + b_mix_ref[...]     # (V, Cout)

    # --- epilogue: normalize over vertices + ELU (+ residual average) ------
    if mode == "last":
        out_ref[...] = o
    else:
        n = o.shape[0]
        mean = jnp.mean(o, axis=0, keepdims=True)
        var = jnp.sum((o - mean) ** 2, axis=0, keepdims=True) / (n - 1)  # unbiased
        y = _elu((o - mean) / (jnp.sqrt(var) + eps))
        if mode == "res":
            out_ref[...] = (y + x) * 0.5      # residual == input features
        else:
            out_ref[...] = y


# ----------------------------------------------------------------------------
# Per-layer wrapper (single full-array block; shapes are small)
# ----------------------------------------------------------------------------
def _full_spec(shape):
    ndim = len(shape)
    return pl.BlockSpec(shape, lambda i, _n=ndim: (0,) * _n)


def _metric_layer(lp, x_pad, geom, mode, *, embedding_dim, symmetric, eps):
    vert_p, edge_p, src_g, dst_g, src_s = geom
    v = x_pad.shape[0]
    e = embedding_dim
    cp_out = lp["w_mix"].shape[1]
    met_pad = _round_up(e * e)

    inputs = [x_pad, vert_p, edge_p, src_g, dst_g, src_s,
              lp["w_m1"], lp["b_m1"], lp["w_m2"], lp["b_m2"],
              lp["w_emb"], lp["b_emb"], lp["w_mix"], lp["b_mix"]]

    out, met = pl.pallas_call(
        functools.partial(_metric_layer_kernel, mode=mode, e=e,
                          symmetric=symmetric, eps=eps),
        out_shape=(jax.ShapeDtypeStruct((v, cp_out), jnp.float32),
                   jax.ShapeDtypeStruct((v, met_pad), jnp.float32)),
        grid=(1,),
        in_specs=[_full_spec(a.shape) for a in inputs],
        out_specs=(_full_spec((v, cp_out)), _full_spec((v, met_pad))),
        compiler_params=pltpu.CompilerParams(
            dimension_semantics=("arbitrary",),
            vmem_limit_bytes=32 << 20),
    )(*inputs)
    return out, met[:, :e * e].reshape(v, e, e)


# ----------------------------------------------------------------------------
# Parameters
# ----------------------------------------------------------------------------
def init_metric_conv_params(key, in_feats, out_feats, embedding_dim,
                            metric_n_hidden=32, symmetric=True):
    ks = jax.random.split(key, 5)

    def init_w(k, shape):
        return (jax.random.normal(k, shape, jnp.float32)
                / jnp.sqrt(jnp.float32(shape[0])))

    e = embedding_dim
    n_tri = e * (e + 1) // 2 if symmetric else e * e
    cp_in = _round_up(in_feats)
    cp_out = _round_up(out_feats)

    w_self = init_w(ks[3], (in_feats, out_feats))
    w_neigh = init_w(ks[4], (in_feats, out_feats))
    # Fused, lane-padded mix weight: [W_self ; W_neigh] along K, zero padded.
    w_mix = jnp.zeros((2 * cp_in, cp_out), jnp.float32)
    w_mix = w_mix.at[:in_feats, :out_feats].set(w_self)
    w_mix = w_mix.at[cp_in:cp_in + in_feats, :out_feats].set(w_neigh)

    return {
        "w_m1": init_w(ks[0], (GEOM_PAD, metric_n_hidden)),
        "b_m1": jnp.zeros((1, metric_n_hidden), jnp.float32),
        "w_m2": init_w(ks[1], (metric_n_hidden, n_tri)),
        "b_m2": jnp.zeros((1, n_tri), jnp.float32),
        "w_emb": init_w(ks[2], (GEOM_PAD, e)),
        "b_emb": jnp.zeros((1, e), jnp.float32),
        "w_mix": w_mix,
        "b_mix": jnp.zeros((1, cp_out), jnp.float32),
    }


def init_metric_resnet_params(key, in_feats, out_feats, n_layers=8,
                              n_hidden=64, embedding_dim=8, symmetric=True):
    keys = jax.random.split(key, n_layers + 2)
    return {
        "conv1": init_metric_conv_params(keys[0], in_feats, n_hidden,
                                         embedding_dim, symmetric=symmetric),
        "blocks": [
            init_metric_conv_params(keys[1 + i], n_hidden, n_hidden,
                                    embedding_dim, symmetric=symmetric)
            for i in range(n_layers)
        ],
        "conv2": init_metric_conv_params(keys[-1], n_hidden, out_feats,
                                         embedding_dim, symmetric=symmetric),
        "out_feats": out_feats,
    }


# ----------------------------------------------------------------------------
# MetricResNet forward
# ----------------------------------------------------------------------------
def _pad_lanes(x, width):
    return jnp.pad(x, ((0, 0), (0, width - x.shape[1])))


def metric_resnet_forward(params, features, vertices, edges, faces,
                          embedding_dim, symmetric=True, eps=1e-5):
    del faces  # TODO(synk): `faces` unused in the reconstructed MetricConv.
    v = vertices.shape[0]
    # Make edges bidirectional.
    src = jnp.concatenate([edges[0], edges[1]]).astype(jnp.int32)
    dst = jnp.concatenate([edges[1], edges[0]]).astype(jnp.int32)

    # Layer-invariant geometry / connectivity, computed ONCE (hoisted out of
    # all per-layer kernel calls).
    vertices = vertices.astype(jnp.float32)
    vert_p = _pad_lanes(vertices, GEOM_PAD)                       # (V, 8)
    edge_p = _pad_lanes(vertices[dst] - vertices[src], GEOM_PAD)  # (E, 8)
    src_g = jax.nn.one_hot(src, v, dtype=jnp.float32)             # (E, V) gather@src
    dst_g = jax.nn.one_hot(dst, v, dtype=jnp.float32)             # (E, V) gather@dst
    src_s = jnp.transpose(src_g)                                  # (V, E) scatter-add
    geom = (vert_p, edge_p, src_g, dst_g, src_s)

    kw = dict(embedding_dim=embedding_dim, symmetric=symmetric, eps=eps)
    metric_per_vertex = []

    cp_in = params["conv1"]["w_mix"].shape[0] // 2
    x = _pad_lanes(features.astype(jnp.float32), cp_in)

    x, m = _metric_layer(params["conv1"], x, geom, "first", **kw)
    metric_per_vertex.append(m)

    for blk in params["blocks"]:
        x, m = _metric_layer(blk, x, geom, "res", **kw)
        metric_per_vertex.append(m)

    out_pad, m = _metric_layer(params["conv2"], x, geom, "last", **kw)
    metric_per_vertex.append(m)

    out = out_pad[:, :params["out_feats"]]
    return out, metric_per_vertex


# ----------------------------------------------------------------------------
# Demo
# ----------------------------------------------------------------------------
if __name__ == "__main__":
    key = jax.random.PRNGKey(0)
    k_feat, k_vert, k_param = jax.random.split(key, 3)

    V = 64          # vertices
    IN_FEATS = 8
    OUT_FEATS = 8
    N_HIDDEN = 32
    N_LAYERS = 2
    EMBED_DIM = 3
    SYMMETRIC = True

    features = jax.random.normal(k_feat, (V, IN_FEATS), jnp.float32)
    vertices = jax.random.normal(k_vert, (V, 3), jnp.float32)
    # Simple ring mesh connectivity.
    idx = jnp.arange(V, dtype=jnp.int32)
    edges = jnp.stack([idx, (idx + 1) % V], axis=0)                 # (2, V)
    faces = jnp.stack([idx, (idx + 1) % V, (idx + 2) % V], axis=1)  # (V, 3)

    params = init_metric_resnet_params(
        k_param, IN_FEATS, OUT_FEATS, n_layers=N_LAYERS,
        n_hidden=N_HIDDEN, embedding_dim=EMBED_DIM, symmetric=SYMMETRIC)

    out, metric_per_vertex = metric_resnet_forward(
        params, features, vertices, edges, faces,
        embedding_dim=EMBED_DIM, symmetric=SYMMETRIC, eps=1e-5)

    out = jax.block_until_ready(out)
    assert out.shape == (V, OUT_FEATS), out.shape
    assert len(metric_per_vertex) == N_LAYERS + 2
    assert metric_per_vertex[0].shape == (V, EMBED_DIM, EMBED_DIM)
    assert bool(jnp.all(jnp.isfinite(out)))
    print("KERNEL_OK")
</pallas_src>

<mosaic_0001>
module attributes {stable_mosaic.version = 11 : i64} {
  func.func @_metric_layer_kernel(%arg0: i32, %arg1: memref<64x128xf32, #tpu.memory_space<vmem>>, %arg2: memref<64x8xf32, #tpu.memory_space<vmem>>, %arg3: memref<128x8xf32, #tpu.memory_space<vmem>>, %arg4: memref<128x64xf32, #tpu.memory_space<vmem>>, %arg5: memref<128x64xf32, #tpu.memory_space<vmem>>, %arg6: memref<64x128xf32, #tpu.memory_space<vmem>>, %arg7: memref<8x32xf32, #tpu.memory_space<vmem>>, %arg8: memref<1x32xf32, #tpu.memory_space<vmem>>, %arg9: memref<32x6xf32, #tpu.memory_space<vmem>>, %arg10: memref<1x6xf32, #tpu.memory_space<vmem>>, %arg11: memref<8x3xf32, #tpu.memory_space<vmem>>, %arg12: memref<1x3xf32, #tpu.memory_space<vmem>>, %arg13: memref<256x128xf32, #tpu.memory_space<vmem>>, %arg14: memref<1x128xf32, #tpu.memory_space<vmem>>, %arg15: memref<64x128xf32, #tpu.memory_space<vmem>>, %arg16: memref<64x128xf32, #tpu.memory_space<vmem>>) attributes {dimension_semantics = [#tpu.dimension_semantics<arbitrary>], iteration_bounds = array<i64: 1>, scalar_prefetch = 0 : i64, scratch_operands = 0 : i64, tpu.core_type = #tpu.core_type<tc>, window_params = [{pipeline_mode = #tpu.pipeline_mode<synchronous>, transform_indices = @transform_0, window_bounds = array<i64: 64, 128>}, {pipeline_mode = #tpu.pipeline_mode<synchronous>, transform_indices = @transform_1, window_bounds = array<i64: 64, 8>}, {pipeline_mode = #tpu.pipeline_mode<synchronous>, transform_indices = @transform_2, window_bounds = array<i64: 128, 8>}, {pipeline_mode = #tpu.pipeline_mode<synchronous>, transform_indices = @transform_3, window_bounds = array<i64: 128, 64>}, {pipeline_mode = #tpu.pipeline_mode<synchronous>, transform_indices = @transform_4, window_bounds = array<i64: 128, 64>}, {pipeline_mode = #tpu.pipeline_mode<synchronous>, transform_indices = @transform_5, window_bounds = array<i64: 64, 128>}, {pipeline_mode = #tpu.pipeline_mode<synchronous>, transform_indices = @transform_6, window_bounds = array<i64: 8, 32>}, {pipeline_mode = #tpu.pipeline_mode<synchronous>, transform_indices = @transform_7, window_bounds = array<i64: 1, 32>}, {pipeline_mode = #tpu.pipeline_mode<synchronous>, transform_indices = @transform_8, window_bounds = array<i64: 32, 6>}, {pipeline_mode = #tpu.pipeline_mode<synchronous>, transform_indices = @transform_9, window_bounds = array<i64: 1, 6>}, {pipeline_mode = #tpu.pipeline_mode<synchronous>, transform_indices = @transform_10, window_bounds = array<i64: 8, 3>}, {pipeline_mode = #tpu.pipeline_mode<synchronous>, transform_indices = @transform_11, window_bounds = array<i64: 1, 3>}, {pipeline_mode = #tpu.pipeline_mode<synchronous>, transform_indices = @transform_12, window_bounds = array<i64: 256, 128>}, {pipeline_mode = #tpu.pipeline_mode<synchronous>, transform_indices = @transform_13, window_bounds = array<i64: 1, 128>}, {pipeline_mode = #tpu.pipeline_mode<synchronous>, transform_indices = @transform_14, window_bounds = array<i64: 64, 128>}, {pipeline_mode = #tpu.pipeline_mode<synchronous>, transform_indices = @transform_15, window_bounds = array<i64: 64, 128>}]} {
    %c0 = arith.constant 0 : index
    %c0_0 = arith.constant 0 : index
    %0 = vector.load %arg1[%c0, %c0_0] : memref<64x128xf32, #tpu.memory_space<vmem>>, vector<64x128xf32>
    %c0_1 = arith.constant 0 : index
    %c0_2 = arith.constant 0 : index
    %1 = vector.load %arg2[%c0_1, %c0_2] : memref<64x8xf32, #tpu.memory_space<vmem>>, vector<64x8xf32>
    %c0_3 = arith.constant 0 : index
    %c0_4 = arith.constant 0 : index
    %2 = vector.load %arg7[%c0_3, %c0_4] : memref<8x32xf32, #tpu.memory_space<vmem>>, vector<8x32xf32>
    %cst = arith.constant dense<0.000000e+00> : vector<64x32xf32>
    %3 = tpu.matmul %1, %2, %cst {dimension_numbers = #tpu.dot_dimension_numbers<[1], [0], [0], [1], [0, 0, 1, 1], [], []>} : vector<64x8xf32>, vector<8x32xf32>, vector<64x32xf32> -> vector<64x32xf32>
    %c0_5 = arith.constant 0 : index
    %c0_6 = arith.constant 0 : index
    %4 = vector.load %arg8[%c0_5, %c0_6] : memref<1x32xf32, #tpu.memory_space<vmem>>, vector<1x32xf32>
    %5 = vector.broadcast %4 : vector<1x32xf32> to vector<64x32xf32>
    %6 = arith.addf %3, %5 : vector<64x32xf32>
    %cst_7 = arith.constant 0.000000e+00 : f32
    %7 = vector.broadcast %cst_7 : f32 to vector<64x32xf32>
    %8 = arith.cmpf ogt, %6, %7 : vector<64x32xf32>
    %cst_8 = arith.constant 0.000000e+00 : f32
    %9 = vector.broadcast %cst_8 : f32 to vector<64x32xf32>
    %10 = arith.minimumf %6, %9 : vector<64x32xf32>
    %11 = math.exp %10 : vector<64x32xf32>
    %cst_9 = arith.constant 1.000000e+00 : f32
    %12 = vector.broadcast %cst_9 : f32 to vector<64x32xf32>
    %13 = arith.subf %11, %12 : vector<64x32xf32>
    %14 = arith.select %8, %6, %13 : vector<64x32xi1>, vector<64x32xf32>
    %c0_10 = arith.constant 0 : index
    %c0_11 = arith.constant 0 : index
    %15 = vector.load %arg9[%c0_10, %c0_11] : memref<32x6xf32, #tpu.memory_space<vmem>>, vector<32x6xf32>
    %cst_12 = arith.constant dense<0.000000e+00> : vector<64x6xf32>
    %16 = tpu.matmul %14, %15, %cst_12 {dimension_numbers = #tpu.dot_dimension_numbers<[1], [0], [0], [1], [0, 0, 1, 1], [], []>} : vector<64x32xf32>, vector<32x6xf32>, vector<64x6xf32> -> vector<64x6xf32>
    %c0_13 = arith.constant 0 : index
    %c0_14 = arith.constant 0 : index
    %17 = vector.load %arg10[%c0_13, %c0_14] : memref<1x6xf32, #tpu.memory_space<vmem>>, vector<1x6xf32>
    %18 = vector.broadcast %17 : vector<1x6xf32> to vector<64x6xf32>
    %19 = arith.addf %16, %18 : vector<64x6xf32>
    %cst_15 = arith.constant 0.000000e+00 : f32
    %20 = vector.broadcast %cst_15 : f32 to vector<64x128xf32>
    %c0_16 = arith.constant 0 : index
    %c0_17 = arith.constant 0 : index
    %21 = vector.load %arg16[%c0_16, %c0_17] : memref<64x128xf32, #tpu.memory_space<vmem>>, vector<64x128xf32>
    tpu.vector_store %arg16[%c0_16, %c0_17], %20 {strides = array<i32>} : memref<64x128xf32, #tpu.memory_space<vmem>>, vector<64x128xf32>,
    %22 = vector.extract_strided_slice %19 {offsets = [0, 0], sizes = [64, 1], strides = [1, 1]} : vector<64x6xf32> to vector<64x1xf32>
    %23 = vector.extract_strided_slice %19 {offsets = [0, 0], sizes = [64, 1], strides = [1, 1]} : vector<64x6xf32> to vector<64x1xf32>
    %24 = arith.mulf %22, %23 : vector<64x1xf32>
    %c0_18 = arith.constant 0 : index
    %c0_19 = arith.constant 0 : index
    %25 = vector.load %arg16[%c0_18, %c0_19] : memref<64x128xf32, #tpu.memory_space<vmem>>, vector<64x1xf32>
    tpu.vector_store %arg16[%c0_18, %c0_19], %24 {strides = array<i32>} : memref<64x128xf32, #tpu.memory_space<vmem>>, vector<64x1xf32>,
    %26 = vector.extract_strided_slice %19 {offsets = [0, 0], sizes = [64, 1], strides = [1, 1]} : vector<64x6xf32> to vector<64x1xf32>
    %27 = vector.extract_strided_slice %19 {offsets = [0, 1], sizes = [64, 1], strides = [1, 1]} : vector<64x6xf32> to vector<64x1xf32>
    %28 = arith.mulf %26, %27 : vector<64x1xf32>
    %c0_20 = arith.constant 0 : index
    %c1 = arith.constant 1 : index
    %29 = vector.load %arg16[%c0_20, %c1] : memref<64x128xf32, #tpu.memory_space<vmem>>, vector<64x1xf32>
    tpu.vector_store %arg16[%c0_20, %c1], %28 {strides = array<i32>} : memref<64x128xf32, #tpu.memory_space<vmem>>, vector<64x1xf32>,
    %30 = vector.extract_strided_slice %19 {offsets = [0, 0], sizes = [64, 1], strides = [1, 1]} : vector<64x6xf32> to vector<64x1xf32>
    %31 = vector.extract_strided_slice %19 {offsets = [0, 3], sizes = [64, 1], strides = [1, 1]} : vector<64x6xf32> to vector<64x1xf32>
    %32 = arith.mulf %30, %31 : vector<64x1xf32>
    %c0_21 = arith.constant 0 : index
    %c2 = arith.constant 2 : index
    %33 = vector.load %arg16[%c0_21, %c2] : memref<64x128xf32, #tpu.memory_space<vmem>>, vector<64x1xf32>
    tpu.vector_store %arg16[%c0_21, %c2], %32 {strides = array<i32>} : memref<64x128xf32, #tpu.memory_space<vmem>>, vector<64x1xf32>,
    %34 = vector.extract_strided_slice %19 {offsets = [0, 1], sizes = [64, 1], strides = [1, 1]} : vector<64x6xf32> to vector<64x1xf32>
    %35 = vector.extract_strided_slice %19 {offsets = [0, 0], sizes = [64, 1], strides = [1, 1]} : vector<64x6xf32> to vector<64x1xf32>
    %36 = arith.mulf %34, %35 : vector<64x1xf32>
    %c0_22 = arith.constant 0 : index
    %c3 = arith.constant 3 : index
    %37 = vector.load %arg16[%c0_22, %c3] : memref<64x128xf32, #tpu.memory_space<vmem>>, vector<64x1xf32>
    tpu.vector_store %arg16[%c0_22, %c3], %36 {strides = array<i32>} : memref<64x128xf32, #tpu.memory_space<vmem>>, vector<64x1xf32>,
    %38 = vector.extract_strided_slice %19 {offsets = [0, 1], sizes = [64, 1], strides = [1, 1]} : vector<64x6xf32> to vector<64x1xf32>
    %39 = vector.extract_strided_slice %19 {offsets = [0, 1], sizes = [64, 1], strides = [1, 1]} : vector<64x6xf32> to vector<64x1xf32>
    %40 = arith.mulf %38, %39 : vector<64x1xf32>
    %41 = vector.extract_strided_slice %19 {offsets = [0, 2], sizes = [64, 1], strides = [1, 1]} : vector<64x6xf32> to vector<64x1xf32>
    %42 = vector.extract_strided_slice %19 {offsets = [0, 2], sizes = [64, 1], strides = [1, 1]} : vector<64x6xf32> to vector<64x1xf32>
    %43 = arith.mulf %41, %42 : vector<64x1xf32>
    %44 = arith.addf %40, %43 : vector<64x1xf32>
    %c0_23 = arith.constant 0 : index
    %c4 = arith.constant 4 : index
    %45 = vector.load %arg16[%c0_23, %c4] : memref<64x128xf32, #tpu.memory_space<vmem>>, vector<64x1xf32>
    tpu.vector_store %arg16[%c0_23, %c4], %44 {strides = array<i32>} : memref<64x128xf32, #tpu.memory_space<vmem>>, vector<64x1xf32>,
    %46 = vector.extract_strided_slice %19 {offsets = [0, 1], sizes = [64, 1], strides = [1, 1]} : vector<64x6xf32> to vector<64x1xf32>
    %47 = vector.extract_strided_slice %19 {offsets = [0, 3], sizes = [64, 1], strides = [1, 1]} : vector<64x6xf32> to vector<64x1xf32>
    %48 = arith.mulf %46, %47 : vector<64x1xf32>
    %49 = vector.extract_strided_slice %19 {offsets = [0, 2], sizes = [64, 1], strides = [1, 1]} : vector<64x6xf32> to vector<64x1xf32>
    %50 = vector.extract_strided_slice %19 {offsets = [0, 4], sizes = [64, 1], strides = [1, 1]} : vector<64x6xf32> to vector<64x1xf32>
    %51 = arith.mulf %49, %50 : vector<64x1xf32>
    %52 = arith.addf %48, %51 : vector<64x1xf32>
    %c0_24 = arith.constant 0 : index
    %c5 = arith.constant 5 : index
    %53 = vector.load %arg16[%c0_24, %c5] : memref<64x128xf32, #tpu.memory_space<vmem>>, vector<64x1xf32>
    tpu.vector_store %arg16[%c0_24, %c5], %52 {strides = array<i32>} : memref<64x128xf32, #tpu.memory_space<vmem>>, vector<64x1xf32>,
    %54 = vector.extract_strided_slice %19 {offsets = [0, 3], sizes = [64, 1], strides = [1, 1]} : vector<64x6xf32> to vector<64x1xf32>
    %55 = vector.extract_strided_slice %19 {offsets = [0, 0], sizes = [64, 1], strides = [1, 1]} : vector<64x6xf32> to vector<64x1xf32>
    %56 = arith.mulf %54, %55 : vector<64x1xf32>
    %c0_25 = arith.constant 0 : index
    %c6 = arith.constant 6 : index
    %57 = vector.load %arg16[%c0_25, %c6] : memref<64x128xf32, #tpu.memory_space<vmem>>, vector<64x1xf32>
    tpu.vector_store %arg16[%c0_25, %c6], %56 {strides = array<i32>} : memref<64x128xf32, #tpu.memory_space<vmem>>, vector<64x1xf32>,
    %58 = vector.extract_strided_slice %19 {offsets = [0, 3], sizes = [64, 1], strides = [1, 1]} : vector<64x6xf32> to vector<64x1xf32>
    %59 = vector.extract_strided_slice %19 {offsets = [0, 1], sizes = [64, 1], strides = [1, 1]} : vector<64x6xf32> to vector<64x1xf32>
    %60 = arith.mulf %58, %59 : vector<64x1xf32>
    %61 = vector.extract_strided_slice %19 {offsets = [0, 4], sizes = [64, 1], strides = [1, 1]} : vector<64x6xf32> to vector<64x1xf32>
    %62 = vector.extract_strided_slice %19 {offsets = [0, 2], sizes = [64, 1], strides = [1, 1]} : vector<64x6xf32> to vector<64x1xf32>
    %63 = arith.mulf %61, %62 : vector<64x1xf32>
    %64 = arith.addf %60, %63 : vector<64x1xf32>
    %c0_26 = arith.constant 0 : index
    %c7 = arith.constant 7 : index
    %65 = vector.load %arg16[%c0_26, %c7] : memref<64x128xf32, #tpu.memory_space<vmem>>, vector<64x1xf32>
    tpu.vector_store %arg16[%c0_26, %c7], %64 {strides = array<i32>} : memref<64x128xf32, #tpu.memory_space<vmem>>, vector<64x1xf32>,
    %66 = vector.extract_strided_slice %19 {offsets = [0, 3], sizes = [64, 1], strides = [1, 1]} : vector<64x6xf32> to vector<64x1xf32>
    %67 = vector.extract_strided_slice %19 {offsets = [0, 3], sizes = [64, 1], strides = [1, 1]} : vector<64x6xf32> to vector<64x1xf32>
    %68 = arith.mulf %66, %67 : vector<64x1xf32>
    %69 = vector.extract_strided_slice %19 {offsets = [0, 4], sizes = [64, 1], strides = [1, 1]} : vector<64x6xf32> to vector<64x1xf32>
    %70 = vector.extract_strided_slice %19 {offsets = [0, 4], sizes = [64, 1], strides = [1, 1]} : vector<64x6xf32> to vector<64x1xf32>
    %71 = arith.mulf %69, %70 : vector<64x1xf32>
    %72 = arith.addf %68, %71 : vector<64x1xf32>
    %73 = vector.extract_strided_slice %19 {offsets = [0, 5], sizes = [64, 1], strides = [1, 1]} : vector<64x6xf32> to vector<64x1xf32>
    %74 = vector.extract_strided_slice %19 {offsets = [0, 5], sizes = [64, 1], strides = [1, 1]} : vector<64x6xf32> to vector<64x1xf32>
    %75 = arith.mulf %73, %74 : vector<64x1xf32>
    %76 = arith.addf %72, %75 : vector<64x1xf32>
    %c0_27 = arith.constant 0 : index
    %c8 = arith.constant 8 : index
    %77 = vector.load %arg16[%c0_27, %c8] : memref<64x128xf32, #tpu.memory_space<vmem>>, vector<64x1xf32>
    tpu.vector_store %arg16[%c0_27, %c8], %76 {strides = array<i32>} : memref<64x128xf32, #tpu.memory_space<vmem>>, vector<64x1xf32>,
    %c0_28 = arith.constant 0 : index
    %c0_29 = arith.constant 0 : index
    %78 = vector.load %arg3[%c0_28, %c0_29] : memref<128x8xf32, #tpu.memory_space<vmem>>, vector<128x8xf32>
    %c0_30 = arith.constant 0 : index
    %c0_31 = arith.constant 0 : index
    %79 = vector.load %arg11[%c0_30, %c0_31] : memref<8x3xf32, #tpu.memory_space<vmem>>, vector<8x3xf32>
    %cst_32 = arith.constant dense<0.000000e+00> : vector<128x3xf32>
    %80 = tpu.matmul %78, %79, %cst_32 {dimension_numbers = #tpu.dot_dimension_numbers<[1], [0], [0], [1], [0, 0, 1, 1], [], []>} : vector<128x8xf32>, vector<8x3xf32>, vector<128x3xf32> -> vector<128x3xf32>
    %c0_33 = arith.constant 0 : index
    %c0_34 = arith.constant 0 : index
    %81 = vector.load %arg12[%c0_33, %c0_34] : memref<1x3xf32, #tpu.memory_space<vmem>>, vector<1x3xf32>
    %82 = vector.broadcast %81 : vector<1x3xf32> to vector<128x3xf32>
    %83 = arith.addf %80, %82 : vector<128x3xf32>
    %c0_35 = arith.constant 0 : index
    %c0_36 = arith.constant 0 : index
    %84 = vector.load %arg4[%c0_35, %c0_36] : memref<128x64xf32, #tpu.memory_space<vmem>>, vector<128x64xf32>
    %cst_37 = arith.constant dense<0.000000e+00> : vector<128x6xf32>
    %85 = tpu.matmul %84, %19, %cst_37 {dimension_numbers = #tpu.dot_dimension_numbers<[1], [0], [0], [1], [0, 0, 1, 1], [], []>} : vector<128x64xf32>, vector<64x6xf32>, vector<128x6xf32> -> vector<128x6xf32>
    %86 = vector.extract_strided_slice %83 {offsets = [0, 0], sizes = [128, 1], strides = [1, 1]} : vector<128x3xf32> to vector<128x1xf32>
    %87 = vector.extract_strided_slice %85 {offsets = [0, 0], sizes = [128, 1], strides = [1, 1]} : vector<128x6xf32> to vector<128x1xf32>
    %88 = arith.mulf %86, %87 : vector<128x1xf32>
    %89 = vector.extract_strided_slice %83 {offsets = [0, 1], sizes = [128, 1], strides = [1, 1]} : vector<128x3xf32> to vector<128x1xf32>
    %90 = vector.extract_strided_slice %85 {offsets = [0, 1], sizes = [128, 1], strides = [1, 1]} : vector<128x6xf32> to vector<128x1xf32>
    %91 = arith.mulf %89, %90 : vector<128x1xf32>
    %92 = arith.addf %88, %91 : vector<128x1xf32>
    %93 = vector.extract_strided_slice %83 {offsets = [0, 2], sizes = [128, 1], strides = [1, 1]} : vector<128x3xf32> to vector<128x1xf32>
    %94 = vector.extract_strided_slice %85 {offsets = [0, 3], sizes = [128, 1], strides = [1, 1]} : vector<128x6xf32> to vector<128x1xf32>
    %95 = arith.mulf %93, %94 : vector<128x1xf32>
    %96 = arith.addf %92, %95 : vector<128x1xf32>
    %97 = arith.mulf %96, %96 : vector<128x1xf32>
    %98 = vector.extract_strided_slice %83 {offsets = [0, 1], sizes = [128, 1], strides = [1, 1]} : vector<128x3xf32> to vector<128x1xf32>
    %99 = vector.extract_strided_slice %85 {offsets = [0, 2], sizes = [128, 1], strides = [1, 1]} : vector<128x6xf32> to vector<128x1xf32>
    %100 = arith.mulf %98, %99 : vector<128x1xf32>
    %101 = vector.extract_strided_slice %83 {offsets = [0, 2], sizes = [128, 1], strides = [1, 1]} : vector<128x3xf32> to vector<128x1xf32>
    %102 = vector.extract_strided_slice %85 {offsets = [0, 4], sizes = [128, 1], strides = [1, 1]} : vector<128x6xf32> to vector<128x1xf32>
    %103 = arith.mulf %101, %102 : vector<128x1xf32>
    %104 = arith.addf %100, %103 : vector<128x1xf32>
    %105 = arith.mulf %104, %104 : vector<128x1xf32>
    %106 = arith.addf %97, %105 : vector<128x1xf32>
    %107 = vector.extract_strided_slice %83 {offsets = [0, 2], sizes = [128, 1], strides = [1, 1]} : vector<128x3xf32> to vector<128x1xf32>
    %108 = vector.extract_strided_slice %85 {offsets = [0, 5], sizes = [128, 1], strides = [1, 1]} : vector<128x6xf32> to vector<128x1xf32>
    %109 = arith.mulf %107, %108 : vector<128x1xf32>
    %110 = arith.mulf %109, %109 : vector<128x1xf32>
    %111 = arith.addf %106, %110 : vector<128x1xf32>
    %cst_38 = arith.constant 0.000000e+00 : f32
    %112 = vector.broadcast %cst_38 : f32 to vector<128x1xf32>
    %113 = arith.subf %112, %111 : vector<128x1xf32>
    %114 = math.exp %113 : vector<128x1xf32>
    %c0_39 = arith.constant 0 : index
    %c0_40 = arith.constant 0 : index
    %115 = vector.load %arg5[%c0_39, %c0_40] : memref<128x64xf32, #tpu.memory_space<vmem>>, vector<128x64xf32>
    %cst_41 = arith.constant dense<0.000000e+00> : vector<128x128xf32>
    %116 = tpu.matmul %115, %0, %cst_41 {dimension_numbers = #tpu.dot_dimension_numbers<[1], [0], [0], [1], [0, 0, 1, 1], [], []>} : vector<128x64xf32>, vector<64x128xf32>, vector<128x128xf32> -> vector<128x128xf32>
    %c0_42 = arith.constant 0 : index
    %c0_43 = arith.constant 0 : index
    %117 = vector.load %arg6[%c0_42, %c0_43] : memref<64x128xf32, #tpu.memory_space<vmem>>, vector<64x128xf32>
    %118 = vector.broadcast %114 : vector<128x1xf32> to vector<128x128xf32>
    %119 = arith.mulf %118, %116 : vector<128x128xf32>
    %cst_44 = arith.constant dense<0.000000e+00> : vector<64x128xf32>
    %120 = tpu.matmul %117, %119, %cst_44 {dimension_numbers = #tpu.dot_dimension_numbers<[1], [0], [0], [1], [0, 0, 1, 1], [], []>} : vector<64x128xf32>, vector<128x128xf32>, vector<64x128xf32> -> vector<64x128xf32>
    %121 = arith.addf %120, %0 : vector<64x128xf32>
    %c0_45 = arith.constant 0 : index
    %c0_46 = arith.constant 0 : index
    %122 = vector.load %arg6[%c0_45, %c0_46] : memref<64x128xf32, #tpu.memory_space<vmem>>, vector<64x128xf32>
    %cst_47 = arith.constant dense<0.000000e+00> : vector<64x1xf32>
    %123 = tpu.matmul %122, %114, %cst_47 {dimension_numbers = #tpu.dot_dimension_numbers<[1], [0], [0], [1], [0, 0, 1, 1], [], []>} : vector<64x128xf32>, vector<128x1xf32>, vector<64x1xf32> -> vector<64x1xf32>
    %cst_48 = arith.constant 1.000000e+00 : f32
    %124 = vector.broadcast %cst_48 : f32 to vector<64x1xf32>
    %125 = arith.addf %123, %124 : vector<64x1xf32>
    %cst_49 = arith.constant 9.99999974E-6 : f32
    %126 = vector.broadcast %cst_49 : f32 to vector<64x1xf32>
    %127 = arith.addf %125, %126 : vector<64x1xf32>
    %128 = vector.broadcast %127 : vector<64x1xf32> to vector<64x128xf32>
    %129 = arith.divf %121, %128 : vector<64x128xf32>
    %130 = tpu.concatenate %0, %129 in 1 : vector<64x128xf32>, vector<64x128xf32> -> vector<64x256xf32>
    %c0_50 = arith.constant 0 : index
    %c0_51 = arith.constant 0 : index
    %131 = vector.load %arg13[%c0_50, %c0_51] : memref<256x128xf32, #tpu.memory_space<vmem>>, vector<256x128xf32>
    %cst_52 = arith.constant dense<0.000000e+00> : vector<64x128xf32>
    %132 = tpu.matmul %130, %131, %cst_52 {dimension_numbers = #tpu.dot_dimension_numbers<[1], [0], [0], [1], [0, 0, 1, 1], [], []>} : vector<64x256xf32>, vector<256x128xf32>, vector<64x128xf32> -> vector<64x128xf32>
    %c0_53 = arith.constant 0 : index
    %c0_54 = arith.constant 0 : index
    %133 = vector.load %arg14[%c0_53, %c0_54] : memref<1x128xf32, #tpu.memory_space<vmem>>, vector<1x128xf32>
    %134 = vector.broadcast %133 : vector<1x128xf32> to vector<64x128xf32>
    %135 = arith.addf %132, %134 : vector<64x128xf32>
    %cst_55 = arith.constant dense<0.000000e+00> : vector<128xf32>
    %136 = vector.multi_reduction <add>, %135, %cst_55 [0] : vector<64x128xf32> to vector<128xf32>
    %137 = vector.shape_cast %136 : vector<128xf32> to vector<1x128xf32>
    %cst_56 = arith.constant 6.400000e+01 : f32
    %138 = vector.broadcast %cst_56 : f32 to vector<1x128xf32>
    %139 = arith.divf %137, %138 : vector<1x128xf32>
    %140 = vector.broadcast %139 : vector<1x128xf32> to vector<64x128xf32>
    %141 = arith.subf %135, %140 : vector<64x128xf32>
    %142 = arith.mulf %141, %141 : vector<64x128xf32>
    %cst_57 = arith.constant dense<0.000000e+00> : vector<128xf32>
    %143 = vector.multi_reduction <add>, %142, %cst_57 [0] : vector<64x128xf32> to vector<128xf32>
    %144 = vector.shape_cast %143 : vector<128xf32> to vector<1x128xf32>
    %cst_58 = arith.constant 6.300000e+01 : f32
    %145 = vector.broadcast %cst_58 : f32 to vector<1x128xf32>
    %146 = arith.divf %144, %145 : vector<1x128xf32>
    %147 = vector.broadcast %139 : vector<1x128xf32> to vector<64x128xf32>
    %148 = arith.subf %135, %147 : vector<64x128xf32>
    %149 = math.sqrt %146 : vector<1x128xf32>
    %cst_59 = arith.constant 9.99999974E-6 : f32
    %150 = vector.broadcast %cst_59 : f32 to vector<1x128xf32>
    %151 = arith.addf %149, %150 : vector<1x128xf32>
    %152 = vector.broadcast %151 : vector<1x128xf32> to vector<64x128xf32>
    %153 = arith.divf %148, %152 : vector<64x128xf32>
    %cst_60 = arith.constant 0.000000e+00 : f32
    %154 = vector.broadcast %cst_60 : f32 to vector<64x128xf32>
    %155 = arith.cmpf ogt, %153, %154 : vector<64x128xf32>
    %cst_61 = arith.constant 0.000000e+00 : f32
    %156 = vector.broadcast %cst_61 : f32 to vector<64x128xf32>
    %157 = arith.minimumf %153, %156 : vector<64x128xf32>
    %158 = math.exp %157 : vector<64x128xf32>
    %cst_62 = arith.constant 1.000000e+00 : f32
    %159 = vector.broadcast %cst_62 : f32 to vector<64x128xf32>
    %160 = arith.subf %158, %159 : vector<64x128xf32>
    %161 = arith.select %155, %153, %160 : vector<64x128xi1>, vector<64x128xf32>
    %c0_63 = arith.constant 0 : index
    %c0_64 = arith.constant 0 : index
    %162 = vector.load %arg15[%c0_63, %c0_64] : memref<64x128xf32, #tpu.memory_space<vmem>>, vector<64x128xf32>
    tpu.vector_store %arg15[%c0_63, %c0_64], %161 {strides = array<i32>} : memref<64x128xf32, #tpu.memory_space<vmem>>, vector<64x128xf32>,
    return
  }
  func.func @transform_0(%arg0: i32) -> (i32, i32) {
    %c0_i32 = arith.constant 0 : i32
    %c0_i32_0 = arith.constant 0 : i32
    %c0_i32_1 = arith.constant 0 : i32
    return %c0_i32, %c0_i32_0 : i32, i32
  }
  func.func @transform_1(%arg0: i32) -> (i32, i32) {
    %c0_i32 = arith.constant 0 : i32
    %c0_i32_0 = arith.constant 0 : i32
    %c0_i32_1 = arith.constant 0 : i32
    return %c0_i32, %c0_i32_0 : i32, i32
  }
  func.func @transform_2(%arg0: i32) -> (i32, i32) {
    %c0_i32 = arith.constant 0 : i32
    %c0_i32_0 = arith.constant 0 : i32
    %c0_i32_1 = arith.constant 0 : i32
    return %c0_i32, %c0_i32_0 : i32, i32
  }
  func.func @transform_3(%arg0: i32) -> (i32, i32) {
    %c0_i32 = arith.constant 0 : i32
    %c0_i32_0 = arith.constant 0 : i32
    %c0_i32_1 = arith.constant 0 : i32
    return %c0_i32, %c0_i32_0 : i32, i32
  }
  func.func @transform_4(%arg0: i32) -> (i32, i32) {
    %c0_i32 = arith.constant 0 : i32
    %c0_i32_0 = arith.constant 0 : i32
    %c0_i32_1 = arith.constant 0 : i32
    return %c0_i32, %c0_i32_0 : i32, i32
  }
  func.func @transform_5(%arg0: i32) -> (i32, i32) {
    %c0_i32 = arith.constant 0 : i32
    %c0_i32_0 = arith.constant 0 : i32
    %c0_i32_1 = arith.constant 0 : i32
    return %c0_i32, %c0_i32_0 : i32, i32
  }
  func.func @transform_6(%arg0: i32) -> (i32, i32) {
    %c0_i32 = arith.constant 0 : i32
    %c0_i32_0 = arith.constant 0 : i32
    %c0_i32_1 = arith.constant 0 : i32
    return %c0_i32, %c0_i32_0 : i32, i32
  }
  func.func @transform_7(%arg0: i32) -> (i32, i32) {
    %c0_i32 = arith.constant 0 : i32
    %c0_i32_0 = arith.constant 0 : i32
    %c0_i32_1 = arith.constant 0 : i32
    return %c0_i32, %c0_i32_0 : i32, i32
  }
  func.func @transform_8(%arg0: i32) -> (i32, i32) {
    %c0_i32 = arith.constant 0 : i32
    %c0_i32_0 = arith.constant 0 : i32
    %c0_i32_1 = arith.constant 0 : i32
    return %c0_i32, %c0_i32_0 : i32, i32
  }
  func.func @transform_9(%arg0: i32) -> (i32, i32) {
    %c0_i32 = arith.constant 0 : i32
    %c0_i32_0 = arith.constant 0 : i32
    %c0_i32_1 = arith.constant 0 : i32
    return %c0_i32, %c0_i32_0 : i32, i32
  }
  func.func @transform_10(%arg0: i32) -> (i32, i32) {
    %c0_i32 = arith.constant 0 : i32
    %c0_i32_0 = arith.constant 0 : i32
    %c0_i32_1 = arith.constant 0 : i32
    return %c0_i32, %c0_i32_0 : i32, i32
  }
  func.func @transform_11(%arg0: i32) -> (i32, i32) {
    %c0_i32 = arith.constant 0 : i32
    %c0_i32_0 = arith.constant 0 : i32
    %c0_i32_1 = arith.constant 0 : i32
    return %c0_i32, %c0_i32_0 : i32, i32
  }
  func.func @transform_12(%arg0: i32) -> (i32, i32) {
    %c0_i32 = arith.constant 0 : i32
    %c0_i32_0 = arith.constant 0 : i32
    %c0_i32_1 = arith.constant 0 : i32
    return %c0_i32, %c0_i32_0 : i32, i32
  }
  func.func @transform_13(%arg0: i32) -> (i32, i32) {
    %c0_i32 = arith.constant 0 : i32
    %c0_i32_0 = arith.constant 0 : i32
    %c0_i32_1 = arith.constant 0 : i32
    return %c0_i32, %c0_i32_0 : i32, i32
  }
  func.func @transform_14(%arg0: i32) -> (i32, i32) {
    %c0_i32 = arith.constant 0 : i32
    %c0_i32_0 = arith.constant 0 : i32
    %c0_i32_1 = arith.constant 0 : i32
    return %c0_i32, %c0_i32_0 : i32, i32
  }
  func.func @transform_15(%arg0: i32) -> (i32, i32) {
    %c0_i32 = arith.constant 0 : i32
    %c0_i32_0 = arith.constant 0 : i32
    %c0_i32_1 = arith.constant 0 : i32
    return %c0_i32, %c0_i32_0 : i32, i32
  }
}

</mosaic_0001>

<bundles_post_ra>
// kernel: tpu_custom_call.1
= control target key start
LH: loop header
LB: loop body
LE: loop exit
PB: predicated region body
PF: predicated region fallthrough
CT: control target
= control target key end

     0   :  { %21 = vsyncpa [#allocation3], 0  ;;  %vm72_vm0 = vcmask 64512   ;;  %s4750_s0 = inlined_call_operand.vmem [shape: f32[64,128], index: 0, kind: input, shape index: {}]   ;;  %s4751_s1 = inlined_call_operand.vmem [shape: f32[64,8], index: 1, kind: input, shape index: {}]   ;;  %s4752_s2 = inlined_call_operand.vmem [shape: f32[128,8], index: 2, kind: input, shape index: {}]   ;;  %s4753_s3 = inlined_call_operand.vmem [shape: f32[128,64], index: 3, kind: input, shape index: {}]   ;;  %s4754_s4 = inlined_call_operand.vmem [shape: f32[128,64], index: 4, kind: input, shape index: {}]   ;;  %s4755_s5 = inlined_call_operand.vmem [shape: f32[64,128], index: 5, kind: input, shape index: {}]   ;;  %s4756_s6 = inlined_call_operand.vmem [shape: f32[8,32], index: 6, kind: input, shape index: {}]   ;;  %s4757_s7 = inlined_call_operand.vmem [shape: f32[1,32], index: 7, kind: input, shape index: {}]   ;;  %s4758_s8 = inlined_call_operand.vmem [shape: f32[32,6], index: 8, kind: input, shape index: {}]   ;;  %s4759_s9 = inlined_call_operand.vmem [shape: f32[1,6], index: 9, kind: input, shape index: {}]   ;;  %s4760_s10 = inlined_call_operand.vmem [shape: f32[8,3], index: 10, kind: input, shape index: {}]   ;;  %s4761_s11 = inlined_call_operand.vmem [shape: f32[1,3], index: 11, kind: input, shape index: {}]   ;;  %s4762_s12 = inlined_call_operand.vmem [shape: f32[256,128], index: 12, kind: input, shape index: {}]   ;;  %s4763_s13 = inlined_call_operand.vmem [shape: f32[1,128], index: 13, kind: input, shape index: {}]   ;;  %s4764_s14 = inlined_call_operand.hbm [shape: f32[64,128], index: 14, kind: output, shape index: {0}]   ;;  %s4765_s15 = inlined_call_operand.hbm [shape: f32[64,128], index: 15, kind: output, shape index: {1}]  }
   0x1   :  { %v67_v0 = vld [vmem:[%s4756_s6] sm:$0xff] }
   0x2   :  { %v59_v1 = vld [vmem:[%s4751_s1] sm:$0xff]  ;;  %112 = vmatpush.msra.mxu0 %v67_v0 }
   0x3   :  { %2575 = vmatmul.msk.f32.vlgmr.msra.gmra.mxu0 %vm72_vm0, %v59_v1 }
   0x4   :  { %22 = vsyncpa [#allocation5], 0  ;;  %v60_v2 = vld [vmem:[%s4751_s1 + $0x8] sm:$0xff]  ;;  %v61_v3 = vld [vmem:[%s4751_s1 + $0x10] sm:$0xff]  ;;  %vm194_vm1 = vcmask 261120   ;;  %vm276_vm10 = vcmask 7168  }
   0x5   :  { %v62_v4 = vld [vmem:[%s4751_s1 + $0x18] sm:$0xff]  ;;  %v63_v5 = vld [vmem:[%s4751_s1 + $0x20] sm:$0xff]  ;;  %v64_v6 = vld [vmem:[%s4751_s1 + $0x28] sm:$0xff]  ;;  %s2844_s28 = smov 126   ;;  %s2845_s29 = smov 125   ;;  %vm955_vm11 = vcmask 523264  }
   0x6   :  { %v65_v7 = vld [vmem:[%s4751_s1 + $0x30] sm:$0xff]  ;;  %v66_v8 = vld [vmem:[%s4751_s1 + $0x38] sm:$0xff]  ;;  %v187_v11 = vld [vmem:[%s4758_s8 + $0x8] sm:$0xff]  ;;  %s2846_s30 = smov 127   ;;  %s2847_s6 = smov 2   ;;  %vm357_vm12 = vcmask 15368  }
   0x7   :  { %v189_v9 = vld [vmem:[%s4758_s8 + $0x18] sm:$0xff]  ;;  %v188_v10 = vld [vmem:[%s4758_s8 + $0x10] sm:$0xff]  ;;  %v186_v12 = vld [vmem:[%s4758_s8] sm:$0xff]  ;;  %s2848_s8 = smov 3   ;;  %s2849_s17 = smov 1   ;;  %vm430_vm13 = vcmask 23568  }
   0x8   :  { %231 = vmatpush.msra.mxu1 %v189_v9  ;;  %v2990_v13 = vld [vmem:[%s4757_s7] ss:$0 sm:$0xff]  ;;  %vm463_vm14 = vcmask 31768   ;;  %vm544_vm15 = vcmask 39968   ;;  %s2858_s19 = smov 8   ;;  %s2859_s20 = smov [#allocation2]  }
   0x9   :  { %s2543_s21 = sshll.u32 %s2859_s20, 4  ;;  %s2545_s24 = sshll.u32 %s4764_s14, 4  ;;  %s2544_s21 = int_to_ptr.vmem [resolvable:$true] %s2543_s21  ;;  %s2546_s24 = int_to_ptr.hbm [resolvable:$true] %s2545_s24 }
   0xa   :  { %232 = vmatpush.msra.mxu1 %v188_v10 }
   0xb   :  { %2576 = vmatmul.msk.f32.gmra.mxu0 %vm72_vm0, %v60_v2 }
   0xc   :  { %233 = vmatpush.msra.mxu1 %v187_v11 }
   0xe   :  { %234 = vmatpush.msra.mxu1 %v186_v12 }
  0x13   :  { %2577 = vmatmul.msk.f32.gmra.mxu0 %vm72_vm0, %v61_v3 }
  0x1b   :  { %2578 = vmatmul.msk.f32.gmra.mxu0 %vm72_vm0, %v62_v4 }
  0x23   :  { %2579 = vmatmul.msk.f32.gmra.mxu0 %vm72_vm0, %v63_v5 }
  0x2b   :  { %2580 = vmatmul.msk.f32.gmra.mxu0 %vm72_vm0, %v64_v6  ;;  %v2843_v6 = vmov 0.0  }
  0x2c   :  { %260 = vst [vmem:[#allocation4] sm:$0xff] %v2843_v6 }
  0x2d   :  { %261 = vst [vmem:[#allocation4 + $0x8] sm:$0xff] %v2843_v6 }
  0x2e   :  { %262 = vst [vmem:[#allocation4 + $0x10] sm:$0xff] %v2843_v6 }
  0x2f   :  { %263 = vst [vmem:[#allocation4 + $0x18] sm:$0xff] %v2843_v6 }
  0x30   :  { %264 = vst [vmem:[#allocation4 + $0x20] sm:$0xff] %v2843_v6 }
  0x31   :  { %265 = vst [vmem:[#allocation4 + $0x28] sm:$0xff] %v2843_v6 }
  0x32   :  { %266 = vst [vmem:[#allocation4 + $0x30] sm:$0xff] %v2843_v6 }
  0x33   :  { %2581 = vmatmul.msk.f32.gmra.mxu0 %vm72_vm0, %v65_v7  ;;  %267 = vst [vmem:[#allocation4 + $0x38] sm:$0xff] %v2843_v6  ;;  %v3011_v7 = vld [vmem:[%s4759_s9] ss:$0 sm:$0xff]  ;;  %v816_v6 = vld [vmem:[%s4752_s2 + $0x58] sm:$0xff]  ;;  %s2852_s9 = smov 6  }
  0x3b   :  { %2582 = vmatmul.msk.f32.gmra.mxu0 %vm72_vm0, %v66_v8 }
  0x80   :  { %v114_v14 = vpop.f32.mrf.mxu0 }
  0x81   :  { %v115_v15 = vadd.f32 %v2990_v13, %v114_v14 }
  0x83   :  { %v146_v16 = vmin.f32 %v115_v15, 0.0  ;;  %vm138_vm2 = vcmp.gt.f32.partialorder %v115_v15, 0.0 }
  0x85   :  { %v154_v17 = vmul.f32 1.442695, %v146_v16 }
  0x87   :  { %2695 = vpow2.f32 %v154_v17 }
  0x88   :  { %v117_v18 = vpop.f32.mrf.mxu0 }
  0x89   :  { %v118_v19 = vadd.f32 %v2990_v13, %v117_v18 }
  0x8b   :  { %v147_v20 = vmin.f32 %v118_v19, 0.0  ;;  %vm139_vm3 = vcmp.gt.f32.partialorder %v118_v19, 0.0 }
  0x8d   :  { %v2696_v21 = vpop.eup %2695  ;;  %v156_v22 = vmul.f32 1.442695, %v147_v20 }
  0x8e   :  { %v2583_v23 = vadd.f32 -1.0, %v2696_v21 }
  0x8f   :  { %2697 = vpow2.f32 %v156_v22 }
  0x90   :  { %v120_v24 = vpop.f32.mrf.mxu0  ;;  %v178_v25 = vsel %vm138_vm2, %v115_v15, %v2583_v23  ;;  %v821_v23 = vld [vmem:[%s4760_s10] sm:$0xff]  ;;  %s2558_s10 = sshll.u32 %s4765_s15, 4  ;;  %s2857_s15 = smov 128   ;;  %s2559_s10 = int_to_ptr.hbm [resolvable:$true] %s2558_s10 }
  0x91   :  { %v121_v26 = vadd.f32 %v2990_v13, %v120_v24  ;;  %2591 = vmatmul.msk.f32.vlgmr.msra.gmra.mxu1 %vm194_vm1, %v178_v25  ;;  %889 = vmatpush.msra.mxu2 %v821_v23  ;;  %v805_v24 = vld [vmem:[%s4752_s2] sm:$0xff] }
  0x92   :  { %2599 = vmatmul.msk.f32.vlgmr.msra.gmra.mxu2 %vm72_vm0, %v805_v24 }
  0x93   :  { %v148_v27 = vmin.f32 %v121_v26, 0.0  ;;  %vm140_vm4 = vcmp.gt.f32.partialorder %v121_v26, 0.0 }
  0x95   :  { %v2698_v28 = vpop.eup %2697  ;;  %v158_v29 = vmul.f32 1.442695, %v148_v27 }
  0x96   :  { %v2584_v30 = vadd.f32 -1.0, %v2698_v28  ;;  %v806_v28 = vld [vmem:[%s4752_s2 + $0x8] sm:$0xff] }
  0x97   :  { %2699 = vpow2.f32 %v158_v29 }
  0x98   :  { %v123_v31 = vpop.f32.mrf.mxu0  ;;  %v179_v32 = vsel %vm139_vm3, %v118_v19, %v2584_v30 }
  0x99   :  { %v124_v33 = vadd.f32 %v2990_v13, %v123_v31  ;;  %2592 = vmatmul.msk.f32.gmra.mxu1 %vm194_vm1, %v179_v32  ;;  %v807_v32 = vld [vmem:[%s4752_s2 + $0x10] sm:$0xff] }
  0x9a   :  { %2600 = vmatmul.msk.f32.gmra.mxu2 %vm72_vm0, %v806_v28 }
  0x9b   :  { %v149_v34 = vmin.f32 %v124_v33, 0.0  ;;  %vm141_vm5 = vcmp.gt.f32.partialorder %v124_v33, 0.0 }
  0x9d   :  { %v2700_v35 = vpop.eup %2699  ;;  %v160_v36 = vmul.f32 1.442695, %v149_v34 }
  0x9e   :  { %v2585_v37 = vadd.f32 -1.0, %v2700_v35 }
  0x9f   :  { %2701 = vpow2.f32 %v160_v36  ;;  %v808_v36 = vld [vmem:[%s4752_s2 + $0x18] sm:$0xff] }
  0xa0   :  { %v126_v38 = vpop.f32.mrf.mxu0  ;;  %v180_v39 = vsel %vm140_vm4, %v121_v26, %v2585_v37  ;;  %v809_v37 = vld [vmem:[%s4752_s2 + $0x20] sm:$0xff] }
  0xa1   :  { %v127_v40 = vadd.f32 %v2990_v13, %v126_v38  ;;  %2593 = vmatmul.msk.f32.gmra.mxu1 %vm194_vm1, %v180_v39  ;;  %v939_v38 = vld [vmem:[%s4753_s3] sm:$0xff]  ;;  %v810_v39 = vld [vmem:[%s4752_s2 + $0x28] sm:$0xff] }
  0xa2   :  { %2601 = vmatmul.msk.f32.gmra.mxu2 %vm72_vm0, %v807_v32  ;;  %v818_v32 = vld [vmem:[%s4752_s2 + $0x68] sm:$0xff] }
  0xa3   :  { %v150_v41 = vmin.f32 %v127_v40, 0.0  ;;  %vm142_vm6 = vcmp.gt.f32.partialorder %v127_v40, 0.0 }
  0xa5   :  { %v2702_v42 = vpop.eup %2701  ;;  %v162_v43 = vmul.f32 1.442695, %v150_v41  ;;  %v941_v41 = vld [vmem:[%s4753_s3 + $0x10] sm:$0xff] }
  0xa6   :  { %v2586_v44 = vadd.f32 -1.0, %v2702_v42  ;;  %v811_v42 = vld [vmem:[%s4752_s2 + $0x30] sm:$0xff] }
  0xa7   :  { %2703 = vpow2.f32 %v162_v43 }
  0xa8   :  { %v129_v45 = vpop.f32.mrf.mxu0  ;;  %v181_v46 = vsel %vm141_vm5, %v124_v33, %v2586_v44 }
  0xa9   :  { %v130_v47 = vadd.f32 %v2990_v13, %v129_v45  ;;  %2594 = vmatmul.msk.f32.gmra.mxu1 %vm194_vm1, %v181_v46  ;;  %v942_v45 = vld [vmem:[%s4753_s3 + $0x18] sm:$0xff] }
  0xaa   :  { %2602 = vmatmul.msk.f32.gmra.mxu2 %vm72_vm0, %v808_v36  ;;  %v812_v46 = vld [vmem:[%s4752_s2 + $0x38] sm:$0xff]  ;;  %v949_v36 = vld [vmem:[%s4753_s3 + $0x50] sm:$0xff] }
  0xab   :  { %v151_v48 = vmin.f32 %v130_v47, 0.0  ;;  %vm143_vm7 = vcmp.gt.f32.partialorder %v130_v47, 0.0 }
  0xad   :  { %v2704_v49 = vpop.eup %2703  ;;  %v164_v50 = vmul.f32 1.442695, %v151_v48 }
  0xae   :  { %v2587_v51 = vadd.f32 -1.0, %v2704_v49  ;;  %v943_v49 = vld [vmem:[%s4753_s3 + $0x20] sm:$0xff] }
  0xaf   :  { %2705 = vpow2.f32 %v164_v50  ;;  %v813_v50 = vld [vmem:[%s4752_s2 + $0x40] sm:$0xff] }
  0xb0   :  { %v132_v52 = vpop.f32.mrf.mxu0  ;;  %v182_v53 = vsel %vm142_vm6, %v127_v40, %v2587_v51  ;;  %v940_v40 = vld [vmem:[%s4753_s3 + $0x8] sm:$0xff] }
  0xb1   :  { %v133_v54 = vadd.f32 %v2990_v13, %v132_v52  ;;  %2595 = vmatmul.msk.f32.gmra.mxu1 %vm194_vm1, %v182_v53  ;;  %v944_v53 = vld [vmem:[%s4753_s3 + $0x28] sm:$0xff] }
  0xb2   :  { %2603 = vmatmul.msk.f32.gmra.mxu2 %vm72_vm0, %v809_v37 }
  0xb3   :  { %v152_v55 = vmin.f32 %v133_v54, 0.0  ;;  %vm144_vm8 = vcmp.gt.f32.partialorder %v133_v54, 0.0 }
  0xb5   :  { %v2706_v56 = vpop.eup %2705  ;;  %v166_v57 = vmul.f32 1.442695, %v152_v55 }
  0xb6   :  { %v2588_v58 = vadd.f32 -1.0, %v2706_v56 }
  0xb7   :  { %2707 = vpow2.f32 %v166_v57 }
  0xb8   :  { %v135_v59 = vpop.f32.mrf.mxu0  ;;  %v183_v60 = vsel %vm143_vm7, %v130_v47, %v2588_v58 }
  0xb9   :  { %v136_v61 = vadd.f32 %v2990_v13, %v135_v59  ;;  %2596 = vmatmul.msk.f32.gmra.mxu1 %vm194_vm1, %v183_v60  ;;  %v945_v59 = vld [vmem:[%s4753_s3 + $0x30] sm:$0xff] }
  0xba   :  { %2604 = vmatmul.msk.f32.gmra.mxu2 %vm72_vm0, %v810_v39 }
  0xbb   :  { %v153_v62 = vmin.f32 %v136_v61, 0.0  ;;  %vm145_vm9 = vcmp.gt.f32.partialorder %v136_v61, 0.0 }
  0xbd   :  { %v2708_v63 = vpop.eup %2707  ;;  %v168_v0 = vmul.f32 1.442695, %v153_v62 }
  0xbe   :  { %v2589_v1 = vadd.f32 -1.0, %v2708_v63 }
  0xbf   :  { %2709 = vpow2.f32 %v168_v0  ;;  %v815_v0 = vld [vmem:[%s4752_s2 + $0x50] sm:$0xff] }
  0xc0   :  { %v184_v2 = vsel %vm144_vm8, %v133_v54, %v2589_v1  ;;  %v814_v54 = vld [vmem:[%s4752_s2 + $0x48] sm:$0xff]  ;;  %v946_v1 = vld [vmem:[%s4753_s3 + $0x38] sm:$0xff] }
  0xc1   :  { %2597 = vmatmul.msk.f32.gmra.mxu1 %vm194_vm1, %v184_v2 }
  0xc2   :  { %2605 = vmatmul.msk.f32.gmra.mxu2 %vm72_vm0, %v811_v42  ;;  %v950_v42 = vld [vmem:[%s4753_s3 + $0x58] sm:$0xff] }
  0xc5   :  { %v2710_v3 = vpop.eup %2709 }
  0xc6   :  { %v2590_v4 = vadd.f32 -1.0, %v2710_v3 }
  0xc8   :  { %v185_v5 = vsel %vm145_vm9, %v136_v61, %v2590_v4 }
  0xc9   :  { %2598 = vmatmul.msk.f32.gmra.mxu1 %vm194_vm1, %v185_v5 }
  0xca   :  { %2606 = vmatmul.msk.f32.gmra.mxu2 %vm72_vm0, %v812_v46 }
  0xd2   :  { %2607 = vmatmul.msk.f32.gmra.mxu2 %vm72_vm0, %v813_v50 }
  0xda   :  { %2608 = vmatmul.msk.f32.gmra.mxu2 %vm72_vm0, %v814_v54 }
  0xe2   :  { %2609 = vmatmul.msk.f32.gmra.mxu2 %vm72_vm0, %v815_v0 }
  0xea   :  { %2610 = vmatmul.msk.f32.gmra.mxu2 %vm72_vm0, %v816_v6 }
 0x10e   :  { %v236_v8 = vpop.f32.mrf.mxu1 }
 0x10f   :  { %v3014_v9 = vadd.f32 %v3011_v7, %v236_v8 }
 0x111   :  { %553 = vrot.lane.b32.xlu2 %v3014_v9, %s2844_s28  ;;  %366 = vrot.lane.b32.xlu1 %v3014_v9, %s2845_s29  ;;  %v3022_v10 = vmul.f32 %v3014_v9, %v3014_v9 }
 0x112   :  { %293 = vrot.lane.b32.xlu0 %v3014_v9, %s2846_s30 }
 0x113   :  { %4804 = vst [vmem:[#allocation8_spill] sm:$0xff] %v3022_v10 }
 0x114   :  { %277 = vst.msk [vmem:[#allocation4] sm:$0xff] %vm276_vm10, %v3022_v10 }
 0x116   :  { %v239_v11 = vpop.f32.mrf.mxu1 }
 0x117   :  { %v3029_v12 = vadd.f32 %v3011_v7, %v239_v11 }
 0x119   :  { %368 = vrot.lane.b32.xlu2 %v3029_v12, %s2845_s29  ;;  %480 = vrot.lane.b32.xlu1 %v3022_v10, %s2846_s30  ;;  %v3037_v13 = vmul.f32 %v3029_v12, %v3029_v12 }
 0x11a   :  { %295 = vrot.lane.b32.xlu0 %v3029_v12, %s2846_s30 }
 0x11b   :  { %4805 = vst [vmem:[#allocation9_spill] sm:$0xff] %v3037_v13 }
 0x11c   :  { %278 = vst.msk [vmem:[#allocation4 + $0x8] sm:$0xff] %vm276_vm10, %v3037_v13 }
 0x11e   :  { %v242_v14 = vpop.f32.mrf.mxu1 }
 0x11f   :  { %v3044_v15 = vadd.f32 %v3011_v7, %v242_v14 }
 0x121   :  { %482 = vrot.lane.b32.xlu2 %v3037_v13, %s2846_s30  ;;  %297 = vrot.lane.b32.xlu1 %v3044_v15, %s2846_s30  ;;  %v3052_v16 = vmul.f32 %v3044_v15, %v3044_v15 }
 0x122   :  { %555 = vrot.lane.b32.xlu0 %v3029_v12, %s2844_s28 }
 0x123   :  { %4806 = vst [vmem:[#allocation10_spill] sm:$0xff] %v3052_v16 }
 0x124   :  { %279 = vst.msk [vmem:[#allocation4 + $0x10] sm:$0xff] %vm276_vm10, %v3052_v16 }
 0x126   :  { %v245_v17 = vpop.f32.mrf.mxu1 }
 0x127   :  { %v3059_v18 = vadd.f32 %v3011_v7, %v245_v17 }
 0x129   :  { %559 = vrot.lane.b32.xlu2 %v3059_v18, %s2844_s28  ;;  %557 = vrot.lane.b32.xlu1 %v3044_v15, %s2844_s28  ;;  %v3067_v19 = vmul.f32 %v3059_v18, %v3059_v18 }
 0x12a   :  { %370 = vrot.lane.b32.xlu0 %v3044_v15, %s2845_s29 }
 0x12b   :  { %4807 = vst [vmem:[#allocation11_spill] sm:$0xff] %v3067_v19 }
 0x12c   :  { %280 = vst.msk [vmem:[#allocation4 + $0x18] sm:$0xff] %vm276_vm10, %v3067_v19 }
 0x12e   :  { %v248_v20 = vpop.f32.mrf.mxu1 }
 0x12f   :  { %v3074_v21 = vadd.f32 %v3011_v7, %v248_v20  ;;  %v948_v20 = vld [vmem:[%s4753_s3 + $0x48] sm:$0xff] }
 0x131   :  { %301 = vrot.lane.b32.xlu2 %v3074_v21, %s2846_s30  ;;  %299 = vrot.lane.b32.xlu1 %v3059_v18, %s2846_s30  ;;  %v3082_v22 = vmul.f32 %v3074_v21, %v3074_v21 }
 0x132   :  { %484 = vrot.lane.b32.xlu0 %v3052_v16, %s2846_s30 }
 0x133   :  { %4808 = vst [vmem:[#allocation12_spill] sm:$0xff] %v3082_v22 }
 0x134   :  { %281 = vst.msk [vmem:[#allocation4 + $0x20] sm:$0xff] %vm276_vm10, %v3082_v22 }
 0x136   :  { %v251_v25 = vpop.f32.mrf.mxu1 }
 0x137   :  { %v3096_v26 = vadd.f32 %v3011_v7, %v251_v25 }
 0x139   :  { %4809 = vst [vmem:[#allocation13_spill] sm:$0xff] %v3096_v26  ;;  %374 = vrot.lane.b32.xlu2 %v3074_v21, %s2845_s29  ;;  %372 = vrot.lane.b32.xlu1 %v3059_v18, %s2845_s29  ;;  %v3104_v27 = vmul.f32 %v3096_v26, %v3096_v26 }
 0x13a   :  { %561 = vrot.lane.b32.xlu0 %v3074_v21, %s2844_s28 }
 0x13b   :  { %4810 = vst [vmem:[#allocation14_spill] sm:$0xff] %v3104_v27 }
 0x13c   :  { %282 = vst.msk [vmem:[#allocation4 + $0x28] sm:$0xff] %vm276_vm10, %v3104_v27 }
 0x13e   :  { %v254_v29 = vpop.f32.mrf.mxu1 }
 0x13f   :  { %v3115_v30 = vadd.f32 %v3011_v7, %v254_v29 }
 0x141   :  { %4811 = vst [vmem:[#allocation15_spill] sm:$0xff] %v3115_v30  ;;  %488 = vrot.lane.b32.xlu2 %v3082_v22, %s2846_s30  ;;  %486 = vrot.lane.b32.xlu1 %v3067_v19, %s2846_s30  ;;  %v3123_v31 = vmul.f32 %v3115_v30, %v3115_v30 }
 0x142   :  { %376 = vrot.lane.b32.xlu0 %v3096_v26, %s2845_s29 }
 0x143   :  { %4812 = vst [vmem:[#allocation16_spill] sm:$0xff] %v3123_v31 }
 0x144   :  { %283 = vst.msk [vmem:[#allocation4 + $0x30] sm:$0xff] %vm276_vm10, %v3123_v31 }
 0x146   :  { %v257_v33 = vpop.f32.mrf.mxu1 }
 0x147   :  { %v3134_v34 = vadd.f32 %v3011_v7, %v257_v33 }
 0x149   :  { %4813 = vst [vmem:[#allocation17_spill] sm:$0xff] %v3134_v34  ;;  %1012 = vmatpush.msra.mxu3 %v3134_v34  ;;  %303 = vrot.lane.b32.xlu2 %v3096_v26, %s2846_s30  ;;  %v3141_v35 = vmul.f32 %v3134_v34, %v3134_v34 }
 0x14a   :  { %490 = vrot.lane.b32.xlu0 %v3104_v27, %s2846_s30  ;;  %563 = vrot.lane.b32.xlu1 %v3096_v26, %s2844_s28 }
 0x14b   :  { %4814 = vst [vmem:[#allocation18_spill] sm:$0xff] %v3141_v35  ;;  %1013 = vmatpush.msra.mxu3 %v3115_v30 }
 0x14c   :  { %284 = vst.msk [vmem:[#allocation4 + $0x38] sm:$0xff] %vm276_vm10, %v3141_v35 }
 0x14d   :  { %1014 = vmatpush.msra.mxu3 %v3096_v26 }
 0x14f   :  { %1015 = vmatpush.msra.mxu3 %v3074_v21 }
 0x151   :  { %1016 = vmatpush.msra.mxu3 %v3059_v18  ;;  %565 = vrot.lane.b32.xlu2 %v3115_v30, %s2844_s28 }
 0x152   :  { %305 = vrot.lane.b32.xlu0 %v3115_v30, %s2846_s30  ;;  %378 = vrot.lane.b32.xlu1 %v3115_v30, %s2845_s29 }
 0x153   :  { %1017 = vmatpush.msra.mxu3 %v3044_v15 }
 0x155   :  { %1018 = vmatpush.msra.mxu3 %v3029_v12 }
 0x157   :  { %1019 = vmatpush.msra.mxu3 %v3014_v9 }
 0x158   :  { %2615 = vmatmul.msk.f32.vlgmr.msra.gmra.mxu3 %vm955_vm11, %v939_v38 }
 0x159   :  { %380 = vrot.lane.b32.xlu2 %v3134_v34, %s2845_s29 }
 0x15a   :  { %567 = vrot.lane.b32.xlu0 %v3134_v34, %s2844_s28  ;;  %492 = vrot.lane.b32.xlu1 %v3123_v31, %s2846_s30 }
 0x160   :  { %2616 = vmatmul.msk.f32.gmra.mxu3 %vm955_vm11, %v940_v40  ;;  %v819_v40 = vld [vmem:[%s4752_s2 + $0x70] sm:$0xff] }
 0x161   :  { %494 = vrot.lane.b32.xlu2 %v3141_v35, %s2846_s30 }
 0x162   :  { %307 = vrot.lane.b32.xlu1 %v3134_v34, %s2846_s30 }
 0x168   :  { %2617 = vmatmul.msk.f32.gmra.mxu3 %vm955_vm11, %v941_v41 }
 0x16b   :  { %v554_v43 = vpop.permute.xlu2 %553 }
 0x16c   :  { %v3201_v44 = vmul.f32 %v554_v43, %v3014_v9 }
 0x16e   :  { %4815 = vst [vmem:[#allocation19_spill] sm:$0xff] %v3201_v44  ;;  %593 = vrot.lane.b32.xlu1 %v3201_v44, %s2846_s30 }
 0x170   :  { %2618 = vmatmul.msk.f32.gmra.mxu3 %vm955_vm11, %v942_v45 }
 0x173   :  { %v369_v47 = vpop.permute.xlu2 %368 }
 0x174   :  { %v3214_v48 = vmul.f32 %v369_v47, %v3029_v12 }
 0x176   :  { %4816 = vst [vmem:[#allocation20_spill] sm:$0xff] %v3214_v48  ;;  %408 = vrot.lane.b32.xlu1 %v3214_v48, %s2847_s6 }
 0x178   :  { %2619 = vmatmul.msk.f32.gmra.mxu3 %vm955_vm11, %v943_v49  ;;  %v951_v49 = vld [vmem:[%s4753_s3 + $0x60] sm:$0xff] }
 0x17b   :  { %v483_v51 = vpop.permute.xlu2 %482 }
 0x17c   :  { %v3227_v52 = vadd.f32 %v483_v51, %v3037_v13 }
 0x17e   :  { %4817 = vst [vmem:[#allocation21_spill] sm:$0xff] %v3227_v52  ;;  %522 = vrot.lane.b32.xlu1 %v3227_v52, %s2848_s8 }
 0x180   :  { %2620 = vmatmul.msk.f32.gmra.mxu3 %vm955_vm11, %v944_v53 }
 0x183   :  { %v367_v55 = vpop.permute.xlu1 %366  ;;  %v560_v60 = vpop.permute.xlu2 %559 }
 0x184   :  { %v3240_v56 = vmul.f32 %v367_v55, %v3014_v9  ;;  %v294_v57 = vpop.permute.xlu0 %293  ;;  %v3297_v25 = vmul.f32 %v560_v60, %v3059_v18 }
 0x185   :  { %v317_v58 = vmul.f32 %v294_v57, %v3014_v9  ;;  %v947_v9 = vld [vmem:[%s4753_s3 + $0x40] sm:$0xff]  ;;  %v952_v57 = vld [vmem:[%s4753_s3 + $0x68] sm:$0xff] }
 0x186   :  { %4818 = vst [vmem:[#allocation22_spill] sm:$0xff] %v3240_v56  ;;  %406 = vrot.lane.b32.xlu0 %v3240_v56, %s2847_s6 }
 0x187   :  { %333 = vrot.lane.b32.xlu2 %v317_v58, %s2849_s17  ;;  %4822 = vst [vmem:[#allocation26_spill] sm:$0xff] %v3297_v25 }
 0x188   :  { %2621 = vmatmul.msk.f32.gmra.mxu3 %vm955_vm11, %v945_v59  ;;  %v3370_v59 = vpop.f32.mrf.mxu2 }
 0x18b   :  { %v481_v61 = vpop.permute.xlu1 %480  ;;  %v302_v7 = vpop.permute.xlu2 %301 }
 0x18c   :  { %v296_v62 = vpop.permute.xlu0 %295  ;;  %v3251_v63 = vadd.f32 %v481_v61, %v3022_v10  ;;  %v321_v50 = vmul.f32 %v302_v7, %v3074_v21  ;;  %v953_v61 = vld [vmem:[%s4753_s3 + $0x70] sm:$0xff] }
 0x18d   :  { %v318_v3 = vmul.f32 %v296_v62, %v3029_v12 }
 0x18e   :  { %4819 = vst [vmem:[#allocation23_spill] sm:$0xff] %v3251_v63  ;;  %520 = vrot.lane.b32.xlu0 %v3251_v63, %s2848_s8 }
 0x18f   :  { %439 = vrot.lane.b32.xlu2 %v317_v58, %s2848_s8 }
 0x190   :  { %2622 = vmatmul.msk.f32.gmra.mxu3 %vm955_vm11, %v946_v1  ;;  %v894_v1 = vpop.f32.mrf.mxu2 }
 0x193   :  { %v298_v2 = vpop.permute.xlu1 %297  ;;  %v375_v23 = vpop.permute.xlu2 %374 }
 0x194   :  { %v556_v4 = vpop.permute.xlu0 %555  ;;  %v319_v5 = vmul.f32 %v298_v2, %v3044_v15  ;;  %v3320_v38 = vmul.f32 %v375_v23, %v3074_v21 }
 0x195   :  { %v3270_v8 = vmul.f32 %v556_v4, %v3029_v12  ;;  %v817_v12 = vld [vmem:[%s4752_s2 + $0x60] sm:$0xff] }
 0x196   :  { %335 = vrot.lane.b32.xlu0 %v318_v3, %s2849_s17  ;;  %337 = vrot.lane.b32.xlu1 %v319_v5, %s2849_s17  ;;  %4825 = vst [vmem:[#allocation29_spill] sm:$0xff] %v3320_v38 }
 0x197   :  { %4820 = vst [vmem:[#allocation24_spill] sm:$0xff] %v3270_v8  ;;  %595 = vrot.lane.b32.xlu2 %v3270_v8, %s2846_s30  ;;  %2611 = vmatmul.msk.f32.gmra.mxu2 %vm72_vm0, %v817_v12 }
 0x198   :  { %2623 = vmatmul.msk.f32.gmra.mxu3 %vm955_vm11, %v947_v9  ;;  %v897_v9 = vpop.f32.mrf.mxu2 }
 0x19b   :  { %v558_v11 = vpop.permute.xlu1 %557 }
 0x19c   :  { %v371_v14 = vpop.permute.xlu0 %370  ;;  %v3300_v28 = vmul.f32 %v558_v11, %v3044_v15 }
 0x19d   :  { %v3285_v17 = vmul.f32 %v371_v14, %v3044_v15  ;;  %v489_v15 = vpop.permute.xlu2 %488 }
 0x19e   :  { %441 = vrot.lane.b32.xlu0 %v318_v3, %s2848_s8  ;;  %443 = vrot.lane.b32.xlu1 %v319_v5, %s2848_s8  ;;  %4823 = vst [vmem:[#allocation27_spill] sm:$0xff] %v3300_v28 }
 0x19f   :  { %4821 = vst [vmem:[#allocation25_spill] sm:$0xff] %v3285_v17  ;;  %410 = vrot.lane.b32.xlu2 %v3285_v17, %s2847_s6  ;;  %2612 = vmatmul.msk.f32.gmra.mxu2 %vm72_vm0, %v818_v32 }
 0x1a0   :  { %2624 = vmatmul.msk.f32.gmra.mxu3 %vm955_vm11, %v948_v20 }
 0x1a3   :  { %v300_v24 = vpop.permute.xlu1 %299 }
 0x1a4   :  { %v485_v29 = vpop.permute.xlu0 %484  ;;  %v320_v41 = vmul.f32 %v300_v24, %v3059_v18 }
 0x1a5   :  { %v3306_v33 = vadd.f32 %v485_v29, %v3052_v16  ;;  %v304_v43 = vpop.permute.xlu2 %303  ;;  %v900_v29 = vpop.f32.mrf.mxu2 }
 0x1a6   :  { %599 = vrot.lane.b32.xlu1 %v3297_v25, %s2846_s30  ;;  %597 = vrot.lane.b32.xlu0 %v3300_v28, %s2846_s30  ;;  %v322_v51 = vmul.f32 %v304_v43, %v3096_v26 }
 0x1a7   :  { %4824 = vst [vmem:[#allocation28_spill] sm:$0xff] %v3306_v33  ;;  %524 = vrot.lane.b32.xlu2 %v3306_v33, %s2848_s8  ;;  %2613 = vmatmul.msk.f32.gmra.mxu2 %vm72_vm0, %v819_v40 }
 0x1a8   :  { %2625 = vmatmul.msk.f32.gmra.mxu3 %vm955_vm11, %v949_v36  ;;  %v3421_v36 = vld [vmem:[%s4761_s11] ss:$0 sm:$0xff] }
 0x1ab   :  { %v373_v37 = vpop.permute.xlu1 %372 }
 0x1ac   :  { %v3323_v39 = vmul.f32 %v373_v37, %v3059_v18  ;;  %v3340_v18 = vadd.f32 %v489_v15, %v3082_v22  ;;  %v562_v46 = vpop.permute.xlu0 %561  ;;  %v3425_v37 = vadd.f32 %v3421_v36, %v894_v1 }
 0x1ad   :  { %v3358_v54 = vpop.permute.xlu2 %565  ;;  %v3361_v55 = vmul.f32 %v562_v46, %v3074_v21  ;;  %v903_v40 = vpop.f32.mrf.mxu2 }
 0x1ae   :  { %4826 = vst [vmem:[#allocation30_spill] sm:$0xff] %v3323_v39  ;;  %414 = vrot.lane.b32.xlu1 %v3320_v38, %s2847_s6  ;;  %412 = vrot.lane.b32.xlu0 %v3323_v39, %s2847_s6 }
 0x1af   :  { %339 = vrot.lane.b32.xlu2 %v320_v41, %s2849_s17  ;;  %4827 = vst [vmem:[#allocation31_spill] sm:$0xff] %v3340_v18 }
 0x1b0   :  { %2626 = vmatmul.msk.f32.gmra.mxu3 %vm955_vm11, %v950_v42  ;;  %4830 = vst [vmem:[#allocation34_spill] sm:$0xff] %v3358_v54 }
 0x1b1   :  { %4831 = vst [vmem:[#allocation35_spill] sm:$0xff] %v3361_v55 }
 0x1b3   :  { %v487_v45 = vpop.permute.xlu1 %486 }
 0x1b4   :  { %v3343_v47 = vadd.f32 %v487_v45, %v3067_v19  ;;  %v377_v58 = vpop.permute.xlu0 %376 }
 0x1b5   :  { %v3374_v60 = vmul.f32 %v377_v58, %v3096_v26  ;;  %v381_v62 = vpop.permute.xlu2 %380 }
 0x1b6   :  { %4828 = vst [vmem:[#allocation32_spill] sm:$0xff] %v3343_v47  ;;  %528 = vrot.lane.b32.xlu1 %v3340_v18, %s2848_s8  ;;  %526 = vrot.lane.b32.xlu0 %v3343_v47, %s2848_s8  ;;  %v3385_v2 = vmul.f32 %v381_v62, %v3134_v34 }
 0x1b7   :  { %445 = vrot.lane.b32.xlu2 %v320_v41, %s2848_s8  ;;  %4832 = vst [vmem:[#allocation36_spill] sm:$0xff] %v3374_v60 }
 0x1b8   :  { %2627 = vmatmul.msk.f32.gmra.mxu3 %vm955_vm11, %v951_v49  ;;  %4833 = vst [vmem:[#allocation37_spill] sm:$0xff] %v3385_v2  ;;  %v3443_v49 = vadd.f32 %v3421_v36, %v900_v29  ;;  %v820_v29 = vld [vmem:[%s4752_s2 + $0x78] sm:$0xff] }
 0x1b9   :  { %2614 = vmatmul.msk.f32.gmra.mxu2 %vm72_vm0, %v820_v29 }
 0x1bc   :  { %v3356_v53 = vpop.permute.xlu1 %563  ;;  %v491_v0 = vpop.permute.xlu0 %490 }
 0x1bd   :  { %4829 = vst [vmem:[#allocation33_spill] sm:$0xff] %v3356_v53  ;;  %v3391_v4 = vadd.f32 %v491_v0, %v3104_v27  ;;  %v495_v6 = vpop.permute.xlu2 %494 }
 0x1be   :  { %343 = vrot.lane.b32.xlu1 %v322_v51, %s2849_s17  ;;  %341 = vrot.lane.b32.xlu0 %v321_v50, %s2849_s17  ;;  %v3400_v11 = vadd.f32 %v495_v6, %v3141_v35 }
 0x1bf   :  { %601 = vrot.lane.b32.xlu2 %v3361_v55, %s2846_s30  ;;  %4835 = vst [vmem:[#allocation39_spill] sm:$0xff] %v3391_v4 }
 0x1c0   :  { %2628 = vmatmul.msk.f32.gmra.mxu3 %vm955_vm11, %v952_v57  ;;  %4836 = vst [vmem:[#allocation40_spill] sm:$0xff] %v3400_v11 }
 0x1c4   :  { %v379_v21 = vpop.permute.xlu1 %378  ;;  %v306_v7 = vpop.permute.xlu0 %305 }
 0x1c5   :  { %v3388_v3 = vmul.f32 %v379_v21, %v3115_v30  ;;  %v323_v12 = vmul.f32 %v306_v7, %v3115_v30 }
 0x1c6   :  { %449 = vrot.lane.b32.xlu1 %v322_v51, %s2848_s8  ;;  %447 = vrot.lane.b32.xlu0 %v321_v50, %s2848_s8  ;;  %v3447_v51 = vpop.f32.mrf.mxu2 }
 0x1c7   :  { %416 = vrot.lane.b32.xlu2 %v3374_v60, %s2847_s6  ;;  %4834 = vst [vmem:[#allocation38_spill] sm:$0xff] %v3388_v3 }
 0x1c8   :  { %2629 = vmatmul.msk.f32.gmra.mxu3 %vm955_vm11, %v953_v61 }
 0x1cc   :  { %v493_v5 = vpop.permute.xlu1 %492  ;;  %v3440_v46 = vpop.permute.xlu0 %567 }
 0x1cd   :  { %v3403_v14 = vadd.f32 %v493_v5, %v3123_v31  ;;  %4840 = vst [vmem:[#allocation44_spill] sm:$0xff] %v3440_v46  ;;  %v3463_v5 = vadd.f32 %v3421_v36, %v897_v9  ;;  %v3750_v46 = vadd.f32 %v3421_v36, %v3370_v59 }
 0x1ce   :  { %420 = vrot.lane.b32.xlu1 %v3385_v2, %s2847_s6  ;;  %418 = vrot.lane.b32.xlu0 %v3388_v3, %s2847_s6  ;;  %v909_v1 = vpop.f32.mrf.mxu2 }
 0x1cf   :  { %530 = vrot.lane.b32.xlu2 %v3391_v4, %s2848_s8  ;;  %4837 = vst [vmem:[#allocation41_spill] sm:$0xff] %v3403_v14 }
 0x1d4   :  { %v308_v20 = vpop.permute.xlu1 %307 }
 0x1d5   :  { %v324_v24 = vmul.f32 %v308_v20, %v3134_v34  ;;  %v954_v20 = vld [vmem:[%s4753_s3 + $0x78] sm:$0xff] }
 0x1d6   :  { %534 = vrot.lane.b32.xlu1 %v3400_v11, %s2848_s8  ;;  %532 = vrot.lane.b32.xlu0 %v3403_v14, %s2848_s8  ;;  %v3477_v9 = vpop.f32.mrf.mxu2 }
 0x1d7   :  { %345 = vrot.lane.b32.xlu2 %v323_v12, %s2849_s17  ;;  %2630 = vmatmul.msk.f32.gmra.mxu3 %vm955_vm11, %v954_v20  ;;  %v3575_v22 = vadd.f32 %v3421_v36, %v3477_v9 }
 0x1db   :  { %v3411_v23 = vpop.f32.mrf.mxu3 }
 0x1de   :  { %1181 = vrot.lane.b32.xlu1 %v3411_v23, %s2846_s30  ;;  %347 = vrot.lane.b32.xlu0 %v324_v24, %s2849_s17 }
 0x1df   :  { %451 = vrot.lane.b32.xlu2 %v323_v12, %s2848_s8 }
 0x1e0   :  { %v3433_v45 = vpop.permute.xlu1 %593 }
 0x1e1   :  { %v334_v32 = vpop.permute.xlu2 %333  ;;  %4839 = vst [vmem:[#allocation43_spill] sm:$0xff] %v3433_v45 }
 0x1e2   :  { %358 = vst.msk [vmem:[#allocation4] sm:$0xff] %vm357_vm12, %v334_v32 }
 0x1e3   :  { %v1024_v15 = vpop.f32.mrf.mxu3 }
 0x1e4   :  { %v3431_v42 = vmul.f32 %v1024_v15, %v3425_v37 }
 0x1e6   :  { %1183 = vrot.lane.b32.xlu1 %v1024_v15, %s2846_s30  ;;  %453 = vrot.lane.b32.xlu0 %v324_v24, %s2848_s8  ;;  %4838 = vst [vmem:[#allocation42_spill] sm:$0xff] %v3431_v42 }
 0x1e7   :  { %1343 = vrot.lane.b32.xlu2 %v1024_v15, %s2844_s28 }
 0x1e8   :  { %v409_v21 = vpop.permute.xlu1 %408 }
 0x1e9   :  { %v440_v41 = vpop.permute.xlu2 %439 }
 0x1eb   :  { %v1027_v43 = vpop.f32.mrf.mxu3 }
 0x1ec   :  { %v3474_v32 = vmul.f32 %v1027_v43, %v3463_v5 }
 0x1ee   :  { %1103 = vrot.lane.b32.xlu1 %v3431_v42, %s2846_s30  ;;  %1341 = vrot.lane.b32.xlu0 %v3411_v23, %s2844_s28  ;;  %4843 = vst [vmem:[#allocation47_spill] sm:$0xff] %v3474_v32 }
 0x1ef   :  { %1583 = vrot.lane.b32.xlu2 %v1024_v15, %s2845_s29 }
 0x1f0   :  { %v523_v6 = vpop.permute.xlu1 %522 }
 0x1f1   :  { %v3445_v50 = vpop.permute.xlu2 %595 }
 0x1f2   :  { %4841 = vst [vmem:[#allocation45_spill] sm:$0xff] %v3445_v50 }
 0x1f3   :  { %v1030_v57 = vpop.f32.mrf.mxu3 }
 0x1f4   :  { %v3450_v58 = vmul.f32 %v1030_v57, %v3443_v49 }
 0x1f6   :  { %4842 = vst [vmem:[#allocation46_spill] sm:$0xff] %v3450_v58  ;;  %1345 = vrot.lane.b32.xlu1 %v1027_v43, %s2844_s28  ;;  %1581 = vrot.lane.b32.xlu0 %v3411_v23, %s2845_s29 }
 0x1f7   :  { %1107 = vrot.lane.b32.xlu2 %v3450_v58, %s2846_s30 }
 0x1f8   :  { %v407_v61 = vpop.permute.xlu0 %406 }
 0x1f9   :  { %v411_v62 = vpop.permute.xlu2 %410  ;;  %431 = vst.msk [vmem:[#allocation4] sm:$0xff] %vm430_vm13, %v407_v61  ;;  %v3483_v61 = vadd.f32 %v3421_v36, %v909_v1  ;;  %v3497_v1 = vadd.f32 %v3421_v36, %v903_v40 }
 0x1fa   :  { %464 = vst.msk [vmem:[#allocation4] sm:$0xff] %vm463_vm14, %v440_v41 }
 0x1fb   :  { %v1033_v0 = vpop.f32.mrf.mxu3 }
 0x1fe   :  { %1185 = vrot.lane.b32.xlu1 %v1027_v43, %s2846_s30  ;;  %1585 = vrot.lane.b32.xlu0 %v1027_v43, %s2845_s29 }
 0x1ff   :  { %1349 = vrot.lane.b32.xlu2 %v1033_v0, %s2844_s28 }
 0x200   :  { %v521_v7 = vpop.permute.xlu0 %520 }
 0x201   :  { %v525_v12 = vpop.permute.xlu2 %524  ;;  %545 = vst.msk [vmem:[#allocation4] sm:$0xff] %vm544_vm15, %v521_v7 }
 0x203   :  { %v1036_v24 = vpop.f32.mrf.mxu3 }
 0x206   :  { %1187 = vrot.lane.b32.xlu1 %v1030_v57, %s2846_s30  ;;  %1105 = vrot.lane.b32.xlu0 %v3474_v32, %s2846_s30 }
 0x208   :  { %v336_v15 = vpop.permute.xlu0 %335  ;;  %v338_v41 = vpop.permute.xlu1 %337 }
 0x209   :  { %359 = vst.msk [vmem:[#allocation4 + $0x8] sm:$0xff] %vm357_vm12, %v336_v15  ;;  %v340_v7 = vpop.permute.xlu2 %339 }
 0x20a   :  { %432 = vst.msk [vmem:[#allocation4 + $0x8] sm:$0xff] %vm430_vm13, %v409_v21  ;;  %v3503_v21 = vpop.f32.mrf.mxu2 }
 0x20b   :  { %361 = vst.msk [vmem:[#allocation4 + $0x18] sm:$0xff] %vm357_vm12, %v340_v7  ;;  %v3488_v43 = vpop.f32.mrf.mxu3  ;;  %v3627_v13 = vadd.f32 %v3421_v36, %v3503_v21 }
 0x20c   :  { %360 = vst.msk [vmem:[#allocation4 + $0x10] sm:$0xff] %vm357_vm12, %v338_v41  ;;  %v3493_v20 = vmul.f32 %v3488_v43, %v3483_v61 }
 0x20d   :  { %433 = vst.msk [vmem:[#allocation4 + $0x10] sm:$0xff] %vm430_vm13, %v411_v62  ;;  %v3508_v62 = vmul.f32 %v1033_v0, %v3497_v1 }
 0x20e   :  { %4844 = vst [vmem:[#allocation48_spill] sm:$0xff] %v3493_v20  ;;  %1189 = vrot.lane.b32.xlu1 %v1033_v0, %s2846_s30  ;;  %1113 = vrot.lane.b32.xlu2 %v3493_v20, %s2846_s30 }
 0x20f   :  { %1347 = vrot.lane.b32.xlu0 %v1030_v57, %s2844_s28 }
 0x210   :  { %v442_v29 = vpop.permute.xlu0 %441  ;;  %v444_v15 = vpop.permute.xlu1 %443 }
 0x211   :  { %465 = vst.msk [vmem:[#allocation4 + $0x8] sm:$0xff] %vm463_vm14, %v442_v29  ;;  %v446_v41 = vpop.permute.xlu2 %445 }
 0x212   :  { %546 = vst.msk [vmem:[#allocation4 + $0x8] sm:$0xff] %vm544_vm15, %v523_v6  ;;  %v918_v4 = vpop.f32.mrf.mxu2 }
 0x213   :  { %466 = vst.msk [vmem:[#allocation4 + $0x10] sm:$0xff] %vm463_vm14, %v444_v15  ;;  %v3511_v40 = vpop.f32.mrf.mxu3  ;;  %v3530_v14 = vadd.f32 %v3421_v36, %v918_v4 }
 0x214   :  { %547 = vst.msk [vmem:[#allocation4 + $0x10] sm:$0xff] %vm544_vm15, %v525_v12 }
 0x216   :  { %1109 = vrot.lane.b32.xlu1 %v3508_v62, %s2846_s30  ;;  %1355 = vrot.lane.b32.xlu2 %v3511_v40, %s2844_s28 }
 0x217   :  { %1587 = vrot.lane.b32.xlu0 %v1030_v57, %s2845_s29 }
 0x218   :  { %v3519_v7 = vpop.permute.xlu0 %597  ;;  %v3521_v6 = vpop.permute.xlu1 %599 }
 0x219   :  { %4845 = vst [vmem:[#allocation49_spill] sm:$0xff] %v3519_v7  ;;  %v3523_v29 = vpop.permute.xlu2 %601 }
 0x21a   :  { %4846 = vst [vmem:[#allocation50_spill] sm:$0xff] %v3521_v6  ;;  %v3533_v57 = vpop.f32.mrf.mxu2 }
 0x21b   :  { %4847 = vst [vmem:[#allocation51_spill] sm:$0xff] %v3523_v29  ;;  %v3525_v15 = vpop.f32.mrf.mxu3 }
 0x21e   :  { %1351 = vrot.lane.b32.xlu1 %v1036_v24, %s2844_s28 }
 0x21f   :  { %1589 = vrot.lane.b32.xlu0 %v1033_v0, %s2845_s29 }
 0x220   :  { %v413_v12 = vpop.permute.xlu0 %412  ;;  %v415_v33 = vpop.permute.xlu1 %414 }
 0x221   :  { %v417_v11 = vpop.permute.xlu2 %416  ;;  %434 = vst.msk [vmem:[#allocation4 + $0x18] sm:$0xff] %vm430_vm13, %v413_v12  ;;  %v3548_v12 = vadd.f32 %v3421_v36, %v3447_v51 }
 0x222   :  { %467 = vst.msk [vmem:[#allocation4 + $0x18] sm:$0xff] %vm463_vm14, %v446_v41  ;;  %v3553_v52 = vpop.f32.mrf.mxu2 }
 0x223   :  { %v3536_v47 = vpop.f32.mrf.mxu3  ;;  %v3556_v2 = vmul.f32 %v1036_v24, %v3548_v12 }
 0x224   :  { %v3540_v18 = vmul.f32 %v3536_v47, %v3530_v14 }
 0x226   :  { %1191 = vrot.lane.b32.xlu1 %v1036_v24, %s2846_s30  ;;  %1119 = vrot.lane.b32.xlu2 %v3540_v18, %s2846_s30 }
 0x227   :  { %1591 = vrot.lane.b32.xlu0 %v1036_v24, %s2845_s29 }
 0x228   :  { %v527_v4 = vpop.permute.xlu0 %526  ;;  %v529_v0 = vpop.permute.xlu1 %528 }
 0x229   :  { %v531_v41 = vpop.permute.xlu2 %530  ;;  %548 = vst.msk [vmem:[#allocation4 + $0x18] sm:$0xff] %vm544_vm15, %v527_v4 }
 0x22a   :  { %v3571_v4 = vpop.f32.mrf.mxu2 }
 0x22b   :  { %v3551_v63 = vpop.f32.mrf.mxu3 }
 0x22e   :  { %1193 = vrot.lane.b32.xlu1 %v3488_v43, %s2846_s30  ;;  %1361 = vrot.lane.b32.xlu2 %v3551_v63, %s2844_s28 }
 0x22f   :  { %1111 = vrot.lane.b32.xlu0 %v3556_v2, %s2846_s30 }
 0x230   :  { %v342_v51 = vpop.permute.xlu0 %341  ;;  %v344_v35 = vpop.permute.xlu1 %343 }
 0x231   :  { %v346_v60 = vpop.permute.xlu2 %345  ;;  %362 = vst.msk [vmem:[#allocation4 + $0x20] sm:$0xff] %vm357_vm12, %v342_v51 }
 0x232   :  { %364 = vst.msk [vmem:[#allocation4 + $0x30] sm:$0xff] %vm357_vm12, %v346_v60  ;;  %v3595_v9 = vpop.f32.mrf.mxu2 }
 0x233   :  { %435 = vst.msk [vmem:[#allocation4 + $0x20] sm:$0xff] %vm430_vm13, %v415_v33  ;;  %v3567_v24 = vpop.f32.mrf.mxu3 }
 0x234   :  { %363 = vst.msk [vmem:[#allocation4 + $0x28] sm:$0xff] %vm357_vm12, %v344_v35  ;;  %v3585_v35 = vmul.f32 %v3511_v40, %v3575_v22 }
 0x235   :  { %436 = vst.msk [vmem:[#allocation4 + $0x28] sm:$0xff] %vm430_vm13, %v417_v11 }
 0x236   :  { %1195 = vrot.lane.b32.xlu1 %v3511_v40, %s2846_s30  ;;  %4848 = vst [vmem:[#allocation52_spill] sm:$0xff] %v3585_v35 }
 0x237   :  { %1353 = vrot.lane.b32.xlu0 %v3488_v43, %s2844_s28 }
 0x238   :  { %v448_v60 = vpop.permute.xlu0 %447  ;;  %v450_v33 = vpop.permute.xlu1 %449 }
 0x239   :  { %468 = vst.msk [vmem:[#allocation4 + $0x20] sm:$0xff] %vm463_vm14, %v448_v60  ;;  %v452_v60 = vpop.permute.xlu2 %451 }
 0x23a   :  { %549 = vst.msk [vmem:[#allocation4 + $0x20] sm:$0xff] %vm544_vm15, %v529_v0  ;;  %v933_v27 = vpop.f32.mrf.mxu2 }
 0x23b   :  { %469 = vst.msk [vmem:[#allocation4 + $0x28] sm:$0xff] %vm463_vm14, %v450_v33  ;;  %v3588_v11 = vpop.f32.mrf.mxu3 }
 0x23c   :  { %550 = vst.msk [vmem:[#allocation4 + $0x28] sm:$0xff] %vm544_vm15, %v531_v41 }
 0x23e   :  { %1115 = vrot.lane.b32.xlu1 %v3585_v35, %s2846_s30 }
 0x23f   :  { %1593 = vrot.lane.b32.xlu0 %v3488_v43, %s2845_s29 }
 0x240   :  { %v419_v51 = vpop.permute.xlu0 %418  ;;  %v421_v0 = vpop.permute.xlu1 %420 }
 0x241   :  { %437 = vst.msk [vmem:[#allocation4 + $0x30] sm:$0xff] %vm430_vm13, %v419_v51  ;;  %v3613_v51 = vadd.f32 %v3421_v36, %v933_v27  ;;  %v3635_v27 = vmul.f32 %v3525_v15, %v3627_v13  ;;  %v1344_v16 = vpop.permute.xlu2 %1343 }
 0x242   :  { %470 = vst.msk [vmem:[#allocation4 + $0x30] sm:$0xff] %vm463_vm14, %v452_v60  ;;  %v936_v8 = vpop.f32.mrf.mxu2 }
 0x243   :  { %v3599_v33 = vpop.f32.mrf.mxu3 }
 0x244   :  { %1367 = vrot.lane.b32.xlu2 %v3599_v33, %s2844_s28 }
 0x246   :  { %1357 = vrot.lane.b32.xlu1 %v3525_v15, %s2844_s28 }
 0x247   :  { %1595 = vrot.lane.b32.xlu0 %v3511_v40, %s2845_s29 }
 0x248   :  { %v533_v43 = vpop.permute.xlu0 %532  ;;  %v535_v41 = vpop.permute.xlu1 %534 }
 0x249   :  { %551 = vst.msk [vmem:[#allocation4 + $0x30] sm:$0xff] %vm544_vm15, %v533_v43 }
 0x24b   :  { %v3608_v3 = vpop.f32.mrf.mxu3 }
 0x24c   :  { %1209 = vrot.lane.b32.xlu2 %v3608_v3, %s2846_s30  ;;  %v3623_v43 = vmul.f32 %v3608_v3, %v3613_v51 }
 0x24e   :  { %1197 = vrot.lane.b32.xlu1 %v3525_v15, %s2846_s30 }
 0x24f   :  { %1597 = vrot.lane.b32.xlu0 %v3525_v15, %s2845_s29  ;;  %v3649_v15 = vadd.f32 %v3421_v36, %v3533_v57  ;;  %v3665_v57 = vpop.permute.xlu2 %1583 }
 0x250   :  { %v348_v40 = vpop.permute.xlu0 %347  ;;  %v3619_v60 = vpop.permute.xlu1 %1181 }
 0x251   :  { %365 = vst.msk [vmem:[#allocation4 + $0x38] sm:$0xff] %vm357_vm12, %v348_v40 }
 0x252   :  { %438 = vst.msk [vmem:[#allocation4 + $0x38] sm:$0xff] %vm430_vm13, %v421_v0  ;;  %v1390_v0 = vmul.f32 %v1344_v16, %v3425_v37  ;;  %v3659_v16 = vmul.f32 %v3551_v63, %v3649_v15  ;;  %vm657_vm13 = vcmask 48168  }
 0x254   :  { %1129 = vrot.lane.b32.xlu2 %v3623_v43, %s2846_s30 }
 0x256   :  { %1199 = vrot.lane.b32.xlu1 %v3536_v47, %s2846_s30 }
 0x257   :  { %1117 = vrot.lane.b32.xlu0 %v3635_v27, %s2846_s30  ;;  %v3677_v56 = vpop.permute.xlu2 %1107 }
 0x258   :  { %v454_v21 = vpop.permute.xlu0 %453  ;;  %v3641_v31 = vpop.permute.xlu1 %1183  ;;  %4850 = vst [vmem:[#allocation54_spill] sm:$0xff] %v3677_v56 }
 0x259   :  { %471 = vst.msk [vmem:[#allocation4 + $0x38] sm:$0xff] %vm463_vm14, %v454_v21 }
 0x25a   :  { %552 = vst.msk [vmem:[#allocation4 + $0x38] sm:$0xff] %vm544_vm15, %v535_v41  ;;  %v1066_v59 = vpop.f32.mrf.mxu3 }
 0x25c   :  { %1423 = vrot.lane.b32.xlu2 %v1390_v0, %s2846_s30 }
 0x25e   :  { %1201 = vrot.lane.b32.xlu1 %v3551_v63, %s2846_s30 }
 0x25f   :  { %1359 = vrot.lane.b32.xlu0 %v3536_v47, %s2844_s28  ;;  %v1350_v48 = vpop.permute.xlu2 %1349 }
 0x260   :  { %v1342_v40 = vpop.permute.xlu0 %1341  ;;  %v3655_v39 = vpop.permute.xlu1 %1103 }
 0x261   :  { %4849 = vst [vmem:[#allocation53_spill] sm:$0xff] %v3655_v39 }
 0x266   :  { %1121 = vrot.lane.b32.xlu1 %v3659_v16, %s2846_s30 }
 0x267   :  { %1599 = vrot.lane.b32.xlu0 %v3536_v47, %s2845_s29 }
 0x268   :  { %v3667_v41 = vpop.permute.xlu0 %1581  ;;  %v1346_v21 = vpop.permute.xlu1 %1345 }
 0x269   :  { %v1391_v0 = vmul.f32 %v1346_v21, %v3463_v5  ;;  %v3705_v25 = vpop.permute.xlu2 %1113 }
 0x26a   :  { %4852 = vst [vmem:[#allocation56_spill] sm:$0xff] %v3705_v25 }
 0x26b   :  { %1425 = vrot.lane.b32.xlu2 %v1391_v0, %s2846_s30 }
 0x26e   :  { %1363 = vrot.lane.b32.xlu1 %v3567_v24, %s2844_s28 }
 0x26f   :  { %1601 = vrot.lane.b32.xlu0 %v3551_v63, %s2845_s29  ;;  %v3692_v63 = vadd.f32 %v3421_v36, %v3553_v52  ;;  %v3714_v52 = vadd.f32 %v3421_v36, %v3595_v9  ;;  %v3732_v9 = vadd.f32 %v3421_v36, %v3571_v4 }
 0x270   :  { %v3675_v38 = vpop.permute.xlu0 %1585  ;;  %v1186_v19 = vpop.permute.xlu1 %1185 }
 0x271   :  { %v3680_v47 = vmul.f32 %v1186_v19, %v3463_v5  ;;  %v3696_v19 = vmul.f32 %v3567_v24, %v3692_v63  ;;  %v1356_v28 = vpop.permute.xlu2 %1355  ;;  %v3740_v55 = vmul.f32 %v3588_v11, %v3732_v9 }
 0x273   :  { %1265 = vrot.lane.b32.xlu2 %v3680_v47, %s2844_s28 }
 0x276   :  { %1203 = vrot.lane.b32.xlu1 %v3567_v24, %s2846_s30 }
 0x277   :  { %1603 = vrot.lane.b32.xlu0 %v3567_v24, %s2845_s29 }
 0x278   :  { %v3688_v21 = vpop.permute.xlu0 %1105  ;;  %v1188_v0 = vpop.permute.xlu1 %1187 }
 0x279   :  { %4851 = vst [vmem:[#allocation55_spill] sm:$0xff] %v3688_v21  ;;  %v3787_v30 = vmul.f32 %v1188_v0, %v3443_v49 }
 0x27e   :  { %1205 = vrot.lane.b32.xlu1 %v3588_v11, %s2846_s30 }
 0x27f   :  { %1123 = vrot.lane.b32.xlu0 %v3696_v19, %s2846_s30 }
 0x280   :  { %v3702_v17 = vpop.permute.xlu1 %1189  ;;  %v3742_v45 = vpop.permute.xlu2 %1119 }
 0x281   :  { %v1348_v10 = vpop.permute.xlu0 %1347  ;;  %v3799_v0 = vmul.f32 %v3702_v17, %v3497_v1 }
 0x282   :  { %v1392_v6 = vmul.f32 %v1348_v10, %v3443_v49  ;;  %v1393_v10 = vmul.f32 %v1350_v48, %v3497_v1 }
 0x284   :  { %1427 = vrot.lane.b32.xlu2 %v1392_v6, %s2846_s30  ;;  %v3724_v6 = vmul.f32 %v3599_v33, %v3714_v52 }
 0x286   :  { %1207 = vrot.lane.b32.xlu1 %v3599_v33, %s2846_s30  ;;  %4853 = vst [vmem:[#allocation57_spill] sm:$0xff] %v3724_v6 }
 0x287   :  { %1365 = vrot.lane.b32.xlu0 %v3588_v11, %s2844_s28 }
 0x288   :  { %v3718_v7 = vpop.permute.xlu1 %1109 }
 0x289   :  { %v3716_v24 = vpop.permute.xlu0 %1587 }
 0x28c   :  { %1429 = vrot.lane.b32.xlu2 %v1393_v10, %s2846_s30 }
 0x28e   :  { %1127 = vrot.lane.b32.xlu1 %v3724_v6, %s2846_s30 }
 0x28f   :  { %1605 = vrot.lane.b32.xlu0 %v3588_v11, %s2845_s29  ;;  %v1389_v11 = vmul.f32 %v1342_v40, %v3750_v46 }
 0x290   :  { %v1352_v48 = vpop.permute.xlu1 %1351 }
 0x291   :  { %v3734_v29 = vpop.permute.xlu0 %1589  ;;  %v1394_v10 = vmul.f32 %v1352_v48, %v3548_v12 }
 0x294   :  { %1431 = vrot.lane.b32.xlu2 %v1394_v10, %s2846_s30  ;;  %v3761_v10 = vpop.permute.xlu2 %1361 }
 0x296   :  { %1369 = vrot.lane.b32.xlu1 %v3608_v3, %s2844_s28 }
 0x297   :  { %1125 = vrot.lane.b32.xlu0 %v3740_v55, %s2846_s30 }
 0x298   :  { %v1192_v44 = vpop.permute.xlu1 %1191 }
 0x299   :  { %v1592_v4 = vpop.permute.xlu0 %1591  ;;  %v3753_v48 = vmul.f32 %v1192_v44, %v3548_v12  ;;  %v3767_v44 = vadd.f32 %v3421_v36, %v936_v8 }
 0x29b   :  { %v3775_v26 = vmul.f32 %v1066_v59, %v3767_v44 }
 0x29c   :  { %1271 = vrot.lane.b32.xlu2 %v3753_v48, %s2844_s28 }
 0x29e   :  { %1421 = vrot.lane.b32.xlu1 %v1389_v11, %s2846_s30  ;;  %v3771_v40 = vpop.permute.xlu2 %1367 }
 0x29f   :  { %1607 = vrot.lane.b32.xlu0 %v3599_v33, %s2845_s29 }
 0x2a0   :  { %v1194_v50 = vpop.permute.xlu1 %1193 }
 0x2a1   :  { %v3763_v34 = vpop.permute.xlu0 %1111 }
 0x2a6   :  { %1211 = vrot.lane.b32.xlu1 %v1066_v59, %s2846_s30  ;;  %v3784_v54 = vpop.permute.xlu2 %1209 }
 0x2a7   :  { %1609 = vrot.lane.b32.xlu0 %v3608_v3, %s2845_s29  ;;  %v1396_v3 = vmul.f32 %v1356_v28, %v3575_v22 }
 0x2a8   :  { %v1196_v53 = vpop.permute.xlu1 %1195 }
 0x2a9   :  { %v1354_v11 = vpop.permute.xlu0 %1353 }
 0x2aa   :  { %v1395_v33 = vmul.f32 %v1354_v11, %v3483_v61  ;;  %v1634_v11 = vmul.f32 %v1592_v4, %v3548_v12 }
 0x2ac   :  { %1433 = vrot.lane.b32.xlu2 %v1395_v33, %s2846_s30  ;;  %v1650_v56 = vmul.f32 %v1634_v11, %v1634_v11 }
 0x2ae   :  { %1131 = vrot.lane.b32.xlu1 %v3775_v26, %s2846_s30  ;;  %v3795_v28 = vpop.permute.xlu2 %1129 }
 0x2af   :  { %1371 = vrot.lane.b32.xlu0 %v1066_v59, %s2844_s28 }
 0x2b0   :  { %v3781_v36 = vpop.permute.xlu1 %1115 }
 0x2b1   :  { %v1594_v8 = vpop.permute.xlu0 %1593  ;;  %4854 = vst [vmem:[#allocation58_spill] sm:$0xff] %v3781_v36 }
 0x2b2   :  { %v1635_v12 = vmul.f32 %v1594_v8, %v3483_v61 }
 0x2b4   :  { %1435 = vrot.lane.b32.xlu2 %v1396_v3, %s2846_s30  ;;  %v3807_v3 = vmul.f32 %v1194_v50, %v3483_v61  ;;  %v1651_v11 = vmul.f32 %v1635_v12, %v1635_v12 }
 0x2b6   :  { %1267 = vrot.lane.b32.xlu1 %v3787_v30, %s2844_s28 }
 0x2b7   :  { %1611 = vrot.lane.b32.xlu0 %v1066_v59, %s2845_s29 }
 0x2b8   :  { %v1358_v39 = vpop.permute.xlu1 %1357 }
 0x2b9   :  { %v1596_v33 = vpop.permute.xlu0 %1595 }
 0x2ba   :  { %v1636_v42 = vmul.f32 %v1596_v33, %v3575_v22  ;;  %v3810_v33 = vpop.permute.xlu2 %1423 }
 0x2bc   :  { %v1652_v58 = vmul.f32 %v1636_v42, %v1636_v42  ;;  %v1397_v42 = vmul.f32 %v1358_v39, %v3627_v13  ;;  %v3823_v39 = vmul.f32 %v1196_v53, %v3575_v22 }
 0x2be   :  { %1691 = vrot.lane.b32.xlu2 %v1652_v58, %s2844_s28  ;;  %1687 = vrot.lane.b32.xlu1 %v1650_v56, %s2844_s28 }
 0x2bf   :  { %1269 = vrot.lane.b32.xlu0 %v3799_v0, %s2844_s28 }
 0x2c0   :  { %v1198_v59 = vpop.permute.xlu1 %1197 }
 0x2c1   :  { %v1598_v4 = vpop.permute.xlu0 %1597  ;;  %v3820_v50 = vmul.f32 %v1198_v59, %v3627_v13 }
 0x2c2   :  { %v1637_v56 = vmul.f32 %v1598_v4, %v3627_v13 }
 0x2c4   :  { %v1653_v8 = vmul.f32 %v1637_v56, %v1637_v56  ;;  %v1399_v56 = vmul.f32 %v3761_v10, %v3649_v15 }
 0x2c5   :  { %v3825_v61 = vpop.permute.xlu2 %1425 }
 0x2c6   :  { %1437 = vrot.lane.b32.xlu2 %v1397_v42, %s2846_s30  ;;  %1273 = vrot.lane.b32.xlu1 %v3807_v3, %s2844_s28 }
 0x2c7   :  { %1689 = vrot.lane.b32.xlu0 %v1651_v11, %s2844_s28 }
 0x2c8   :  { %v1200_v58 = vpop.permute.xlu1 %1199 }
 0x2c9   :  { %v3817_v17 = vpop.permute.xlu0 %1117  ;;  %v3833_v42 = vmul.f32 %v1200_v58, %v3530_v14 }
 0x2cd   :  { %v3839_v22 = vpop.permute.xlu2 %1265 }
 0x2ce   :  { %1277 = vrot.lane.b32.xlu2 %v3820_v50, %s2844_s28  ;;  %1693 = vrot.lane.b32.xlu1 %v1653_v8, %s2844_s28  ;;  %4855 = vst [vmem:[#allocation59_spill] sm:$0xff] %v3839_v22 }
 0x2cf   :  { %1275 = vrot.lane.b32.xlu0 %v3823_v39, %s2844_s28 }
 0x2d0   :  { %v1202_v4 = vpop.permute.xlu1 %1201 }
 0x2d1   :  { %v1360_v12 = vpop.permute.xlu0 %1359  ;;  %v3852_v35 = vmul.f32 %v1202_v4, %v3649_v15 }
 0x2d2   :  { %v1398_v13 = vmul.f32 %v1360_v12, %v3530_v14 }
 0x2d6   :  { %1439 = vrot.lane.b32.xlu2 %v1398_v13, %s2846_s30  ;;  %1279 = vrot.lane.b32.xlu1 %v3833_v42, %s2844_s28 }
 0x2d8   :  { %v3841_v59 = vpop.permute.xlu1 %1121 }
 0x2d9   :  { %v1600_v53 = vpop.permute.xlu0 %1599 }
 0x2da   :  { %v1638_v11 = vmul.f32 %v1600_v53, %v3530_v14 }
 0x2dc   :  { %v1654_v8 = vmul.f32 %v1638_v11, %v1638_v11 }
 0x2de   :  { %1695 = vrot.lane.b32.xlu0 %v1654_v8, %s2844_s28  ;;  %1441 = vrot.lane.b32.xlu2 %v1399_v56, %s2846_s30  ;;  %v3848_v58 = vpop.permute.xlu2 %1427 }
 0x2e0   :  { %v1364_v13 = vpop.permute.xlu1 %1363 }
 0x2e1   :  { %v1602_v12 = vpop.permute.xlu0 %1601  ;;  %v1400_v56 = vmul.f32 %v1364_v13, %v3692_v63 }
 0x2e2   :  { %v1639_v36 = vmul.f32 %v1602_v12, %v3649_v15 }
 0x2e4   :  { %v1655_v22 = vmul.f32 %v1639_v36, %v1639_v36 }
 0x2e6   :  { %1697 = vrot.lane.b32.xlu2 %v1655_v22, %s2844_s28  ;;  %1281 = vrot.lane.b32.xlu0 %v3852_v35, %s2844_s28  ;;  %v3857_v53 = vpop.permute.xlu2 %1429 }
 0x2e8   :  { %v1204_v10 = vpop.permute.xlu1 %1203 }
 0x2e9   :  { %v1604_v14 = vpop.permute.xlu0 %1603  ;;  %v3866_v4 = vmul.f32 %v1204_v10, %v3692_v63 }
 0x2ea   :  { %v1640_v11 = vmul.f32 %v1604_v14, %v3692_v63 }
 0x2ec   :  { %v1656_v8 = vmul.f32 %v1640_v11, %v1640_v11 }
 0x2ee   :  { %1699 = vrot.lane.b32.xlu1 %v1656_v8, %s2844_s28  ;;  %1443 = vrot.lane.b32.xlu2 %v1400_v56, %s2846_s30  ;;  %v1432_v22 = vpop.permute.xlu2 %1431 }
 0x2f0   :  { %v1206_v36 = vpop.permute.xlu1 %1205 }
 0x2f1   :  { %v3863_v15 = vpop.permute.xlu0 %1123  ;;  %v3869_v12 = vmul.f32 %v1206_v36, %v3732_v9  ;;  %v1402_v36 = vmul.f32 %v3771_v40, %v3714_v52 }
 0x2f6   :  { %1283 = vrot.lane.b32.xlu2 %v3866_v4, %s2844_s28  ;;  %1285 = vrot.lane.b32.xlu1 %v3869_v12, %s2844_s28  ;;  %v3879_v8 = vpop.permute.xlu2 %1271 }
 0x2f8   :  { %v1208_v14 = vpop.permute.xlu1 %1207 }
 0x2f9   :  { %v1366_v13 = vpop.permute.xlu0 %1365  ;;  %v3877_v56 = vmul.f32 %v1208_v14, %v3714_v52 }
 0x2fa   :  { %v1401_v11 = vmul.f32 %v1366_v13, %v3732_v9 }
 0x2fe   :  { %1445 = vrot.lane.b32.xlu2 %v1401_v11, %s2846_s30  ;;  %1287 = vrot.lane.b32.xlu1 %v3877_v56, %s2844_s28 }
 0x300   :  { %v3891_v14 = vpop.permute.xlu1 %1127 }
 0x301   :  { %v1606_v63 = vpop.permute.xlu0 %1605  ;;  %4856 = vst [vmem:[#allocation60_spill] sm:$0xff] %v3891_v14 }
 0x302   :  { %v1641_v10 = vmul.f32 %v1606_v63, %v3732_v9 }
 0x304   :  { %v1657_v21 = vmul.f32 %v1641_v10, %v1641_v10 }
 0x306   :  { %v1434_v32 = vpop.permute.xlu2 %1433  ;;  %1701 = vrot.lane.b32.xlu0 %v1657_v21, %s2844_s28  ;;  %1447 = vrot.lane.b32.xlu2 %v1402_v36, %s2846_s30 }
 0x308   :  { %v1370_v9 = vpop.permute.xlu1 %1369 }
 0x309   :  { %v3889_v13 = vpop.permute.xlu0 %1125  ;;  %v1403_v10 = vmul.f32 %v1370_v9, %v3613_v51  ;;  %v58_v9 = vld [vmem:[%s4750_s0 + $0x38] sm:$0xff] }
 0x30a   :  { %1861 = vmatpush.msrb.mxu0 %v58_v9 }
 0x30e   :  { %v3893_v11 = vpop.permute.xlu2 %1435 }
 0x310   :  { %v3903_v14 = vpop.permute.xlu1 %1421 }
 0x311   :  { %v1608_v25 = vpop.permute.xlu0 %1607 }
 0x312   :  { %v1642_v20 = vmul.f32 %v1608_v25, %v3714_v52  ;;  %v1475_v25 = vadd.f32 %v1434_v32, %v3807_v3 }
 0x314   :  { %v1658_v6 = vmul.f32 %v1642_v20, %v1642_v20 }
 0x316   :  { %1703 = vrot.lane.b32.xlu2 %v1658_v6, %s2844_s28 }
 0x318   :  { %v3897_v40 = vpop.permute.xlu2 %1691 }
 0x319   :  { %4857 = vst [vmem:[#allocation61_spill] sm:$0xff] %v3897_v40  ;;  %v1610_v63 = vpop.permute.xlu0 %1609  ;;  %v3909_v40 = vmul.f32 %v3784_v54, %v3613_v51  ;;  %v1474_v54 = vadd.f32 %v1432_v22, %v3753_v48  ;;  %v55_v48 = vld [vmem:[%s4750_s0 + $0x20] sm:$0xff]  ;;  %v54_v22 = vld [vmem:[%s4750_s0 + $0x18] sm:$0xff] }
 0x31a   :  { %v1643_v21 = vmul.f32 %v1610_v63, %v3613_v51  ;;  %v1491_v63 = vmul.f32 %v1475_v25, %v1475_v25  ;;  %v1212_v51 = vpop.permute.xlu1 %1211 }
 0x31b   :  { %v3925_v3 = vmul.f32 %v1212_v51, %v3767_v44  ;;  %v1490_v25 = vmul.f32 %v1474_v54, %v1474_v54  ;;  %v52_v51 = vld [vmem:[%s4750_s0 + $0x8] sm:$0xff] }
 0x31c   :  { %v1659_v36 = vmul.f32 %v1643_v21, %v1643_v21  ;;  %v57_v21 = vld [vmem:[%s4750_s0 + $0x30] sm:$0xff] }
 0x31d   :  { %1862 = vmatpush.msrb.mxu0 %v57_v21 }
 0x31e   :  { %1705 = vrot.lane.b32.xlu1 %v1659_v36, %s2844_s28  ;;  %1449 = vrot.lane.b32.xlu2 %v1403_v10, %s2846_s30  ;;  %v56_v36 = vld [vmem:[%s4750_s0 + $0x28] sm:$0xff] }
 0x31f   :  { %1863 = vmatpush.msrb.mxu0 %v56_v36 }
 0x320   :  { %v1438_v20 = vpop.permute.xlu2 %1437 }
 0x321   :  { %v1372_v52 = vpop.permute.xlu0 %1371  ;;  %1864 = vmatpush.msrb.mxu0 %v55_v48 }
 0x322   :  { %v1404_v6 = vmul.f32 %v1372_v52, %v3767_v44 }
 0x323   :  { %1865 = vmatpush.msrb.mxu0 %v54_v22  ;;  %v1790_v22 = vld [vmem:[%s4754_s4 + $0x8] sm:$0xff] }
 0x324   :  { %1451 = vrot.lane.b32.xlu0 %v1404_v6, %s2846_s30  ;;  %v53_v6 = vld [vmem:[%s4750_s0 + $0x10] sm:$0xff] }
 0x325   :  { %1866 = vmatpush.msrb.mxu0 %v53_v6 }
 0x326   :  { %1529 = vrot.lane.b32.xlu1 %v1491_v63, %s2846_s30  ;;  %1289 = vrot.lane.b32.xlu2 %v3909_v40, %s2844_s28  ;;  %v1477_v63 = vadd.f32 %v1438_v20, %v3820_v50 }
 0x327   :  { %1867 = vmatpush.msrb.mxu0 %v52_v51 }
 0x328   :  { %v3922_v32 = vpop.permute.xlu2 %1277  ;;  %v1493_v50 = vmul.f32 %v1477_v63, %v1477_v63  ;;  %v1791_v63 = vld [vmem:[%s4754_s4 + $0x10] sm:$0xff] }
 0x329   :  { %v1612_v10 = vpop.permute.xlu0 %1611 }
 0x32a   :  { %v1644_v52 = vmul.f32 %v1612_v10, %v3767_v44  ;;  %v51_v44 = vld [vmem:[%s4750_s0] sm:$0xff] }
 0x32b   :  { %v1789_v10 = vld [vmem:[%s4754_s4] sm:$0xff]  ;;  %1868 = vmatpush.msrb.mxu0 %v51_v44 }
 0x32c   :  { %1291 = vrot.lane.b32.xlu0 %v3925_v3, %s2844_s28  ;;  %v1660_v54 = vmul.f32 %v1644_v52, %v1644_v52  ;;  %2631 = vmatmul.msk.f32.vlgmr.msrb.gmra.mxu0 %vm955_vm11, %v1789_v10  ;;  %v1476_v52 = vadd.f32 %v3893_v11, %v3823_v39 }
 0x32e   :  { %1527 = vrot.lane.b32.xlu2 %v1490_v25, %s2846_s30 }
 0x330   :  { %v1440_v9 = vpop.permute.xlu2 %1439 }
 0x331   :  { %v1478_v21 = vadd.f32 %v1440_v9, %v3833_v42  ;;  %v3954_v20 = vpop.permute.xlu0 %1269  ;;  %v1473_v42 = vadd.f32 %v3857_v53, %v3799_v0  ;;  %v1492_v53 = vmul.f32 %v1476_v52, %v1476_v52  ;;  %v1794_v52 = vld [vmem:[%s4754_s4 + $0x28] sm:$0xff] }
 0x333   :  { %v1494_v36 = vmul.f32 %v1478_v21, %v1478_v21  ;;  %v1489_v48 = vmul.f32 %v1473_v42, %v1473_v42  ;;  %v1159_v42 = vadd.f32 %v3841_v59, %v3659_v16 }
 0x334   :  { %1707 = vrot.lane.b32.xlu0 %v1660_v54, %s2844_s28  ;;  %2632 = vmatmul.msk.f32.gmra.mxu0 %vm955_vm11, %v1790_v22 }
 0x335   :  { %1535 = vrot.lane.b32.xlu1 %v1494_v36, %s2846_s30  ;;  %v1792_v36 = vld [vmem:[%s4754_s4 + $0x18] sm:$0xff] }
 0x336   :  { %1533 = vrot.lane.b32.xlu2 %v1493_v50, %s2846_s30 }
 0x338   :  { %v1442_v25 = vpop.permute.xlu2 %1441 }
 0x339   :  { %v3968_v6 = vpop.permute.xlu0 %1689  ;;  %v1479_v9 = vadd.f32 %v1442_v25, %v3852_v35  ;;  %v1160_v35 = vadd.f32 %v3863_v15, %v3696_v19 }
 0x33b   :  { %v1495_v54 = vmul.f32 %v1479_v9, %v1479_v9 }
 0x33c   :  { %1525 = vrot.lane.b32.xlu0 %v1489_v48, %s2846_s30  ;;  %2633 = vmatmul.msk.f32.gmra.mxu0 %vm955_vm11, %v1791_v63  ;;  %v4010_v63 = vpop.permute.xlu1 %1131 }
 0x340   :  { %v3971_v0 = vpop.permute.xlu2 %1697 }
 0x341   :  { %v3979_v21 = vpop.permute.xlu0 %1275 }
 0x344   :  { %1531 = vrot.lane.b32.xlu0 %v1492_v53, %s2846_s30  ;;  %2634 = vmatmul.msk.f32.gmra.mxu0 %vm955_vm11, %v1792_v36  ;;  %v1472_v53 = vadd.f32 %v3848_v58, %v3787_v30  ;;  %v1471_v30 = vadd.f32 %v3825_v61, %v3680_v47  ;;  %v4021_v58 = vpop.permute.xlu1 %1267  ;;  %v4037_v61 = vmul.f32 %v3619_v60, %v3750_v46 }
 0x346   :  { %v1488_v9 = vmul.f32 %v1472_v53, %v1472_v53 }
 0x348   :  { %v1444_v39 = vpop.permute.xlu2 %1443 }
 0x349   :  { %v1480_v11 = vadd.f32 %v1444_v39, %v3866_v4  ;;  %v1793_v4 = vld [vmem:[%s4754_s4 + $0x20] sm:$0xff] }
 0x34b   :  { %v1496_v51 = vmul.f32 %v1480_v11, %v1480_v11  ;;  %v1487_v11 = vmul.f32 %v1471_v30, %v1471_v30 }
 0x34c   :  { %1537 = vrot.lane.b32.xlu0 %v1495_v54, %s2846_s30  ;;  %2635 = vmatmul.msk.f32.gmra.mxu0 %vm955_vm11, %v1793_v4  ;;  %v1796_v54 = vld [vmem:[%s4754_s4 + $0x38] sm:$0xff]  ;;  %v4039_v36 = vpop.permute.xlu1 %1687 }
 0x34d   :  { %1539 = vrot.lane.b32.xlu2 %v1496_v51, %s2846_s30  ;;  %v1631_v51 = vmul.f32 %v3675_v38, %v3463_v5  ;;  %v1629_v38 = vmul.f32 %v3667_v41, %v3750_v46  ;;  %v1630_v41 = vmul.f32 %v3665_v57, %v3425_v37  ;;  %v1157_v57 = vadd.f32 %v3817_v17, %v3635_v27 }
 0x34f   :  { %v1645_v4 = vmul.f32 %v1629_v38, %v1629_v38  ;;  %v1646_v53 = vmul.f32 %v1630_v41, %v1630_v41 }
 0x350   :  { %v3990_v44 = vpop.permute.xlu0 %1695  ;;  %v1284_v10 = vpop.permute.xlu2 %1283 }
 0x351   :  { %v3992_v50 = vadd.f32 %v1284_v10, %v1160_v35  ;;  %v1797_v35 = vld [vmem:[%s4754_s4 + $0x40] sm:$0xff] }
 0x354   :  { %2636 = vmatmul.msk.f32.gmra.mxu0 %vm955_vm11, %v1794_v52  ;;  %v1799_v52 = vld [vmem:[%s4754_s4 + $0x50] sm:$0xff] }
 0x358   :  { %v1282_v25 = vpop.permute.xlu0 %1281  ;;  %v1446_v48 = vpop.permute.xlu2 %1445 }
 0x359   :  { %v4000_v22 = vadd.f32 %v1282_v25, %v1159_v42  ;;  %v1481_v19 = vadd.f32 %v1446_v48, %v3869_v12  ;;  %v1795_v12 = vld [vmem:[%s4754_s4 + $0x30] sm:$0xff]  ;;  %v4052_v48 = vpop.permute.xlu1 %1273 }
 0x35b   :  { %v1497_v15 = vmul.f32 %v1481_v19, %v1481_v19  ;;  %v1798_v19 = vld [vmem:[%s4754_s4 + $0x48] sm:$0xff] }
 0x35c   :  { %2637 = vmatmul.msk.f32.gmra.mxu0 %vm955_vm11, %v1795_v12 }
 0x35d   :  { %1541 = vrot.lane.b32.xlu1 %v1497_v15, %s2846_s30 }
 0x360   :  { %v1448_v16 = vpop.permute.xlu2 %1447 }
 0x361   :  { %v1482_v59 = vadd.f32 %v1448_v16, %v3877_v56  ;;  %v1230_v56 = vmul.f32 %v3641_v31, %v3425_v37  ;;  %v1647_v31 = vmul.f32 %v1631_v51, %v1631_v51  ;;  %v1164_v51 = vadd.f32 %v4010_v63, %v3775_v26 }
 0x362   :  { %v1633_v26 = vmul.f32 %v3734_v29, %v3497_v1  ;;  %v1336_v63 = vmul.f32 %v3992_v50, %v3992_v50  ;;  %v1632_v1 = vmul.f32 %v3716_v24, %v3443_v49 }
 0x363   :  { %v1498_v39 = vmul.f32 %v1482_v59, %v1482_v59  ;;  %v1470_v5 = vadd.f32 %v3810_v33, %v1230_v56  ;;  %v4073_v59 = vpop.permute.xlu1 %1693 }
 0x364   :  { %2638 = vmatmul.msk.f32.gmra.mxu0 %vm955_vm11, %v1796_v54 }
 0x365   :  { %1523 = vrot.lane.b32.xlu1 %v1488_v9, %s2846_s30  ;;  %1543 = vrot.lane.b32.xlu0 %v1498_v39, %s2846_s30  ;;  %v1486_v25 = vmul.f32 %v1470_v5, %v1470_v5  ;;  %v4102_v5 = vmul.f32 %v3411_v23, %v3750_v46 }
 0x36b   :  { %v4086_v30 = vpop.permute.xlu1 %1279 }
 0x36c   :  { %2639 = vmatmul.msk.f32.gmra.mxu0 %vm955_vm11, %v1797_v35 }
 0x36d   :  { %1521 = vrot.lane.b32.xlu1 %v1487_v11, %s2846_s30  ;;  %1263 = vrot.lane.b32.xlu0 %v1230_v56, %s2844_s28  ;;  %v2850_v11 = vmov 0  }
 0x36e   :  { %2688 = vset.pattern.permute.xlu1 %v2850_v11  ;;  %2689 = vset.pattern.permute.xlu2 %v2850_v11 }
 0x36f   :  { %2690 = vset.pattern.permute.xlu0 %v2850_v11 }
 0x370   :  { %v4033_v47 = vpop.permute.xlu2 %1703 }
 0x374   :  { %2640 = vmatmul.msk.f32.gmra.mxu0 %vm955_vm11, %v1798_v19 }
 0x375   :  { %1681 = vrot.lane.b32.xlu1 %v1647_v31, %s2844_s28  ;;  %1261 = vrot.lane.b32.xlu0 %v4037_v61, %s2844_s28  ;;  %v1801_v31 = vld [vmem:[%s4754_s4 + $0x60] sm:$0xff] }
 0x378   :  { %v1450_v60 = vpop.permute.xlu2 %1449 }
 0x379   :  { %v1483_v10 = vadd.f32 %v1450_v60, %v3909_v40  ;;  %v1154_v40 = vadd.f32 %v3763_v34, %v3556_v2  ;;  %v1317_v34 = vadd.f32 %v3922_v32, %v1157_v57  ;;  %v1800_v2 = vld [vmem:[%s4754_s4 + $0x58] sm:$0xff]  ;;  %v1700_v32 = vpop.permute.xlu1 %1699  ;;  %v1161_v57 = vadd.f32 %v3889_v13, %v3740_v55 }
 0x37b   :  { %v1499_v42 = vmul.f32 %v1483_v10, %v1483_v10  ;;  %v1314_v15 = vadd.f32 %v3879_v8, %v1154_v40  ;;  %v4083_v8 = vpop.permute.xlu0 %1701  ;;  %v1333_v39 = vmul.f32 %v1317_v34, %v1317_v34  ;;  %v1153_v10 = vadd.f32 %v3718_v7, %v3508_v62  ;;  %v1802_v7 = vld [vmem:[%s4754_s4 + $0x68] sm:$0xff] }
 0x37c   :  { %2641 = vmatmul.msk.f32.gmra.mxu0 %vm955_vm11, %v1799_v52  ;;  %v1648_v62 = vmul.f32 %v1632_v1, %v1632_v1 }
 0x37d   :  { %1677 = vrot.lane.b32.xlu1 %v1645_v4, %s2844_s28  ;;  %1545 = vrot.lane.b32.xlu2 %v1499_v42, %s2846_s30  ;;  %v1330_v16 = vmul.f32 %v1314_v15, %v1314_v15  ;;  %v1313_v23 = vadd.f32 %v3954_v20, %v1153_v10  ;;  %v1469_v20 = vadd.f32 %v3903_v14, %v4037_v61 }
 0x37e   :  { %1519 = vrot.lane.b32.xlu0 %v1486_v25, %s2846_s30  ;;  %v1649_v25 = vmul.f32 %v1633_v26, %v1633_v26 }
 0x37f   :  { %v1329_v29 = vmul.f32 %v1313_v23, %v1313_v23  ;;  %v1485_v52 = vmul.f32 %v1469_v20, %v1469_v20 }
 0x380   :  { %v4063_v33 = vpop.permute.xlu2 %1289 }
 0x384   :  { %2642 = vmatmul.msk.f32.gmra.mxu0 %vm955_vm11, %v1800_v2 }
 0x386   :  { %1679 = vrot.lane.b32.xlu0 %v1646_v53, %s2844_s28  ;;  %v1803_v53 = vld [vmem:[%s4754_s4 + $0x70] sm:$0xff] }
 0x388   :  { %v1528_v37 = vpop.permute.xlu2 %1527 }
 0x389   :  { %v4077_v9 = vadd.f32 %v1528_v37, %v1330_v16  ;;  %v1804_v37 = vld [vmem:[%s4754_s4 + $0x78] sm:$0xff] }
 0x38c   :  { %2643 = vmatmul.msk.f32.gmra.mxu0 %vm955_vm11, %v1801_v31 }
 0x390   :  { %v1534_v12 = vpop.permute.xlu2 %1533 }
 0x391   :  { %v4088_v56 = vadd.f32 %v1534_v12, %v1333_v39 }
 0x394   :  { %2644 = vmatmul.msk.f32.gmra.mxu0 %vm955_vm11, %v1802_v7 }
 0x396   :  { %v1452_v27 = vpop.permute.xlu0 %1451 }
 0x397   :  { %v1484_v17 = vadd.f32 %v1452_v27, %v3925_v3  ;;  %v1286_v3 = vpop.permute.xlu1 %1285  ;;  %v1158_v27 = vadd.f32 %v3742_v45, %v3540_v18 }
 0x398   :  { %v1321_v34 = vadd.f32 %v1286_v3, %v1161_v57  ;;  %v4863_v57 = vld [vmem:[#allocation55_spill] sm:$0xff] }
 0x399   :  { %v1500_v54 = vmul.f32 %v1484_v17, %v1484_v17  ;;  %v1163_v17 = vadd.f32 %v3795_v28, %v3623_v43  ;;  %v4861_v43 = vld [vmem:[#allocation56_spill] sm:$0xff] }
 0x39a   :  { %v1337_v39 = vmul.f32 %v1321_v34, %v1321_v34 }
 0x39b   :  { %1547 = vrot.lane.b32.xlu2 %v1500_v54, %s2846_s30  ;;  %v4859_v54 = vld [vmem:[#allocation60_spill] sm:$0xff]  ;;  %v1323_v13 = vadd.f32 %v4063_v33, %v1163_v17 }
 0x39c   :  { %2645 = vmatmul.msk.f32.gmra.mxu0 %vm955_vm11, %v1803_v53 }
 0x39d   :  { %v1339_v18 = vmul.f32 %v1323_v13, %v1323_v13 }
 0x39e   :  { %v1292_v35 = vpop.permute.xlu0 %1291 }
 0x39f   :  { %v4098_v38 = vadd.f32 %v1292_v35, %v1164_v51  ;;  %v1288_v41 = vpop.permute.xlu1 %1287  ;;  %v1318_v35 = vadd.f32 %v4086_v30, %v1158_v27  ;;  %v1730_v27 = vadd.f32 %v4039_v36, %v4077_v9 }
 0x3a1   :  { %v1334_v10 = vmul.f32 %v1318_v35, %v1318_v35 }
 0x3a3   :  { %1101 = vrot.lane.b32.xlu2 %v4102_v5, %s2846_s30 }
 0x3a4   :  { %2646 = vmatmul.msk.f32.gmra.mxu0 %vm955_vm11, %v1804_v37 }
 0x3a6   :  { %v4110_v60 = vpop.permute.xlu0 %1707 }
 0x3a7   :  { %v1540_v4 = vpop.permute.xlu2 %1539  ;;  %v1706_v49 = vpop.permute.xlu1 %1705 }
 0x3a8   :  { %v1576_v42 = vadd.f32 %v1540_v4, %v1336_v63 }
 0x3a9   :  { %v4143_v2 = vpop.f32.mrf.mxu0 }
 0x3aa   :  { %v1736_v46 = vadd.f32 %v1700_v32, %v1576_v42  ;;  %v4858_v32 = vld [vmem:[#allocation57_spill] sm:$0xff]  ;;  %v4860_v42 = vld [vmem:[#allocation48_spill] sm:$0xff] }
 0x3ab   :  { %1685 = vrot.lane.b32.xlu2 %v1649_v25, %s2844_s28  ;;  %v1162_v51 = vadd.f32 %v4859_v54, %v4858_v32  ;;  %v1155_v28 = vadd.f32 %v4861_v43, %v4860_v42  ;;  %v1340_v42 = vmul.f32 %v4098_v38, %v4098_v38 }
 0x3ac   :  { %v1752_v19 = vsub.f32 0.0, %v1736_v46 }
 0x3ad   :  { %v1322_v55 = vadd.f32 %v1288_v41, %v1162_v51  ;;  %v1315_v33 = vadd.f32 %v4052_v48, %v1155_v28 }
 0x3ae   :  { %v1779_v50 = vmul.f32 1.442695, %v1752_v19  ;;  %v1526_v40 = vpop.permute.xlu0 %1525 }
 0x3af   :  { %v4118_v15 = vadd.f32 %v1526_v40, %v1329_v29  ;;  %v1530_v16 = vpop.permute.xlu1 %1529  ;;  %v1338_v4 = vmul.f32 %v1322_v55, %v1322_v55  ;;  %v1331_v20 = vmul.f32 %v1315_v33, %v1315_v33 }
 0x3b0   :  { %2711 = vpow2.f32 %v1779_v50 }
 0x3b1   :  { %v4156_v63 = vpop.f32.mrf.mxu0  ;;  %v1571_v48 = vadd.f32 %v1530_v16, %v1331_v20 }
 0x3b3   :  { %1683 = vrot.lane.b32.xlu2 %v1648_v62, %s2844_s28  ;;  %v1733_v62 = vadd.f32 %v4073_v59, %v4088_v56  ;;  %v1731_v59 = vadd.f32 %v3968_v6, %v1571_v48 }
 0x3b5   :  { %v1747_v54 = vsub.f32 0.0, %v1731_v59  ;;  %v4871_v59 = vld [vmem:[#allocation53_spill] sm:$0xff] }
 0x3b6   :  { %v4127_v24 = vpop.eup %2711  ;;  %v4139_v14 = vpop.permute.xlu0 %1531 }
 0x3b7   :  { %1983 = vperm.xlu1 %2688, %v4127_v24   ;;  %v1536_v61 = vpop.permute.xlu1 %1535  ;;  %v1769_v13 = vmul.f32 1.442695, %v1747_v54 }
 0x3b8   :  { %v1574_v46 = vadd.f32 %v1536_v61, %v1334_v10  ;;  %v1749_v61 = vsub.f32 0.0, %v1733_v62 }
 0x3b9   :  { %v4170_v37 = vpop.f32.mrf.mxu0 }
 0x3ba   :  { %v1734_v41 = vadd.f32 %v3990_v44, %v1574_v46  ;;  %v4862_v44 = vld [vmem:[#allocation47_spill] sm:$0xff]  ;;  %v1773_v17 = vmul.f32 1.442695, %v1749_v61  ;;  %v4866_v46 = vld [vmem:[#allocation58_spill] sm:$0xff] }
 0x3bb   :  { %1517 = vrot.lane.b32.xlu2 %v1485_v52, %s2846_s30  ;;  %v1151_v34 = vadd.f32 %v4863_v57, %v4862_v44  ;;  %v4869_v44 = vld [vmem:[#allocation54_spill] sm:$0xff] }
 0x3be   :  { %v4145_v12 = vpop.permute.xlu0 %1537 }
 0x3c1   :  { %v4184_v6 = vpop.f32.mrf.mxu0 }
 0x3cf   :  { %v1542_v11 = vpop.permute.xlu1 %1541 }
 0x3d0   :  { %v1577_v31 = vadd.f32 %v1542_v11, %v1337_v39  ;;  %v4864_v39 = vld [vmem:[#allocation59_spill] sm:$0xff] }
 0x3d1   :  { %v1311_v11 = vadd.f32 %v4864_v39, %v1151_v34  ;;  %v4870_v34 = vld [vmem:[#allocation42_spill] sm:$0xff] }
 0x3d2   :  { %v1737_v3 = vadd.f32 %v4083_v8, %v1577_v31  ;;  %v1746_v31 = vsub.f32 0.0, %v1730_v27 }
 0x3d3   :  { %v1327_v51 = vmul.f32 %v1311_v11, %v1311_v11 }
 0x3d4   :  { %v1753_v26 = vsub.f32 0.0, %v1737_v3  ;;  %v1767_v36 = vmul.f32 1.442695, %v1746_v31 }
 0x3d6   :  { %v1781_v45 = vmul.f32 1.442695, %v1753_v26 }
 0x3d7   :  { %v1546_v25 = vpop.permute.xlu2 %1545  ;;  %v1544_v23 = vpop.permute.xlu0 %1543 }
 0x3d8   :  { %2713 = vpow2.f32 %v1781_v45  ;;  %v1579_v30 = vadd.f32 %v1546_v25, %v1339_v18  ;;  %v1578_v19 = vadd.f32 %v1544_v23, %v1338_v4  ;;  %v4160_v1 = vpop.permute.xlu1 %1523  ;;  %v4192_v18 = vpop.f32.mrf.mxu0  ;;  %v1335_v45 = vmul.f32 %v4000_v22, %v4000_v22  ;;  %v4865_v23 = vld [vmem:[#allocation52_spill] sm:$0xff] }
 0x3da   :  { %v1739_v8 = vadd.f32 %v1706_v49, %v1579_v30  ;;  %v1738_v29 = vadd.f32 %v4033_v47, %v1578_v19  ;;  %v1750_v49 = vsub.f32 0.0, %v1734_v41  ;;  %v1156_v30 = vadd.f32 %v4866_v46, %v4865_v23 }
 0x3db   :  { %v1575_v19 = vadd.f32 %v4145_v12, %v1335_v45 }
 0x3dc   :  { %v1755_v50 = vsub.f32 0.0, %v1739_v8  ;;  %v1754_v40 = vsub.f32 0.0, %v1738_v29  ;;  %v1775_v56 = vmul.f32 1.442695, %v1750_v49  ;;  %v1316_v22 = vadd.f32 %v3979_v21, %v1156_v30 }
 0x3dd   :  { %v1735_v38 = vadd.f32 %v3971_v0, %v1575_v19  ;;  %v4868_v0 = vld [vmem:[#allocation46_spill] sm:$0xff] }
 0x3de   :  { %v4167_v7 = vpop.eup %2713  ;;  %v1785_v52 = vmul.f32 1.442695, %v1755_v50  ;;  %v1783_v53 = vmul.f32 1.442695, %v1754_v40  ;;  %v1332_v40 = vmul.f32 %v1316_v22, %v1316_v22  ;;  %v1152_v57 = vadd.f32 %v4869_v44, %v4868_v0 }
 0x3df   :  { %1988 = vperm.xlu2 %2689, %v4167_v7   ;;  %v1264_v9 = vpop.permute.xlu0 %1263 }
 0x3e0   :  { %2715 = vpow2.f32 %v1785_v52  ;;  %v1522_v47 = vpop.permute.xlu1 %1521  ;;  %v4210_v20 = vpop.f32.mrf.mxu0  ;;  %v1572_v52 = vadd.f32 %v4139_v14, %v1332_v40  ;;  %v1312_v14 = vadd.f32 %v4021_v58, %v1152_v57  ;;  %v4283_v57 = vld [vmem:[%s4755_s5 + $0x38] sm:$0xff] }
 0x3e1   :  { %2717 = vpow2.f32 %v1783_v53  ;;  %v1567_v55 = vadd.f32 %v1522_v47, %v1327_v51  ;;  %v1751_v53 = vsub.f32 0.0, %v1735_v38 }
 0x3e2   :  { %2719 = vpow2.f32 %v1775_v56  ;;  %v1150_v56 = vadd.f32 %v4871_v59, %v4870_v34  ;;  %v1328_v51 = vmul.f32 %v1312_v14, %v1312_v14 }
 0x3e3   :  { %2721 = vpow2.f32 %v1773_v17  ;;  %v1777_v47 = vmul.f32 1.442695, %v1751_v53 }
 0x3e4   :  { %2723 = vpow2.f32 %v1769_v13  ;;  %v1310_v27 = vadd.f32 %v1264_v9, %v1150_v56  ;;  %v1568_v58 = vadd.f32 %v4160_v1, %v1328_v51 }
 0x3e5   :  { %2725 = vpow2.f32 %v1767_v36 }
 0x3e6   :  { %v4178_v32 = vpop.eup %2715 }
 0x3e7   :  { %v4180_v16 = vpop.eup %2717  ;;  %1998 = vperm.xlu0 %2690, %v4178_v32   ;;  %v1262_v29 = vpop.permute.xlu0 %1261 }
 0x3e8   :  { %1993 = vperm.xlu1 %2688, %v4180_v16   ;;  %v1682_v35 = vpop.permute.xlu1 %1681  ;;  %v4186_v26 = vpop.eup %2719 }
 0x3e9   :  { %v1727_v3 = vadd.f32 %v1682_v35, %v1567_v55  ;;  %v4188_v10 = vpop.eup %2721  ;;  %v4222_v17 = vpop.f32.mrf.mxu0  ;;  %v1326_v35 = vmul.f32 %v1310_v27, %v1310_v27 }
 0x3ea   :  { %v4198_v25 = vpop.eup %2723 }
 0x3eb   :  { %v1743_v4 = vsub.f32 0.0, %v1727_v3  ;;  %v4203_v8 = vpop.eup %2725 }
 0x3ed   :  { %v1761_v43 = vmul.f32 1.442695, %v1743_v4 }
 0x3ef   :  { %1973 = vperm.xlu0 %2690, %v4186_v26   ;;  %2727 = vpow2.f32 %v1761_v43 }
 0x3f0   :  { %1968 = vperm.xlu1 %2688, %v4188_v10   ;;  %v1520_v21 = vpop.permute.xlu0 %1519  ;;  %v1678_v30 = vpop.permute.xlu1 %1677 }
 0x3f1   :  { %v1566_v3 = vadd.f32 %v1520_v21, %v1326_v35  ;;  %v4231_v43 = vpop.f32.mrf.mxu0 }
 0x3f5   :  { %v1548_v28 = vpop.permute.xlu2 %1547  ;;  %v4213_v48 = vpop.eup %2727 }
 0x3f6   :  { %v1580_v33 = vadd.f32 %v1548_v28, %v1340_v42 }
 0x3f7   :  { %1958 = vperm.xlu0 %2690, %v4198_v25  }
 0x3f8   :  { %v1740_v41 = vadd.f32 %v4110_v60, %v1580_v33  ;;  %1953 = vperm.xlu1 %2688, %v4203_v8   ;;  %v4867_v60 = vld [vmem:[#allocation61_spill] sm:$0xff]  ;;  %v1680_v55 = vpop.permute.xlu0 %1679 }
 0x3f9   :  { %v1732_v49 = vadd.f32 %v4867_v60, %v1572_v52  ;;  %v1894_v22 = vpop.f32.mrf.mxu0  ;;  %v4259_v52 = vld [vmem:[%s4755_s5 + $0x18] sm:$0xff]  ;;  %v4271_v60 = vld [vmem:[%s4755_s5 + $0x28] sm:$0xff] }
 0x3fa   :  { %v1756_v50 = vsub.f32 0.0, %v1740_v41 }
 0x3fb   :  { %v1748_v11 = vsub.f32 0.0, %v1732_v49 }
 0x3fc   :  { %v1787_v62 = vmul.f32 1.442695, %v1756_v50  ;;  %v4247_v50 = vld [vmem:[%s4755_s5 + $0x8] sm:$0xff] }
 0x3fd   :  { %v1102_v12 = vpop.permute.xlu2 %1101  ;;  %v1771_v31 = vmul.f32 1.442695, %v1748_v11 }
 0x3fe   :  { %2729 = vpow2.f32 %v1787_v62  ;;  %v1149_v9 = vadd.f32 %v1102_v12, %v4102_v5  ;;  %v4253_v62 = vld [vmem:[%s4755_s5 + $0x10] sm:$0xff] }
 0x3ff   :  { %2731 = vpow2.f32 %v1777_v47  ;;  %v4277_v47 = vld [vmem:[%s4755_s5 + $0x30] sm:$0xff] }
 0x400   :  { %1938 = vperm.xlu1 %2688, %v4213_v48   ;;  %2733 = vpow2.f32 %v1771_v31  ;;  %v1309_v45 = vadd.f32 %v1262_v29, %v1149_v9 }
 0x402   :  { %v1325_v28 = vmul.f32 %v1309_v45, %v1309_v45 }
 0x404   :  { %v2730_v61 = vpop.eup %2729 }
 0x405   :  { %v1686_v39 = vpop.permute.xlu2 %1685  ;;  %2063 = vmatpush.msrb.mxu2 %v2730_v61  ;;  %2003 = vperm.xlu2 %2689, %v2730_v61   ;;  %v2732_v36 = vpop.eup %2731 }
 0x406   :  { %v1729_v54 = vadd.f32 %v1686_v39, %v4118_v15  ;;  %v1726_v15 = vadd.f32 %v1680_v55, %v1566_v3  ;;  %v2734_v5 = vpop.eup %2733 }
 0x407   :  { %2064 = vmatpush.msrb.mxu2 %v4178_v32 }
 0x408   :  { %v1745_v13 = vsub.f32 0.0, %v1729_v54 }
 0x409   :  { %2065 = vmatpush.msrb.mxu2 %v4180_v16 }
 0x40a   :  { %v1765_v16 = vmul.f32 1.442695, %v1745_v13 }
 0x40b   :  { %2066 = vmatpush.msrb.mxu2 %v4167_v7  ;;  %v1742_v7 = vsub.f32 0.0, %v1726_v15 }
 0x40c   :  { %2735 = vpow2.f32 %v1765_v16 }
 0x40d   :  { %v1684_v4 = vpop.permute.xlu2 %1683  ;;  %1978 = vperm.xlu2 %2689, %v2732_v36   ;;  %2067 = vmatpush.msrb.mxu2 %v4127_v24  ;;  %v1759_v23 = vmul.f32 1.442695, %v1742_v7 }
 0x40e   :  { %v1728_v32 = vadd.f32 %v1684_v4, %v1568_v58 }
 0x40f   :  { %2068 = vmatpush.msrb.mxu2 %v2732_v36 }
 0x410   :  { %v1744_v42 = vsub.f32 0.0, %v1728_v32 }
 0x411   :  { %2069 = vmatpush.msrb.mxu2 %v4186_v26 }
 0x412   :  { %v1763_v1 = vmul.f32 1.442695, %v1744_v42  ;;  %v2736_v33 = vpop.eup %2735 }
 0x413   :  { %2070 = vmatpush.msrb.mxu2 %v4188_v10 }
 0x414   :  { %2737 = vpow2.f32 %v1763_v1 }
 0x415   :  { %v1518_v24 = vpop.permute.xlu2 %1517  ;;  %1963 = vperm.xlu2 %2689, %v2734_v5   ;;  %2071 = vmatpush.msrb.mxu2 %v2734_v5  ;;  %2739 = vpow2.f32 %v1759_v23 }
 0x416   :  { %v1565_v46 = vadd.f32 %v1518_v24, %v1325_v28 }
 0x417   :  { %2072 = vmatpush.msrb.mxu2 %v4198_v25  ;;  %v4241_v25 = vld [vmem:[%s4755_s5] sm:$0xff] }
 0x418   :  { %v1725_v19 = vadd.f32 %v1678_v30, %v1565_v46 }
 0x419   :  { %2073 = vmatpush.msrb.mxu2 %v4203_v8  ;;  %v1897_v8 = vpop.f32.mrf.mxu0 }
 0x41a   :  { %v2738_v26 = vpop.eup %2737  ;;  %v1741_v29 = vsub.f32 0.0, %v1725_v19 }
 0x41b   :  { %2074 = vmatpush.msrb.mxu2 %v2736_v33  ;;  %1943 = vperm.xlu0 %2690, %v2738_v26   ;;  %v2740_v41 = vpop.eup %2739 }
 0x41c   :  { %v1757_v10 = vmul.f32 1.442695, %v1741_v29 }
 0x41d   :  { %1948 = vperm.xlu2 %2689, %v2736_v33   ;;  %2075 = vmatpush.msrb.mxu2 %v2738_v26 }
 0x41e   :  { %2741 = vpow2.f32 %v1757_v10 }
 0x41f   :  { %2076 = vmatpush.msrb.mxu2 %v4213_v48  ;;  %v4265_v48 = vld [vmem:[%s4755_s5 + $0x20] sm:$0xff]  ;;  %s2851_s5 = smov 4  }
 0x421   :  { %2077 = vmatpush.msrb.mxu2 %v2740_v41  ;;  %v1900_v40 = vpop.f32.mrf.mxu0 }
 0x424   :  { %v2742_v38 = vpop.eup %2741 }
 0x425   :  { %1933 = vperm.xlu2 %2689, %v2740_v41   ;;  %1928 = vperm.xlu0 %2690, %v2742_v38  }
 0x426   :  { %2078 = vmatpush.msrb.mxu2 %v2742_v38 }
 0x427   :  { %2079 = vmatmul.f32.vlgmr.msrb.gmra.mxu2 %v4241_v25 }
 0x429   :  { %v1903_v12 = vpop.f32.mrf.mxu0  ;;  %v1984_v61 = vpop.permute.xlu1 %1983 }
 0x42a   :  { %v2017_v35 = vmul.f32 %v1984_v61, %v1903_v12  ;;  %v4876_v61 = vld [vmem:[#allocation24_spill] sm:$0xff] }
 0x42f   :  { %2082 = vmatmul.f32.gmra.mxu2 %v4247_v50 }
 0x431   :  { %v1906_v53 = vpop.f32.mrf.mxu0 }
 0x437   :  { %2085 = vmatmul.f32.gmra.mxu2 %v4253_v62 }
 0x439   :  { %v1909_v21 = vpop.f32.mrf.mxu0  ;;  %v1989_v0 = vpop.permute.xlu2 %1988 }
 0x43a   :  { %v2018_v54 = vmul.f32 %v1989_v0, %v1906_v53  ;;  %v4877_v0 = vld [vmem:[#allocation45_spill] sm:$0xff] }
 0x43f   :  { %2088 = vmatmul.f32.gmra.mxu2 %v4259_v52 }
 0x441   :  { %v1912_v49 = vpop.f32.mrf.mxu0 }
 0x447   :  { %2091 = vmatmul.f32.gmra.mxu2 %v4265_v48 }
 0x449   :  { %v1915_v59 = vpop.f32.mrf.mxu0 }
 0x44f   :  { %2094 = vmatmul.f32.gmra.mxu2 %v4271_v60 }
 0x457   :  { %2097 = vmatmul.f32.gmra.mxu2 %v4277_v47 }
 0x459   :  { %v1999_v44 = vpop.permute.xlu0 %1998 }
 0x45a   :  { %v1994_v34 = vpop.permute.xlu1 %1993  ;;  %v2020_v14 = vmul.f32 %v1999_v44, %v1912_v49  ;;  %v4314_v44 = vadd.f32 %v4877_v0, %v4876_v61  ;;  %v2786_v0 = vld [vmem:[%s4750_s0 + $0x18] sm:$0xff] }
 0x45b   :  { %v2019_v11 = vmul.f32 %v1994_v34, %v1909_v21  ;;  %v4874_v21 = vld [vmem:[#allocation13_spill] sm:$0xff]  ;;  %v4879_v34 = vld [vmem:[#allocation44_spill] sm:$0xff] }
 0x45f   :  { %2100 = vmatmul.f32.gmra.mxu2 %v4283_v57  ;;  %v2004_v56 = vpop.permute.xlu2 %2003 }
 0x460   :  { %v2021_v39 = vmul.f32 %v2004_v56, %v1915_v59  ;;  %v4880_v56 = vld [vmem:[#allocation19_spill] sm:$0xff] }
 0x461   :  { %v1974_v27 = vpop.permute.xlu0 %1973 }
 0x462   :  { %2022 = vmatpush.msrb.mxu1 %v2021_v39  ;;  %v1969_v51 = vpop.permute.xlu1 %1968  ;;  %v2015_v13 = vmul.f32 %v1974_v27, %v1897_v8  ;;  %v4881_v39 = vld [vmem:[#allocation43_spill] sm:$0xff] }
 0x463   :  { %v2014_v36 = vmul.f32 %v1969_v51, %v1894_v22  ;;  %v4883_v27 = vld [vmem:[#allocation51_spill] sm:$0xff] }
 0x464   :  { %2023 = vmatpush.msrb.mxu1 %v2020_v14  ;;  %v4326_v14 = vadd.f32 %v4881_v39, %v4880_v56  ;;  %v4884_v51 = vld [vmem:[#allocation27_spill] sm:$0xff] }
 0x466   :  { %2024 = vmatpush.msrb.mxu1 %v2019_v11  ;;  %v4882_v11 = vld [vmem:[#allocation35_spill] sm:$0xff] }
 0x467   :  { %v1979_v31 = vpop.permute.xlu2 %1978 }
 0x468   :  { %2025 = vmatpush.msrb.mxu1 %v2018_v54  ;;  %v2016_v55 = vmul.f32 %v1979_v31, %v1900_v40  ;;  %v4872_v40 = vld [vmem:[#allocation15_spill] sm:$0xff]  ;;  %v4330_v54 = vadd.f32 %v4883_v27, %v4882_v11  ;;  %v4885_v31 = vld [vmem:[#allocation49_spill] sm:$0xff] }
 0x469   :  { %v1959_v58 = vpop.permute.xlu0 %1958 }
 0x46a   :  { %2026 = vmatpush.msrb.mxu1 %v2017_v35  ;;  %v1954_v4 = vpop.permute.xlu1 %1953  ;;  %v2012_v15 = vmul.f32 %v1959_v58, %v4222_v17  ;;  %v4340_v35 = vadd.f32 %v4885_v31, %v4884_v51  ;;  %v2287_v58 = vld [vmem:[%s4762_s12 + $0x78] sm:$0xff] }
 0x46b   :  { %v2011_v32 = vmul.f32 %v1954_v4, %v4210_v20  ;;  %v2285_v4 = vld [vmem:[%s4762_s12 + $0x68] sm:$0xff] }
 0x46c   :  { %2027 = vmatpush.msrb.mxu1 %v2016_v55  ;;  %v4886_v55 = vld [vmem:[#allocation26_spill] sm:$0xff] }
 0x46e   :  { %2028 = vmatpush.msrb.mxu1 %v2015_v13  ;;  %v4887_v13 = vld [vmem:[#allocation50_spill] sm:$0xff] }
 0x46f   :  { %v1964_v3 = vpop.permute.xlu2 %1963 }
 0x470   :  { %v2013_v9 = vmul.f32 %v1964_v3, %v4231_v43  ;;  %2029 = vmatpush.msrb.mxu1 %v2014_v36  ;;  %v4344_v36 = vadd.f32 %v4887_v13, %v4886_v55  ;;  %v2286_v3 = vld [vmem:[%s4762_s12 + $0x70] sm:$0xff] }
 0x472   :  { %2030 = vmatpush.msrb.mxu1 %v2013_v9  ;;  %v1939_v42 = vpop.permute.xlu1 %1938  ;;  %v2303_v9 = vld [vmem:[%s4762_s12 + $0xf8] sm:$0xff] }
 0x473   :  { %v2008_v43 = vmul.f32 %v1939_v42, %v4170_v37  ;;  %2655 = vmatpush.msrb.mxu3 %v2303_v9  ;;  %2349 = vmatpush.msra.mxu0 %v2303_v9  ;;  %v2282_v42 = vld [vmem:[%s4762_s12 + $0x50] sm:$0xff] }
 0x474   :  { %2031 = vmatpush.msrb.mxu1 %v2012_v15  ;;  %v2284_v15 = vld [vmem:[%s4762_s12 + $0x60] sm:$0xff] }
 0x476   :  { %2032 = vmatpush.msrb.mxu1 %v2011_v32  ;;  %v2302_v32 = vld [vmem:[%s4762_s12 + $0xf0] sm:$0xff] }
 0x477   :  { %v1949_v16 = vpop.permute.xlu2 %1948  ;;  %2656 = vmatpush.msrb.mxu3 %v2302_v32  ;;  %2350 = vmatpush.msra.mxu0 %v2302_v32 }
 0x478   :  { %v2010_v45 = vmul.f32 %v1949_v16, %v4192_v18  ;;  %v2283_v16 = vld [vmem:[%s4762_s12 + $0x58] sm:$0xff] }
 0x47a   :  { %2033 = vmatpush.msrb.mxu1 %v2010_v45  ;;  %v2301_v45 = vld [vmem:[%s4762_s12 + $0xe8] sm:$0xff] }
 0x47b   :  { %2657 = vmatpush.msrb.mxu3 %v2301_v45  ;;  %2351 = vmatpush.msra.mxu0 %v2301_v45 }
 0x47f   :  { %v1934_v5 = vpop.permute.xlu2 %1933 }
 0x480   :  { %v2007_v28 = vmul.f32 %v1934_v5, %v4156_v63  ;;  %v2299_v5 = vld [vmem:[%s4762_s12 + $0xd8] sm:$0xff] }
 0x48d   :  { %v1944_v7 = vpop.permute.xlu0 %1943 }
 0x48e   :  { %v2009_v1 = vmul.f32 %v1944_v7, %v4184_v6  ;;  %v2300_v7 = vld [vmem:[%s4762_s12 + $0xe0] sm:$0xff] }
 0x48f   :  { %2658 = vmatpush.msrb.mxu3 %v2300_v7  ;;  %2352 = vmatpush.msra.mxu0 %v2300_v7 }
 0x490   :  { %2034 = vmatpush.msrb.mxu1 %v2009_v1  ;;  %v2281_v1 = vld [vmem:[%s4762_s12 + $0x48] sm:$0xff] }
 0x491   :  { %2659 = vmatpush.msrb.mxu3 %v2299_v5  ;;  %2353 = vmatpush.msra.mxu0 %v2299_v5 }
 0x492   :  { %2035 = vmatpush.msrb.mxu1 %v2008_v43  ;;  %v2280_v43 = vld [vmem:[%s4762_s12 + $0x40] sm:$0xff] }
 0x494   :  { %2036 = vmatpush.msrb.mxu1 %v2007_v28  ;;  %v2298_v28 = vld [vmem:[%s4762_s12 + $0xd0] sm:$0xff] }
 0x495   :  { %2660 = vmatpush.msrb.mxu3 %v2298_v28  ;;  %2354 = vmatpush.msra.mxu0 %v2298_v28 }
 0x497   :  { %v1929_v17 = vpop.permute.xlu0 %1928 }
 0x498   :  { %v2006_v20 = vmul.f32 %v1929_v17, %v4143_v2  ;;  %v2279_v17 = vld [vmem:[%s4762_s12 + $0x38] sm:$0xff] }
 0x49a   :  { %2037 = vmatpush.msrb.mxu1 %v2006_v20  ;;  %v2297_v20 = vld [vmem:[%s4762_s12 + $0xc8] sm:$0xff] }
 0x49b   :  { %2038 = vmatmul.f32.vlgmr.msrb.gmra.mxu1 %v4241_v25  ;;  %2661 = vmatpush.msrb.mxu3 %v2297_v20 }
 0x49c   :  { %2308 = vmatpush.msra.mxu1 %v2287_v58  ;;  %2355 = vmatpush.msra.mxu0 %v2297_v20 }
 0x49e   :  { %2309 = vmatpush.msra.mxu1 %v2286_v3 }
 0x4a0   :  { %2310 = vmatpush.msra.mxu1 %v2285_v4 }
 0x4a2   :  { %2311 = vmatpush.msra.mxu1 %v2284_v15  ;;  %v2787_v15 = vld [vmem:[%s4750_s0 + $0x20] sm:$0xff] }
 0x4a3   :  { %2041 = vmatmul.f32.gmra.mxu1 %v4247_v50 }
 0x4a4   :  { %2312 = vmatpush.msra.mxu1 %v2283_v16 }
 0x4a6   :  { %2313 = vmatpush.msra.mxu1 %v2282_v42 }
 0x4a8   :  { %2314 = vmatpush.msra.mxu1 %v2281_v1 }
 0x4aa   :  { %v2080_v18 = vpop.f32.mrf.mxu2  ;;  %2315 = vmatpush.msra.mxu1 %v2280_v43 }
 0x4ab   :  { %2044 = vmatmul.f32.gmra.mxu1 %v4253_v62  ;;  %v2081_v22 = vadd.f32 1.0, %v2080_v18  ;;  %v4873_v62 = vld [vmem:[#allocation34_spill] sm:$0xff] }
 0x4ac   :  { %v4304_v12 = vmul.f32 %v4873_v62, %v4872_v40  ;;  %2316 = vmatpush.msra.mxu1 %v2279_v17  ;;  %v2278_v18 = vld [vmem:[%s4762_s12 + $0x30] sm:$0xff] }
 0x4ad   :  { %v2104_v38 = vadd.f32 1e-05, %v2081_v22  ;;  %v2290_v22 = vld [vmem:[%s4762_s12 + $0x90] sm:$0xff] }
 0x4ae   :  { %2317 = vmatpush.msra.mxu1 %v2278_v18 }
 0x4b2   :  { %v2083_v6 = vpop.f32.mrf.mxu2 }
 0x4b3   :  { %v2084_v24 = vadd.f32 1.0, %v2083_v6  ;;  %2047 = vmatmul.f32.gmra.mxu1 %v4259_v52  ;;  %v2296_v6 = vld [vmem:[%s4762_s12 + $0xc0] sm:$0xff] }
 0x4b4   :  { %2662 = vmatpush.msrb.mxu3 %v2296_v6  ;;  %2356 = vmatpush.msra.mxu0 %v2296_v6  ;;  %v4476_v6 = vld [vmem:[%s4750_s0 + $0x28] sm:$0xff] }
 0x4b5   :  { %v2105_v37 = vadd.f32 1e-05, %v2084_v24  ;;  %v2277_v24 = vld [vmem:[%s4762_s12 + $0x28] sm:$0xff] }
 0x4b6   :  { %2318 = vmatpush.msra.mxu1 %v2277_v24 }
 0x4b7   :  { %2119 = vperm.xlu1 %2688, %v2105_v37   ;;  %v2295_v37 = vld [vmem:[%s4762_s12 + $0xb8] sm:$0xff] }
 0x4b8   :  { %2663 = vmatpush.msrb.mxu3 %v2295_v37  ;;  %2357 = vmatpush.msra.mxu0 %v2295_v37 }
 0x4ba   :  { %v2086_v63 = vpop.f32.mrf.mxu2 }
 0x4bb   :  { %v2087_v23 = vadd.f32 1.0, %v2086_v63  ;;  %2050 = vmatmul.f32.gmra.mxu1 %v4265_v48  ;;  %v2276_v63 = vld [vmem:[%s4762_s12 + $0x20] sm:$0xff] }
 0x4bc   :  { %2319 = vmatpush.msra.mxu1 %v2276_v63 }
 0x4bd   :  { %v2106_v46 = vadd.f32 1e-05, %v2087_v23  ;;  %v2294_v23 = vld [vmem:[%s4762_s12 + $0xb0] sm:$0xff] }
 0x4be   :  { %2664 = vmatpush.msrb.mxu3 %v2294_v23  ;;  %2358 = vmatpush.msra.mxu0 %v2294_v23 }
 0x4bf   :  { %2124 = vperm.xlu2 %2689, %v2106_v46   ;;  %v2275_v46 = vld [vmem:[%s4762_s12 + $0x18] sm:$0xff] }
 0x4c0   :  { %2320 = vmatpush.msra.mxu1 %v2275_v46 }
 0x4c2   :  { %v2089_v2 = vpop.f32.mrf.mxu2 }
 0x4c3   :  { %v2090_v30 = vadd.f32 1.0, %v2089_v2  ;;  %2053 = vmatmul.f32.gmra.mxu1 %v4271_v60  ;;  %v4875_v60 = vld [vmem:[#allocation33_spill] sm:$0xff] }
 0x4c4   :  { %v4310_v49 = vmul.f32 %v4875_v60, %v4874_v21  ;;  %v2293_v2 = vld [vmem:[%s4762_s12 + $0xa8] sm:$0xff] }
 0x4c5   :  { %v2107_v19 = vadd.f32 1e-05, %v2090_v30  ;;  %2665 = vmatpush.msrb.mxu3 %v2293_v2  ;;  %v2274_v30 = vld [vmem:[%s4762_s12 + $0x10] sm:$0xff]  ;;  %2359 = vmatpush.msra.mxu0 %v2293_v2 }
 0x4c6   :  { %2321 = vmatpush.msra.mxu1 %v2274_v30 }
 0x4c7   :  { %2129 = vperm.xlu0 %2690, %v2107_v19   ;;  %v2292_v19 = vld [vmem:[%s4762_s12 + $0xa0] sm:$0xff] }
 0x4c8   :  { %2666 = vmatpush.msrb.mxu3 %v2292_v19  ;;  %2360 = vmatpush.msra.mxu0 %v2292_v19 }
 0x4ca   :  { %v2092_v33 = vpop.f32.mrf.mxu2 }
 0x4cb   :  { %v2093_v26 = vadd.f32 1.0, %v2092_v33  ;;  %2056 = vmatmul.f32.gmra.mxu1 %v4277_v47  ;;  %v2273_v33 = vld [vmem:[%s4762_s12 + $0x8] sm:$0xff] }
 0x4cc   :  { %2322 = vmatpush.msra.mxu1 %v2273_v33 }
 0x4cd   :  { %v2108_v29 = vadd.f32 1e-05, %v2093_v26  ;;  %v2291_v26 = vld [vmem:[%s4762_s12 + $0x98] sm:$0xff] }
 0x4ce   :  { %2667 = vmatpush.msrb.mxu3 %v2291_v26  ;;  %2361 = vmatpush.msra.mxu0 %v2291_v26 }
 0x4cf   :  { %2134 = vperm.xlu1 %2688, %v2108_v29   ;;  %v2272_v29 = vld [vmem:[%s4762_s12] sm:$0xff] }
 0x4d0   :  { %2323 = vmatpush.msra.mxu1 %v2272_v29  ;;  %2668 = vmatpush.msrb.mxu3 %v2290_v22 }
 0x4d1   :  { %2362 = vmatpush.msra.mxu0 %v2290_v22 }
 0x4d2   :  { %v2095_v10 = vpop.f32.mrf.mxu2 }
 0x4d3   :  { %v2096_v41 = vadd.f32 1.0, %v2095_v10  ;;  %2059 = vmatmul.f32.gmra.mxu1 %v4283_v57  ;;  %v4878_v57 = vld [vmem:[#allocation17_spill] sm:$0xff]  ;;  %v4443_v10 = vld [vmem:[%s4750_s0] sm:$0xff] }
 0x4d4   :  { %v4322_v59 = vmul.f32 %v4879_v34, %v4878_v57 }
 0x4d5   :  { %v2109_v25 = vadd.f32 1e-05, %v2096_v41  ;;  %v2289_v41 = vld [vmem:[%s4762_s12 + $0x88] sm:$0xff] }
 0x4d6   :  { %2669 = vmatpush.msrb.mxu3 %v2289_v41  ;;  %2363 = vmatpush.msra.mxu0 %v2289_v41 }
 0x4d7   :  { %2139 = vperm.xlu2 %2689, %v2109_v25   ;;  %2114 = vperm.xlu1 %2688, %v2104_v38   ;;  %v2288_v38 = vld [vmem:[%s4762_s12 + $0x80] sm:$0xff] }
 0x4d8   :  { %2670 = vmatpush.msrb.mxu3 %v2288_v38  ;;  %2364 = vmatpush.msra.mxu0 %v2288_v38 }
 0x4da   :  { %v2098_v8 = vpop.f32.mrf.mxu2 }
 0x4db   :  { %v2099_v50 = vadd.f32 1.0, %v2098_v8  ;;  %2324 = vmatmul.f32.vlgmr.msra.gmra.mxu1 %v4443_v10 }
 0x4dd   :  { %v2110_v52 = vadd.f32 1e-05, %v2099_v50  ;;  %v2784_v50 = vld [vmem:[%s4750_s0 + $0x8] sm:$0xff] }
 0x4df   :  { %2144 = vperm.xlu0 %2690, %v2110_v52   ;;  %605 = vrot.lane.b32.xlu1 %v4304_v12, %s2846_s30 }
 0x4e2   :  { %v2101_v53 = vpop.f32.mrf.mxu2 }
 0x4e3   :  { %v2102_v48 = vadd.f32 1.0, %v2101_v53  ;;  %2327 = vmatmul.f32.gmra.mxu1 %v2784_v50  ;;  %v2785_v53 = vld [vmem:[%s4750_s0 + $0x10] sm:$0xff] }
 0x4e5   :  { %v2111_v47 = vadd.f32 1e-05, %v2102_v48 }
 0x4e7   :  { %603 = vrot.lane.b32.xlu0 %v4310_v49, %s2846_s30  ;;  %2149 = vperm.xlu2 %2689, %v2111_v47  }
 0x4e8   :  { %635 = vrot.lane.b32.xlu1 %v4314_v44, %s2851_s5 }
 0x4eb   :  { %2330 = vmatmul.f32.gmra.mxu1 %v2785_v53 }
 0x4ef   :  { %633 = vrot.lane.b32.xlu0 %v4326_v14, %s2851_s5  ;;  %607 = vrot.lane.b32.xlu2 %v4322_v59, %s2846_s30 }
 0x4f0   :  { %641 = vrot.lane.b32.xlu1 %v4330_v54, %s2851_s5 }
 0x4f3   :  { %2333 = vmatmul.f32.gmra.mxu1 %v2786_v0 }
 0x4f7   :  { %639 = vrot.lane.b32.xlu0 %v4344_v36, %s2851_s5  ;;  %637 = vrot.lane.b32.xlu2 %v4340_v35, %s2851_s5 }
 0x4fb   :  { %2336 = vmatmul.f32.gmra.mxu1 %v2787_v15 }
 0x503   :  { %2339 = vmatmul.f32.gmra.mxu1 %v4476_v6 }
 0x518   :  { %v4452_v25 = vpop.f32.mrf.mxu1 }
 0x519   :  { %v2125_v8 = vpop.permute.xlu2 %2124 }
 0x51a   :  { %2743 = vrcp.f32 %v2125_v8  ;;  %v2193_v4 = vand.u32 2147483648, %v2125_v8  ;;  %vm2187_vm5 = vweird.f32 %v2125_v8  ;;  %v2191_v16 = vand.u32 2147483647, %v2125_v8 }
 0x51c   :  { %v2194_v7 = vor.u32 1.1754944e-38, %v2193_v4  ;;  %vm2192_vm7 = vcmp.eq.f32.partialorder %v2191_v16, 8.507059e+37 }
 0x520   :  { %v2042_v40 = vpop.f32.mrf.mxu1  ;;  %v2744_v52 = vpop.eup %2743 }
 0x521   :  { %v2183_v48 = vmul.f32 %v2744_v52, %v2125_v8  ;;  %v2043_v27 = vadd.f32 %v2784_v50, %v2042_v40  ;;  %vm2188_vm4 = vweird.f32 %v2744_v52 }
 0x522   :  { %vm2189_vm6 = vmor %vm2187_vm5, %vm2188_vm4 }
 0x523   :  { %v2184_v60 = vsub.f32 1.0, %v2183_v48 }
 0x525   :  { %v2185_v56 = vmul.f32 %v2744_v52, %v2184_v60 }
 0x527   :  { %v2186_v3 = vadd.f32 %v2744_v52, %v2185_v56 }
 0x528   :  { %v2045_v61 = vpop.f32.mrf.mxu1 }
 0x529   :  { %v2120_v62 = vpop.permute.xlu1 %2119  ;;  %v2190_v42 = vsel %vm2189_vm6, %v2744_v52, %v2186_v3  ;;  %v2046_v1 = vadd.f32 %v2785_v53, %v2045_v61 }
 0x52a   :  { %2745 = vrcp.f32 %v2120_v62  ;;  %v2178_v34 = vand.u32 2147483648, %v2120_v62  ;;  %v2176_v11 = vand.u32 2147483647, %v2120_v62  ;;  %vm2172_vm1 = vweird.f32 %v2120_v62 }
 0x52b   :  { %v2195_v43 = vsel %vm2192_vm7, %v2194_v7, %v2190_v42 }
 0x52c   :  { %v2179_v31 = vor.u32 1.1754944e-38, %v2178_v34  ;;  %vm2177_vm3 = vcmp.eq.f32.partialorder %v2176_v11, 8.507059e+37  ;;  %v2196_v37 = vmul.f32 %v2195_v43, %v2046_v1 }
 0x530   :  { %v2746_v21 = vpop.eup %2745  ;;  %v2048_v45 = vpop.f32.mrf.mxu1 }
 0x531   :  { %v2168_v47 = vmul.f32 %v2746_v21, %v2120_v62  ;;  %vm2173_vm0 = vweird.f32 %v2746_v21  ;;  %v4463_v55 = vpop.permute.xlu2 %2139  ;;  %v2049_v33 = vadd.f32 %v2786_v0, %v2048_v45  ;;  %v4490_v62 = vld [vmem:[%s4750_s0 + $0x30] sm:$0xff]  ;;  %v4888_v45 = vld [vmem:[#allocation25_spill] sm:$0xff] }
 0x532   :  { %vm2174_vm2 = vmor %vm2172_vm1, %vm2173_vm0  ;;  %2342 = vmatmul.f32.gmra.mxu1 %v4490_v62  ;;  %v2236_v7 = vand.u32 2147483647, %v4463_v55 }
 0x533   :  { %v2169_v57 = vsub.f32 1.0, %v2168_v47 }
 0x534   :  { %vm2237_vm7 = vcmp.eq.f32.partialorder %v2236_v7, 8.507059e+37  ;;  %v4902_v7 = vld [vmem:[#allocation12_spill] sm:$0xff] }
 0x535   :  { %v2170_v39 = vmul.f32 %v2746_v21, %v2169_v57 }
 0x537   :  { %v2171_v51 = vadd.f32 %v2746_v21, %v2170_v39 }
 0x538   :  { %v2051_v2 = vpop.f32.mrf.mxu1 }
 0x539   :  { %v2130_v13 = vpop.permute.xlu0 %2129  ;;  %v2175_v58 = vsel %vm2174_vm2, %v2746_v21, %v2171_v51  ;;  %v2052_v0 = vadd.f32 %v2787_v15, %v2051_v2  ;;  %vm2232_vm2 = vweird.f32 %v4463_v55 }
 0x53a   :  { %2747 = vrcp.f32 %v2130_v13  ;;  %v2180_v9 = vsel %vm2177_vm3, %v2179_v31, %v2175_v58  ;;  %v2208_v46 = vand.u32 2147483648, %v2130_v13  ;;  %v2206_v30 = vand.u32 2147483647, %v2130_v13  ;;  %v4507_v58 = vld [vmem:[%s4750_s0 + $0x38] sm:$0xff]  ;;  %s2853_s0 = smov 5  }
 0x53b   :  { %v2181_v32 = vmul.f32 %v2180_v9, %v2043_v27  ;;  %2749 = vrcp.f32 %v4463_v55  ;;  %vm2202_vm9 = vweird.f32 %v2130_v13  ;;  %2345 = vmatmul.f32.gmra.mxu1 %v4507_v58 }
 0x53c   :  { %v2209_v8 = vor.u32 1.1754944e-38, %v2208_v46  ;;  %vm2207_vm11 = vcmp.eq.f32.partialorder %v2206_v30, 8.507059e+37 }
 0x53d   :  { %2368 = vmatmul.f32.vlgmr.msrb.gmra.mxu3 %v2181_v32  ;;  %v2238_v32 = vand.u32 2147483648, %v4463_v55 }
 0x540   :  { %v2748_v5 = vpop.eup %2747  ;;  %v2054_v57 = vpop.f32.mrf.mxu1 }
 0x541   :  { %v2198_v28 = vmul.f32 %v2748_v5, %v2130_v13  ;;  %v4469_v17 = vpop.permute.xlu2 %2149  ;;  %v2135_v20 = vpop.permute.xlu1 %2134  ;;  %vm2203_vm8 = vweird.f32 %v2748_v5 }
 0x542   :  { %v4471_v18 = vpop.eup %2749  ;;  %2751 = vrcp.f32 %v2135_v20  ;;  %vm2204_vm10 = vmor %vm2202_vm9, %vm2203_vm8  ;;  %v2221_v47 = vand.u32 2147483647, %v2135_v20  ;;  %vm2217_vm14 = vweird.f32 %v2135_v20 }
 0x543   :  { %v2199_v24 = vsub.f32 1.0, %v2198_v28  ;;  %v2228_v63 = vmul.f32 %v4471_v18, %v4463_v55  ;;  %vm2233_vm0 = vweird.f32 %v4471_v18 }
 0x544   :  { %vm2222_vm1 = vcmp.eq.f32.partialorder %v2221_v47, 8.507059e+37  ;;  %vm4526_vm4 = vmor %vm2232_vm2, %vm2233_vm0  ;;  %vm690_vm2 = vcmask 56368  }
 0x545   :  { %v2200_v23 = vmul.f32 %v2748_v5, %v2199_v24  ;;  %2371 = vmatmul.f32.gmra.mxu3 %v2196_v37  ;;  %v2229_v29 = vsub.f32 1.0, %v2228_v63  ;;  %v2040_v37 = vadd.f32 %v4443_v10, %v4452_v25  ;;  %v2055_v63 = vadd.f32 %v4476_v6, %v2054_v57  ;;  %v4891_v25 = vld [vmem:[#allocation8_spill] sm:$0xff] }
 0x547   :  { %v2201_v19 = vadd.f32 %v2748_v5, %v2200_v23  ;;  %v2230_v21 = vmul.f32 %v4471_v18, %v2229_v29 }
 0x548   :  { %v2752_v26 = vpop.eup %2751 }
 0x549   :  { %v608_v22 = vpop.permute.xlu2 %607  ;;  %v4481_v41 = vpop.permute.xlu1 %2114  ;;  %v2205_v38 = vsel %vm2204_vm10, %v2748_v5, %v2201_v19  ;;  %v2213_v50 = vmul.f32 %v2752_v26, %v2135_v20  ;;  %vm2218_vm12 = vweird.f32 %v2752_v26  ;;  %v2231_v13 = vadd.f32 %v4471_v18, %v2230_v21 }
 0x54a   :  { %v4484_v40 = vadd.f32 %v608_v22, %v4322_v59  ;;  %2753 = vrcp.f32 %v4481_v41  ;;  %v2210_v52 = vsel %vm2207_vm11, %v2209_v8, %v2205_v38  ;;  %v2223_v59 = vand.u32 2147483648, %v2135_v20  ;;  %vm2219_vm15 = vmor %vm2217_vm14, %vm2218_vm12  ;;  %v2057_v22 = vpop.f32.mrf.mxu1 }
 0x54b   :  { %v2214_v53 = vsub.f32 1.0, %v2213_v50  ;;  %v2211_v48 = vmul.f32 %v2210_v52, %v2049_v33  ;;  %2755 = vrcp.f32 %v4469_v17  ;;  %v2163_v16 = vand.u32 2147483648, %v4481_v41  ;;  %v4892_v50 = vld [vmem:[#allocation20_spill] sm:$0xff] }
 0x54c   :  { %647 = vrot.lane.b32.xlu1 %v4484_v40, %s2851_s5  ;;  %v2224_v27 = vor.u32 1.1754944e-38, %v2223_v59  ;;  %v2161_v5 = vand.u32 2147483647, %v4481_v41  ;;  %v2235_v55 = vsel %vm4526_vm4, %v4471_v18, %v2231_v13  ;;  %vm2157_vm5 = vweird.f32 %v4481_v41 }
 0x54d   :  { %v2215_v60 = vmul.f32 %v2752_v26, %v2214_v53  ;;  %2374 = vmatmul.f32.gmra.mxu3 %v2211_v48  ;;  %v2239_v20 = vor.u32 1.1754944e-38, %v2238_v32  ;;  %v2164_v23 = vor.u32 1.1754944e-38, %v2163_v16  ;;  %v2058_v53 = vadd.f32 %v4490_v62, %v2057_v22  ;;  %v4896_v32 = vld [vmem:[#allocation30_spill] sm:$0xff] }
 0x54e   :  { %vm2162_vm8 = vcmp.eq.f32.partialorder %v2161_v5, 8.507059e+37  ;;  %v2268_v62 = vand.u32 2147483648, %v4469_v17  ;;  %v4904_v5 = vld [vmem:[#allocation18_spill] sm:$0xff] }
 0x54f   :  { %v2216_v34 = vadd.f32 %v2752_v26, %v2215_v60  ;;  %v2240_v19 = vsel %vm2237_vm7, %v2239_v20, %v2235_v55 }
 0x550   :  { %v2754_v61 = vpop.eup %2753  ;;  %v2241_v6 = vmul.f32 %v2240_v19, %v2055_v63  ;;  %v4907_v19 = vld [vmem:[#allocation23_spill] sm:$0xff] }
 0x551   :  { %v2153_v56 = vmul.f32 %v2754_v61, %v4481_v41  ;;  %v4498_v39 = vpop.permute.xlu0 %2144  ;;  %v638_v11 = vpop.permute.xlu2 %637  ;;  %v2220_v31 = vsel %vm2219_vm15, %v2752_v26, %v2216_v34  ;;  %vm2158_vm3 = vweird.f32 %v2754_v61  ;;  %v4893_v34 = vld [vmem:[#allocation22_spill] sm:$0xff]  ;;  %vm2262_vm15 = vweird.f32 %v4469_v17 }
 0x552   :  { %2757 = vrcp.f32 %v4498_v39  ;;  %660 = vst.msk [vmem:[#allocation4 + $0x10] sm:$0xff] %vm657_vm13, %v638_v11  ;;  %v606_v51 = vpop.permute.xlu1 %605  ;;  %v4510_v3 = vpop.eup %2755  ;;  %v2225_v15 = vsel %vm2222_vm1, %v2224_v27, %v2220_v31  ;;  %vm2159_vm6 = vmor %vm2157_vm5, %vm2158_vm3  ;;  %v2253_v38 = vand.u32 2147483648, %v4498_v39  ;;  %vm2247_vm10 = vweird.f32 %v4498_v39  ;;  %v4895_v27 = vld [vmem:[#allocation29_spill] sm:$0xff] }
 0x553   :  { %v2154_v9 = vsub.f32 1.0, %v2153_v56  ;;  %v4513_v4 = vadd.f32 %v606_v51, %v4304_v12  ;;  %v2226_v42 = vmul.f32 %v2225_v15, %v2052_v0  ;;  %v2258_v43 = vmul.f32 %v4510_v3, %v4469_v17  ;;  %v4894_v56 = vld [vmem:[#allocation11_spill] sm:$0xff]  ;;  %v2060_v11 = vpop.f32.mrf.mxu1  ;;  %v4905_v12 = vld [vmem:[#allocation37_spill] sm:$0xff] }
 0x554   :  { %670 = vrot.lane.b32.xlu1 %v4888_v45, %s2852_s9  ;;  %v2254_v59 = vor.u32 1.1754944e-38, %v2253_v38  ;;  %vm2263_vm14 = vweird.f32 %v4510_v3  ;;  %v2269_v31 = vor.u32 1.1754944e-38, %v2268_v62  ;;  %v2061_v13 = vadd.f32 %v4507_v58, %v2060_v11  ;;  %v4898_v45 = vld [vmem:[#allocation10_spill] sm:$0xff]  ;;  %v4911_v62 = vld [vmem:[#allocation41_spill] sm:$0xff] }
 0x555   :  { %v2155_v1 = vmul.f32 %v2754_v61, %v2154_v9  ;;  %645 = vrot.lane.b32.xlu0 %v4513_v4, %s2851_s5  ;;  %2377 = vmatmul.f32.gmra.mxu3 %v2226_v42  ;;  %v2259_v18 = vsub.f32 1.0, %v2258_v43  ;;  %vm2264_vm0 = vmor %vm2262_vm15, %vm2263_vm14  ;;  %v4900_v58 = vld [vmem:[#allocation38_spill] sm:$0xff]  ;;  %vm796_vm5 = vcmask 72768  }
 0x556   :  { %v4901_v42 = vld [vmem:[#allocation14_spill] sm:$0xff] }
 0x557   :  { %v2156_v28 = vadd.f32 %v2754_v61, %v2155_v1  ;;  %v2260_v52 = vmul.f32 %v4510_v3, %v2259_v18  ;;  %v4903_v1 = vld [vmem:[#allocation36_spill] sm:$0xff] }
 0x558   :  { %v2758_v24 = vpop.eup %2757 }
 0x559   :  { %v2160_v46 = vsel %vm2159_vm6, %v2754_v61, %v2156_v28  ;;  %v2243_v2 = vmul.f32 %v2758_v24, %v4498_v39  ;;  %v604_v30 = vpop.permute.xlu0 %603  ;;  %vm2248_vm9 = vweird.f32 %v2758_v24  ;;  %v2261_v0 = vadd.f32 %v4510_v3, %v2260_v52 }
 0x55a   :  { %v2165_v33 = vsel %vm2162_vm8, %v2164_v23, %v2160_v46  ;;  %v4541_v26 = vadd.f32 %v604_v30, %v4310_v49  ;;  %v636_v29 = vpop.permute.xlu1 %635  ;;  %v2251_v49 = vand.u32 2147483647, %v4498_v39  ;;  %vm2249_vm11 = vmor %vm2247_vm10, %vm2248_vm9  ;;  %v2266_v39 = vand.u32 2147483647, %v4469_v17  ;;  %v4897_v17 = vld [vmem:[#allocation16_spill] sm:$0xff]  ;;  %v4906_v46 = vld [vmem:[#allocation21_spill] sm:$0xff] }
 0x55b   :  { %v2244_v41 = vsub.f32 1.0, %v2243_v2  ;;  %659 = vst.msk [vmem:[#allocation4 + $0x8] sm:$0xff] %vm657_vm13, %v636_v29  ;;  %v2166_v10 = vmul.f32 %v2165_v33, %v2040_v37  ;;  %v2265_v51 = vsel %vm2264_vm0, %v4510_v3, %v2261_v0  ;;  %v4899_v3 = vld [vmem:[#allocation9_spill] sm:$0xff] }
 0x55c   :  { %643 = vrot.lane.b32.xlu2 %v4541_v26, %s2851_s5  ;;  %732 = vrot.lane.b32.xlu1 %v4891_v25, %s2844_s28  ;;  %vm2252_vm12 = vcmp.eq.f32.partialorder %v2251_v49, 8.507059e+37  ;;  %vm2267_vm1 = vcmp.eq.f32.partialorder %v2266_v39, 8.507059e+37  ;;  %v4912_v39 = vld [vmem:[#allocation28_spill] sm:$0xff] }
 0x55d   :  { %v2245_v8 = vmul.f32 %v2758_v24, %v2244_v41  ;;  %668 = vrot.lane.b32.xlu0 %v4892_v50, %s2852_s9  ;;  %2365 = vmatmul.f32.vlgmr.msra.gmra.mxu0 %v2166_v10  ;;  %v2270_v15 = vsel %vm2267_vm1, %v2269_v31, %v2265_v51  ;;  %v4908_v41 = vld [vmem:[#allocation31_spill] sm:$0xff] }
 0x55e   :  { %2380 = vmatmul.f32.gmra.mxu3 %v2241_v6  ;;  %v2271_v16 = vmul.f32 %v2270_v15, %v2061_v13  ;;  %v4909_v6 = vld [vmem:[#allocation32_spill] sm:$0xff] }
 0x55f   :  { %v2246_v48 = vadd.f32 %v2758_v24, %v2245_v8 }
 0x561   :  { %v634_v21 = vpop.permute.xlu0 %633  ;;  %v2250_v60 = vsel %vm2249_vm11, %v2758_v24, %v2246_v48 }
 0x562   :  { %658 = vst.msk [vmem:[#allocation4] sm:$0xff] %vm657_vm13, %v634_v21  ;;  %v642_v47 = vpop.permute.xlu1 %641  ;;  %v2255_v61 = vsel %vm2252_vm12, %v2254_v59, %v2250_v60 }
 0x563   :  { %662 = vst.msk [vmem:[#allocation4 + $0x20] sm:$0xff] %vm657_vm13, %v642_v47  ;;  %v2256_v57 = vmul.f32 %v2255_v61, %v2058_v53  ;;  %v4910_v61 = vld [vmem:[#allocation40_spill] sm:$0xff] }
 0x564   :  { %666 = vrot.lane.b32.xlu2 %v4893_v34, %s2852_s9  ;;  %738 = vrot.lane.b32.xlu1 %v4894_v56, %s2844_s28 }
 0x565   :  { %674 = vrot.lane.b32.xlu0 %v4895_v27, %s2852_s9 }
 0x566   :  { %2383 = vmatmul.f32.gmra.mxu3 %v2256_v57 }
 0x569   :  { %v640_v9 = vpop.permute.xlu0 %639 }
 0x56a   :  { %661 = vst.msk [vmem:[#allocation4 + $0x18] sm:$0xff] %vm657_vm13, %v640_v9 }
 0x56c   :  { %672 = vrot.lane.b32.xlu2 %v4896_v32, %s2852_s9  ;;  %744 = vrot.lane.b32.xlu1 %v4897_v17, %s2844_s28 }
 0x56d   :  { %736 = vrot.lane.b32.xlu0 %v4898_v45, %s2844_s28  ;;  %v2854_v45 = vmov 64.0  }
 0x56e   :  { %2386 = vmatmul.f32.gmra.mxu3 %v2271_v16  ;;  %2759 = vrcp.f32 %v2854_v45 }
 0x574   :  { %734 = vrot.lane.b32.xlu2 %v4899_v3, %s2844_s28  ;;  %678 = vrot.lane.b32.xlu1 %v4900_v58, %s2852_s9 }
 0x575   :  { %742 = vrot.lane.b32.xlu0 %v4901_v42, %s2844_s28  ;;  %v4913_v42 = vld [vmem:[#allocation39_spill] sm:$0xff] }
 0x57c   :  { %740 = vrot.lane.b32.xlu2 %v4902_v7, %s2844_s28  ;;  %701 = vrot.lane.b32.xlu1 %v4314_v44, %s2852_s9  ;;  %v2325_v44 = vpop.f32.mrf.mxu1 }
 0x57d   :  { %676 = vrot.lane.b32.xlu0 %v4903_v1, %s2852_s9 }
 0x584   :  { %746 = vrot.lane.b32.xlu2 %v4904_v5, %s2844_s28  ;;  %707 = vrot.lane.b32.xlu1 %v4330_v54, %s2852_s9 }
 0x585   :  { %699 = vrot.lane.b32.xlu0 %v4326_v14, %s2852_s9  ;;  %v2328_v14 = vpop.f32.mrf.mxu1 }
 0x58c   :  { %680 = vrot.lane.b32.xlu2 %v4905_v12, %s2852_s9  ;;  %713 = vrot.lane.b32.xlu1 %v4484_v40, %s2852_s9 }
 0x58d   :  { %705 = vrot.lane.b32.xlu0 %v4344_v36, %s2852_s9  ;;  %v2331_v43 = vpop.f32.mrf.mxu1 }
 0x594   :  { %703 = vrot.lane.b32.xlu2 %v4340_v35, %s2852_s9 }
 0x595   :  { %711 = vrot.lane.b32.xlu0 %v4513_v4, %s2852_s9  ;;  %v2334_v36 = vpop.f32.mrf.mxu1 }
 0x59c   :  { %709 = vrot.lane.b32.xlu2 %v4541_v26, %s2852_s9  ;;  %v2694_v26 = vld [vmem:[%s4763_s13] ss:$0 sm:$0xff]  ;;  %s2856_s13 = smov [#allocation4]  }
 0x59d   :  { %v2337_v37 = vpop.f32.mrf.mxu1  ;;  %v2326_v49 = vadd.f32 %v2694_v26, %v2325_v44  ;;  %v2329_v52 = vadd.f32 %v2694_v26, %v2328_v14  ;;  %v2332_v21 = vadd.f32 %v2694_v26, %v2331_v43  ;;  %v2335_v13 = vadd.f32 %v2694_v26, %v2334_v36  ;;  %s4722_s4 = sshll.u32 %s2856_s13, 4  ;;  %s2557_s4 = int_to_ptr.vmem [resolvable:$true] %s4722_s4 }
 0x59e   :  { %v2338_v32 = vadd.f32 %v2694_v26, %v2337_v37 }
 0x5a5   :  { %v2340_v8 = vpop.f32.mrf.mxu1 }
 0x5a6   :  { %v2341_v12 = vadd.f32 %v2694_v26, %v2340_v8 }
 0x5af   :  { %v2343_v51 = vpop.f32.mrf.mxu1 }
 0x5b0   :  { %v2344_v44 = vadd.f32 %v2694_v26, %v2343_v51 }
 0x5b6   :  { %v644_v54 = vpop.permute.xlu2 %643 }
 0x5b7   :  { %663 = vst.msk [vmem:[#allocation4 + $0x28] sm:$0xff] %vm657_vm13, %v644_v54  ;;  %v2760_v54 = vpop.eup %2759 }
 0x5b8   :  { %v2346_v14 = vpop.f32.mrf.mxu1  ;;  %vm2408_vm3 = vweird.f32 %v2760_v54 }
 0x5be   :  { %v667_v40 = vpop.permute.xlu2 %666  ;;  %v648_v55 = vpop.permute.xlu1 %647 }
 0x5bf   :  { %691 = vst.msk [vmem:[#allocation4] sm:$0xff] %vm690_vm2, %v667_v40 }
 0x5c0   :  { %665 = vst.msk [vmem:[#allocation4 + $0x38] sm:$0xff] %vm657_vm13, %v648_v55  ;;  %v2369_v35 = vpop.f32.mrf.mxu3 }
 0x5c1   :  { %v4628_v59 = vadd.f32 %v2369_v35, %v2329_v52 }
 0x5c6   :  { %v673_v28 = vpop.permute.xlu2 %672  ;;  %v671_v4 = vpop.permute.xlu1 %670 }
 0x5c7   :  { %694 = vst.msk [vmem:[#allocation4 + $0x18] sm:$0xff] %vm690_vm2, %v673_v28  ;;  %v646_v20 = vpop.permute.xlu0 %645  ;;  %v2347_v28 = vadd.f32 %v2694_v26, %v2346_v14 }
 0x5c8   :  { %664 = vst.msk [vmem:[#allocation4 + $0x30] sm:$0xff] %vm657_vm13, %v646_v20  ;;  %v2372_v24 = vpop.f32.mrf.mxu3  ;;  %vm723_vm13 = vcmask 64568   ;;  %v2404_v20 = vmul.f32 64.0, %v2760_v54 }
 0x5c9   :  { %693 = vst.msk [vmem:[#allocation4 + $0x10] sm:$0xff] %vm690_vm2, %v671_v4  ;;  %v4637_v31 = vadd.f32 %v2372_v24, %v2332_v21 }
 0x5ce   :  { %v735_v63 = vpop.permute.xlu2 %734  ;;  %v733_v23 = vpop.permute.xlu1 %732 }
 0x5cf   :  { %v757_v2 = vadd.f32 %v735_v63, %v4906_v46  ;;  %v669_v30 = vpop.permute.xlu0 %668  ;;  %v756_v18 = vadd.f32 %v733_v23, %v4907_v19  ;;  %v2405_v46 = vsub.f32 1.0, %v2404_v20 }
 0x5d0   :  { %692 = vst.msk [vmem:[#allocation4 + $0x8] sm:$0xff] %vm690_vm2, %v669_v30  ;;  %v2375_v33 = vpop.f32.mrf.mxu3 }
 0x5d1   :  { %774 = vrot.lane.b32.xlu0 %v757_v2, %s2853_s0  ;;  %772 = vrot.lane.b32.xlu2 %v756_v18, %s2853_s0  ;;  %v2376_v15 = vadd.f32 %v2375_v33, %v2335_v13  ;;  %v2406_v33 = vmul.f32 %v2760_v54, %v2405_v46 }
 0x5d6   :  { %v741_v29 = vpop.permute.xlu2 %740  ;;  %v739_v22 = vpop.permute.xlu1 %738 }
 0x5d7   :  { %v760_v10 = vadd.f32 %v741_v29, %v4908_v41  ;;  %v675_v25 = vpop.permute.xlu0 %674  ;;  %v759_v38 = vadd.f32 %v739_v22, %v4909_v6  ;;  %v2407_v41 = vadd.f32 %v2760_v54, %v2406_v33 }
 0x5d8   :  { %695 = vst.msk [vmem:[#allocation4 + $0x20] sm:$0xff] %vm690_vm2, %v675_v25  ;;  %v2378_v50 = vpop.f32.mrf.mxu3 }
 0x5d9   :  { %780 = vrot.lane.b32.xlu0 %v760_v10, %s2853_s0  ;;  %778 = vrot.lane.b32.xlu2 %v759_v38, %s2853_s0  ;;  %v2379_v5 = vadd.f32 %v2378_v50, %v2338_v32  ;;  %v2409_v38 = vsel %vm2408_vm3, %v2760_v54, %v2407_v41 }
 0x5da   :  { %v2366_v53 = vpop.f32.mrf.mxu0 }
 0x5db   :  { %v4626_v48 = vadd.f32 %v2366_v53, %v2326_v49 }
 0x5dd   :  { %v2390_v56 = vadd.f32 %v4628_v59, %v4626_v48 }
 0x5de   :  { %v747_v60 = vpop.permute.xlu2 %746  ;;  %v745_v47 = vpop.permute.xlu1 %744 }
 0x5df   :  { %v763_v0 = vadd.f32 %v747_v60, %v4910_v61  ;;  %v737_v57 = vpop.permute.xlu0 %736  ;;  %v762_v34 = vadd.f32 %v745_v47, %v4911_v62  ;;  %v2391_v9 = vadd.f32 %v2390_v56, %v4637_v31 }
 0x5e0   :  { %v758_v11 = vadd.f32 %v737_v57, %v4912_v39 }
 0x5e1   :  { %v2381_v27 = vpop.f32.mrf.mxu3  ;;  %786 = vrot.lane.b32.xlu0 %v763_v0, %s2853_s0  ;;  %784 = vrot.lane.b32.xlu2 %v762_v34, %s2853_s0  ;;  %v2392_v58 = vadd.f32 %v2391_v9, %v2376_v15  ;;  %v2855_v0 = vmov 63.0  }
 0x5e2   :  { %776 = vrot.lane.b32.xlu1 %v758_v11, %s2853_s0  ;;  %v2382_v40 = vadd.f32 %v2381_v27, %v2341_v12  ;;  %2761 = vrcp.f32 %v2855_v0 }
 0x5e3   :  { %v2393_v43 = vadd.f32 %v2392_v58, %v2379_v5 }
 0x5e5   :  { %v2394_v24 = vadd.f32 %v2393_v43, %v2382_v40 }
 0x5e6   :  { %v681_v17 = vpop.permute.xlu2 %680  ;;  %v679_v16 = vpop.permute.xlu1 %678 }
 0x5e7   :  { %698 = vst.msk [vmem:[#allocation4 + $0x38] sm:$0xff] %vm690_vm2, %v681_v17  ;;  %v743_v3 = vpop.permute.xlu0 %742 }
 0x5e8   :  { %v761_v7 = vadd.f32 %v743_v3, %v4913_v42  ;;  %697 = vst.msk [vmem:[#allocation4 + $0x30] sm:$0xff] %vm690_vm2, %v679_v16  ;;  %v2762_v11 = vpop.eup %2761 }
 0x5e9   :  { %v2384_v1 = vpop.f32.mrf.mxu3  ;;  %v2441_v32 = vmul.f32 63.0, %v2762_v11  ;;  %vm2445_vm4 = vweird.f32 %v2762_v11 }
 0x5ea   :  { %782 = vrot.lane.b32.xlu1 %v761_v7, %s2853_s0  ;;  %v2385_v55 = vadd.f32 %v2384_v1, %v2344_v44 }
 0x5eb   :  { %v2442_v58 = vsub.f32 1.0, %v2441_v32 }
 0x5ec   :  { %v2395_v63 = vadd.f32 %v2394_v24, %v2385_v55 }
 0x5ed   :  { %v2443_v1 = vmul.f32 %v2762_v11, %v2442_v58 }
 0x5ee   :  { %v704_v35 = vpop.permute.xlu2 %703  ;;  %v702_v36 = vpop.permute.xlu1 %701 }
 0x5ef   :  { %726 = vst.msk [vmem:[#allocation4 + $0x10] sm:$0xff] %vm723_vm13, %v704_v35  ;;  %v677_v4 = vpop.permute.xlu0 %676  ;;  %v2444_v44 = vadd.f32 %v2762_v11, %v2443_v1 }
 0x5f0   :  { %696 = vst.msk [vmem:[#allocation4 + $0x28] sm:$0xff] %vm690_vm2, %v677_v4 }
 0x5f1   :  { %725 = vst.msk [vmem:[#allocation4 + $0x8] sm:$0xff] %vm723_vm13, %v702_v36  ;;  %v2387_v37 = vpop.f32.mrf.mxu3  ;;  %v2446_v43 = vsel %vm2445_vm4, %v2762_v11, %v2444_v44 }
 0x5f2   :  { %v2388_v23 = vadd.f32 %v2387_v37, %v2347_v28 }
 0x5f4   :  { %v2396_v2 = vadd.f32 %v2395_v63, %v2388_v23 }
 0x5f6   :  { %v2397_v30 = vrot.slane %v2396_v2, 4  ;;  %v710_v19 = vpop.permute.xlu2 %709  ;;  %v708_v18 = vpop.permute.xlu1 %707 }
 0x5f7   :  { %729 = vst.msk [vmem:[#allocation4 + $0x28] sm:$0xff] %vm723_vm13, %v710_v19  ;;  %v700_v26 = vpop.permute.xlu0 %699 }
 0x5f8   :  { %v2398_v29 = vadd.f32 %v2397_v30, %v2396_v2  ;;  %724 = vst.msk [vmem:[#allocation4] sm:$0xff] %vm723_vm13, %v700_v26 }
 0x5f9   :  { %728 = vst.msk [vmem:[#allocation4 + $0x20] sm:$0xff] %vm723_vm13, %v708_v18 }
 0x5fa   :  { %v2399_v22 = vrot.slane %v2398_v29, 2 }
 0x5fc   :  { %v2400_v10 = vadd.f32 %v2399_v22, %v2398_v29 }
 0x5fe   :  { %v2401_v25 = vrot.slane %v2400_v10, 1  ;;  %v714_v6 = vpop.permute.xlu1 %713 }
 0x5ff   :  { %v706_v8 = vpop.permute.xlu0 %705  ;;  %731 = vst.msk [vmem:[#allocation4 + $0x38] sm:$0xff] %vm723_vm13, %v714_v6 }
 0x600   :  { %v2402_v50 = vadd.f32 %v2401_v25, %v2400_v10  ;;  %727 = vst.msk [vmem:[#allocation4 + $0x18] sm:$0xff] %vm723_vm13, %v706_v8 }
 0x602   :  { %v2410_v49 = vmul.f32 %v2409_v38, %v2402_v50 }
 0x604   :  { %v4654_v52 = vsub.f32 %v4626_v48, %v2410_v49  ;;  %v4657_v53 = vsub.f32 %v4628_v59, %v2410_v49  ;;  %v4660_v21 = vsub.f32 %v4637_v31, %v2410_v49  ;;  %v4662_v60 = vsub.f32 %v2376_v15, %v2410_v49 }
 0x605   :  { %v4668_v62 = vsub.f32 %v2379_v5, %v2410_v49  ;;  %v4673_v34 = vsub.f32 %v2382_v40, %v2410_v49  ;;  %v4677_v27 = vsub.f32 %v2385_v55, %v2410_v49  ;;  %v4681_v13 = vsub.f32 %v2388_v23, %v2410_v49 }
 0x606   :  { %v2419_v47 = vmul.f32 %v4654_v52, %v4654_v52  ;;  %v2420_v61 = vmul.f32 %v4657_v53, %v4657_v53  ;;  %v2421_v48 = vmul.f32 %v4660_v21, %v4660_v21  ;;  %v2422_v56 = vmul.f32 %v4662_v60, %v4662_v60 }
 0x607   :  { %v712_v57 = vpop.permute.xlu0 %711  ;;  %v2423_v51 = vmul.f32 %v4668_v62, %v4668_v62  ;;  %v2424_v9 = vmul.f32 %v4673_v34, %v4673_v34  ;;  %v2425_v17 = vmul.f32 %v4677_v27, %v4677_v27  ;;  %v2426_v45 = vmul.f32 %v4681_v13, %v4681_v13 }
 0x608   :  { %v2427_v59 = vadd.f32 %v2420_v61, %v2419_v47  ;;  %730 = vst.msk [vmem:[#allocation4 + $0x30] sm:$0xff] %vm723_vm13, %v712_v57 }
 0x60a   :  { %v2428_v39 = vadd.f32 %v2427_v59, %v2421_v48 }
 0x60c   :  { %v2429_v31 = vadd.f32 %v2428_v39, %v2422_v56 }
 0x60e   :  { %v2430_v15 = vadd.f32 %v2429_v31, %v2423_v51 }
 0x610   :  { %v2431_v16 = vadd.f32 %v2430_v15, %v2424_v9 }
 0x612   :  { %v2432_v3 = vadd.f32 %v2431_v16, %v2425_v17 }
 0x614   :  { %v2433_v42 = vadd.f32 %v2432_v3, %v2426_v45 }
 0x616   :  { %v2434_v7 = vrot.slane %v2433_v42, 4 }
 0x618   :  { %v2435_v5 = vadd.f32 %v2434_v7, %v2433_v42 }
 0x61a   :  { %v2436_v12 = vrot.slane %v2435_v5, 2 }
 0x61c   :  { %v2437_v14 = vadd.f32 %v2436_v12, %v2435_v5 }
 0x61e   :  { %v2438_v54 = vrot.slane %v2437_v14, 1 }
 0x620   :  { %v2439_v40 = vadd.f32 %v2438_v54, %v2437_v14 }
 0x622   :  { %v2447_v55 = vmul.f32 %v2446_v43, %v2439_v40 }
 0x624   :  { %2763 = vrsqrt.f32 %v2447_v55  ;;  %vm2455_vm6 = vcmp.eq.f32.partialorder %v2447_v55, inf  ;;  %v2458_v46 = vand.u32 2147483648, %v2447_v55  ;;  %vm2457_vm7 = vcmp.eq.f32.partialorder %v2447_v55, 0.0 }
 0x62a   :  { %v2764_v35 = vpop.eup %2763 }
 0x62b   :  { %v2449_v36 = vmul.f32 %v2764_v35, %v2447_v55  ;;  %v773_v28 = vpop.permute.xlu2 %772 }
 0x62c   :  { %797 = vst.msk [vmem:[#allocation4] sm:$0xff] %vm796_vm5, %v773_v28 }
 0x62d   :  { %v2450_v4 = vmul.f32 %v2764_v35, %v2449_v36 }
 0x62f   :  { %v2451_v20 = vmul.f32 0.5, %v2450_v4 }
 0x631   :  { %v2452_v24 = vsub.f32 1.5, %v2451_v20 }
 0x633   :  { %v2453_v37 = vmul.f32 %v2764_v35, %v2452_v24  ;;  %v779_v63 = vpop.permute.xlu2 %778 }
 0x634   :  { %800 = vst.msk [vmem:[#allocation4 + $0x18] sm:$0xff] %vm796_vm5, %v779_v63 }
 0x635   :  { %v2454_v23 = vmul.f32 %v2453_v37, %v2447_v55 }
 0x637   :  { %v2456_v2 = vsel %vm2455_vm6, %v2447_v55, %v2454_v23 }
 0x638   :  { %v2459_v30 = vsel %vm2457_vm7, %v2458_v46, %v2456_v2 }
 0x639   :  { %v2460_v19 = vadd.f32 1e-05, %v2459_v30 }
 0x63b   :  { %2765 = vrcp.f32 %v2460_v19  ;;  %v785_v18 = vpop.permute.xlu2 %784  ;;  %v2472_v41 = vand.u32 2147483648, %v2460_v19  ;;  %v2470_v25 = vand.u32 2147483647, %v2460_v19  ;;  %vm2466_vm9 = vweird.f32 %v2460_v19 }
 0x63c   :  { %803 = vst.msk [vmem:[#allocation4 + $0x30] sm:$0xff] %vm796_vm5, %v785_v18 }
 0x63d   :  { %v2473_v38 = vor.u32 1.1754944e-38, %v2472_v41  ;;  %vm2471_vm11 = vcmp.eq.f32.partialorder %v2470_v25, 8.507059e+37 }
 0x641   :  { %v2766_v33 = vpop.eup %2765 }
 0x642   :  { %v2462_v26 = vmul.f32 %v2766_v33, %v2460_v19  ;;  %vm2467_vm8 = vweird.f32 %v2766_v33 }
 0x643   :  { %v775_v29 = vpop.permute.xlu0 %774  ;;  %vm2468_vm10 = vmor %vm2466_vm9, %vm2467_vm8 }
 0x644   :  { %v2463_v22 = vsub.f32 1.0, %v2462_v26  ;;  %798 = vst.msk [vmem:[#allocation4 + $0x8] sm:$0xff] %vm796_vm5, %v775_v29 }
 0x646   :  { %v2464_v10 = vmul.f32 %v2766_v33, %v2463_v22 }
 0x648   :  { %v2465_v6 = vadd.f32 %v2766_v33, %v2464_v10 }
 0x64a   :  { %v2469_v8 = vsel %vm2468_vm10, %v2766_v33, %v2465_v6 }
 0x64b   :  { %v2474_v50 = vsel %vm2471_vm11, %v2473_v38, %v2469_v8  ;;  %v781_v49 = vpop.permute.xlu0 %780 }
 0x64c   :  { %v2475_v47 = vmul.f32 %v2474_v50, %v4654_v52  ;;  %v2476_v61 = vmul.f32 %v2474_v50, %v4657_v53  ;;  %v4696_v0 = vmul.f32 %v2474_v50, %v4660_v21  ;;  %v4699_v57 = vmul.f32 %v2474_v50, %v4662_v60  ;;  %801 = vst.msk [vmem:[#allocation4 + $0x20] sm:$0xff] %vm796_vm5, %v781_v49 }
 0x64d   :  { %v4703_v48 = vmul.f32 %v2474_v50, %v4668_v62  ;;  %v4706_v59 = vmul.f32 %v2474_v50, %v4673_v34  ;;  %v4709_v56 = vmul.f32 %v2474_v50, %v4677_v27  ;;  %v4712_v52 = vmul.f32 %v2474_v50, %v4681_v13 }
 0x64e   :  { %v2491_v53 = vmin.f32 %v2475_v47, 0.0  ;;  %v2492_v21 = vmin.f32 %v2476_v61, 0.0  ;;  %v2493_v39 = vmin.f32 %v4696_v0, 0.0  ;;  %v2494_v60 = vmin.f32 %v4699_v57, 0.0 }
 0x64f   :  { %v2495_v11 = vmin.f32 %v4703_v48, 0.0  ;;  %v2496_v62 = vmin.f32 %v4706_v59, 0.0  ;;  %v2497_v51 = vmin.f32 %v4709_v56, 0.0  ;;  %v2498_v27 = vmin.f32 %v4712_v52, 0.0 }
 0x650   :  { %v2499_v34 = vmul.f32 1.442695, %v2491_v53  ;;  %v2501_v31 = vmul.f32 1.442695, %v2492_v21  ;;  %v2503_v9 = vmul.f32 1.442695, %v2493_v39 }
 0x651   :  { %v2505_v15 = vmul.f32 1.442695, %v2494_v60  ;;  %v2507_v32 = vmul.f32 1.442695, %v2495_v11  ;;  %v2509_v16 = vmul.f32 1.442695, %v2496_v62 }
 0x652   :  { %2767 = vpow2.f32 %v2499_v34  ;;  %v2511_v45 = vmul.f32 1.442695, %v2497_v51  ;;  %v2513_v3 = vmul.f32 1.442695, %v2498_v27  ;;  %vm2483_vm12 = vcmp.gt.f32.partialorder %v2475_v47, 0.0 }
 0x653   :  { %v787_v13 = vpop.permute.xlu0 %786  ;;  %2769 = vpow2.f32 %v2501_v31  ;;  %vm2484_vm14 = vcmp.gt.f32.partialorder %v2476_v61, 0.0  ;;  %vm2485_vm15 = vcmp.gt.f32.partialorder %v4696_v0, 0.0  ;;  %vm2486_vm0 = vcmp.gt.f32.partialorder %v4699_v57, 0.0 }
 0x654   :  { %804 = vst.msk [vmem:[#allocation4 + $0x38] sm:$0xff] %vm796_vm5, %v787_v13  ;;  %v777_v17 = vpop.permute.xlu1 %776  ;;  %2771 = vpow2.f32 %v2503_v9  ;;  %vm2487_vm1 = vcmp.gt.f32.partialorder %v4703_v48, 0.0  ;;  %vm2488_vm2 = vcmp.gt.f32.partialorder %v4706_v59, 0.0  ;;  %vm2489_vm13 = vcmp.gt.f32.partialorder %v4709_v56, 0.0 }
 0x655   :  { %799 = vst.msk [vmem:[#allocation4 + $0x10] sm:$0xff] %vm796_vm5, %v777_v17  ;;  %2773 = vpow2.f32 %v2505_v15  ;;  %vm2490_vm3 = vcmp.gt.f32.partialorder %v4712_v52, 0.0 }
 0x656   :  { %2775 = vpow2.f32 %v2507_v32 }
 0x657   :  { %2777 = vpow2.f32 %v2509_v16 }
 0x658   :  { %v2768_v58 = vpop.eup %2767  ;;  %2779 = vpow2.f32 %v2511_v45 }
 0x659   :  { %v2770_v42 = vpop.eup %2769  ;;  %2781 = vpow2.f32 %v2513_v3  ;;  %v2647_v7 = vadd.f32 -1.0, %v2768_v58 }
 0x65a   :  { %v2772_v1 = vpop.eup %2771  ;;  %v2648_v5 = vadd.f32 -1.0, %v2770_v42 }
 0x65b   :  { %v2774_v44 = vpop.eup %2773  ;;  %v2649_v14 = vadd.f32 -1.0, %v2772_v1  ;;  %v2523_v54 = vsel %vm2483_vm12, %v2475_v47, %v2647_v7 }
 0x65c   :  { %v783_v12 = vpop.permute.xlu1 %782  ;;  %v2776_v43 = vpop.eup %2775  ;;  %v2650_v40 = vadd.f32 -1.0, %v2774_v44  ;;  %v2524_v55 = vsel %vm2484_vm14, %v2476_v61, %v2648_v5  ;;  %2531 = vst [vmem:[#allocation2] sm:$0xff] %v2523_v54 }
 0x65d   :  { %802 = vst.msk [vmem:[#allocation4 + $0x28] sm:$0xff] %vm796_vm5, %v783_v12  ;;  %v2778_v35 = vpop.eup %2777  ;;  %v2651_v36 = vadd.f32 -1.0, %v2776_v43  ;;  %v2525_v28 = vsel %vm2485_vm15, %v4696_v0, %v2649_v14 }
 0x65e   :  { %2564 = dma.vmem_to_hbm [thread:$0]  %s2557_s4, 1024, %s2559_s10, [#allocation5], %s2857_s15, %s2857_s15, %s2858_s19   ;;  %2532 = vst [vmem:[#allocation2 + $0x8] sm:$0xff] %v2524_v55  ;;  %v2780_v4 = vpop.eup %2779  ;;  %v2652_v20 = vadd.f32 -1.0, %v2778_v35  ;;  %v2526_v24 = vsel %vm2486_vm0, %v4699_v57, %v2650_v40 }
 0x65f   :  { %2533 = vst [vmem:[#allocation2 + $0x10] sm:$0xff] %v2525_v28  ;;  %v2782_v37 = vpop.eup %2781  ;;  %v2653_v63 = vadd.f32 -1.0, %v2780_v4  ;;  %v2527_v23 = vsel %vm2487_vm1, %v4703_v48, %v2651_v36 }
 0x660   :  { %2534 = vst [vmem:[#allocation2 + $0x18] sm:$0xff] %v2526_v24  ;;  %v2654_v46 = vadd.f32 -1.0, %v2782_v37  ;;  %v2528_v2 = vsel %vm2488_vm2, %v4706_v59, %v2652_v20 }
 0x661   :  { %2535 = vst [vmem:[#allocation2 + $0x20] sm:$0xff] %v2527_v23  ;;  %v2529_v30 = vsel %vm2489_vm13, %v4709_v56, %v2653_v63 }
 0x662   :  { %2536 = vst [vmem:[#allocation2 + $0x28] sm:$0xff] %v2528_v2  ;;  %v2530_v19 = vsel %vm2490_vm3, %v4712_v52, %v2654_v46 }
 0x663   :  { %2537 = vst [vmem:[#allocation2 + $0x30] sm:$0xff] %v2529_v30 }
 0x664   :  { %2538 = vst [vmem:[#allocation2 + $0x38] sm:$0xff] %v2530_v19 }
 0x665   :  { %2551 = dma.vmem_to_hbm [thread:$0]  %s2544_s21, 1024, %s2546_s24, [#allocation3], %s2857_s15, %s2857_s15, %s2858_s19  }
 0x666   :  { %2839 = dma.done.wait [#allocation3], 1024  }
 0x667   :  { %2840 = vsyncadd [#allocation3], 4294966272 }
 0x668   :  { %2841 = dma.done.wait [#allocation5], 1024  }
 0x669   :  { %2842 = vsyncadd [#allocation5], 4294966272 }
 0x66a   :  { %2573 = vsyncpa [#allocation3], 1 }
 0x66b   :  { %2574 = vsyncpa [#allocation5], 1 }

</bundles_post_ra>
